<compile_context>
chip_gen: v6e
topology: v6e:2x2x1
jax: 0.10.0
libtpu: 0.0.40
codegen_flags: <defaults>
</compile_context>

<pallas_src>
import functools

import jax
import jax.numpy as jnp
import numpy as np
from jax.experimental import pallas as pl
from jax.experimental.pallas import tpu as pltpu

HIDDEN = 32           # LSTM hidden size
IN_SIZE = 3           # LSTM input size per step
SEQ = 32              # 96 / 3 time steps
FEAT = 96             # flattened feature size
GATES = 4 * HIDDEN    # 128 = one full vreg lane width

# ---- packed-parameter row layout (lane width 128, all f32) ------------------
ROW_WHH = 0                       # rows  0..31 : W_hh.T (gate-scaled)   (32,128)
ROW_WIH = 32                      # rows 32..34 : W_ih.T (gate-scaled)   (3,128)
ROW_BL = 35                       # row  35     : (b_ih + b_hh) scaled   (128,)
ROW_W2 = 40                       # rows 40..71 : fc2_w.T zero-padded    (32,128)
ROW_B2 = 72                       # row  72     : fc2_b  zero-padded
FC_ROWS = {3: (80, 85), 4: (88, 93), 5: (96, 101),
           6: (104, 109), 7: (112, 117), 8: (120, 125)}
PK_ROWS = 128


def net_kernel(x_ref, w01_ref, pk_ref, out_ref):
    B = x_ref.shape[0]
    x = x_ref[...]

    # fc0 + tanh, fc1 + tanh (bias-free 96x96 linears on the MXU)
    h = jnp.tanh(jnp.dot(x, w01_ref[0:FEAT, :], preferred_element_type=jnp.float32))
    h = jnp.tanh(jnp.dot(h, w01_ref[FEAT:2 * FEAT, :], preferred_element_type=jnp.float32))

    # ---- LSTM ----------------------------------------------------------------
    wih = pk_ref[ROW_WIH:ROW_WIH + IN_SIZE, :]      # (3, 128)   gate-scaled
    whh = pk_ref[ROW_WHH:ROW_WHH + HIDDEN, :]       # (32, 128)  gate-scaled
    b_g = pk_ref[ROW_BL:ROW_BL + 1, :]              # (1, 128)   gate-scaled bias

    h_t = jnp.zeros((B, HIDDEN), jnp.float32)
    c_t = jnp.zeros((B, HIDDEN), jnp.float32)

    # Fully unrolled serial recurrence.  Per step, only the h_t @ W_hh dot sits on
    # the carry chain; x_t slice + x_t @ W_ih are carry-independent and get packed
    # into the MXU/XLU idle cycles while the previous result drains.  Full unroll
    # lets Mosaic hoist the W_hh MXU weight push out of the step.
    for t in range(SEQ):
        x_t = h[:, t * IN_SIZE:(t + 1) * IN_SIZE]   # (B, 3) static lane slice
        gates = (jnp.dot(x_t, wih, preferred_element_type=jnp.float32)
                 + jnp.dot(h_t, whh, preferred_element_type=jnp.float32)
                 + b_g)
        # Single EUP push for all four gates: i/f/o columns of the weights were
        # pre-scaled by 0.5, so sigmoid(z) == 0.5 * (tanh(z/2) + 1) falls out of
        # one tanh over the full 128-lane vreg; g columns are unscaled -> tanh(z).
        t_all = jnp.tanh(gates)
        s_all = 0.5 * t_all + 0.5                   # one full-vreg VPU FMA
        i_g = s_all[:, 0 * HIDDEN:1 * HIDDEN]
        f_g = s_all[:, 1 * HIDDEN:2 * HIDDEN]
        g_g = t_all[:, 2 * HIDDEN:3 * HIDDEN]
        o_g = s_all[:, 3 * HIDDEN:4 * HIDDEN]
        c_t = f_g * c_t + i_g * g_g
        h_t = o_g * jnp.tanh(c_t)

    # ---- post-LSTM FC stack ----------------------------------------------------
    z = jnp.tanh(h_t)
    # fc2 (32 -> 5) on the MXU with a zero-padded (32,128) weight; result is a
    # lane-dense (B,128) slab whose columns 5..127 are exactly zero.
    z = jnp.tanh(
        jnp.dot(z, pk_ref[ROW_W2:ROW_W2 + HIDDEN, :], preferred_element_type=jnp.float32)
        + pk_ref[ROW_B2:ROW_B2 + 1, :])

    # fc3..fc7 (+tanh) and fc8: 5-wide layers on the VPU via broadcast-MAC over the
    # 5 input columns; zero padding keeps lanes 5..127 at zero through the chain.
    def small_fc(zin, wrow, brow):
        acc = zin[:, 0:1] * pk_ref[wrow:wrow + 1, :] + pk_ref[brow:brow + 1, :]
        for i in range(1, 5):
            acc = acc + zin[:, i:i + 1] * pk_ref[wrow + i:wrow + i + 1, :]
        return acc

    for layer in (3, 4, 5, 6, 7):
        wrow, brow = FC_ROWS[layer]
        z = jnp.tanh(small_fc(z, wrow, brow))
    wrow, brow = FC_ROWS[8]
    z = small_fc(z, wrow, brow)            # (B,128); col 0 = fc8 output, cols 1.. = 0

    out_ref[...] = z                       # full-tile, unmasked lane-dense store


def init_params(key):
    """Deterministic PyTorch-style uniform init (torch (out,in) layout)."""
    ks = list(jax.random.split(key, 32))
    k = iter(ks)

    def unif(shape, fan_in):
        bound = 1.0 / np.sqrt(fan_in)
        return jax.random.uniform(next(k), shape, jnp.float32, -bound, bound)

    p = {}
    p["fc0_w"] = unif((96, 96), 96)
    p["fc1_w"] = unif((96, 96), 96)
    # LSTM(3, 32): weight_ih (128, 3), weight_hh (128, 32), biases (128,)
    p["w_ih"] = unif((4 * HIDDEN, IN_SIZE), HIDDEN)
    p["w_hh"] = unif((4 * HIDDEN, HIDDEN), HIDDEN)
    p["b_ih"] = unif((4 * HIDDEN,), HIDDEN)
    p["b_hh"] = unif((4 * HIDDEN,), HIDDEN)
    for name, (out_f, in_f) in [
        ("fc2", (5, 32)), ("fc3", (5, 5)), ("fc4", (5, 5)), ("fc5", (5, 5)),
        ("fc6", (5, 5)), ("fc7", (5, 5)), ("fc8", (1, 5)),
    ]:
        p[name + "_w"] = unif((out_f, in_f), in_f)
        p[name + "_b"] = unif((out_f,), in_f)
    return p


def prepare_params(params):
    """One-time re-layout of torch-style parameters into the two kernel arrays."""
    p = {k: np.asarray(v, np.float32) for k, v in params.items()}
    w01 = np.concatenate([p["fc0_w"].T, p["fc1_w"].T], axis=0)            # (192, 96)
    pk = np.zeros((PK_ROWS, GATES), np.float32)                            # (128, 128)

    # Single-tanh gate activation: scale the i/f/o output columns (0:64, 96:128)
    # of W_ih, W_hh and the combined bias by 0.5 so the kernel's tanh(gates)
    # yields tanh(z/2) for i/f/o (sigmoid via 0.5*(t+1)) and tanh(z) for g.
    # Power-of-two scaling is exact in f32.
    gate_scale = np.full((GATES,), 0.5, np.float32)
    gate_scale[2 * HIDDEN:3 * HIDDEN] = 1.0
    pk[ROW_WHH:ROW_WHH + HIDDEN, :] = p["w_hh"].T * gate_scale[None, :]
    pk[ROW_WIH:ROW_WIH + IN_SIZE, :] = p["w_ih"].T * gate_scale[None, :]
    pk[ROW_BL, :] = (p["b_ih"] + p["b_hh"]) * gate_scale

    pk[ROW_W2:ROW_W2 + HIDDEN, :5] = p["fc2_w"].T
    pk[ROW_B2, :5] = p["fc2_b"]
    for layer, (wrow, brow) in FC_ROWS.items():
        w = p[f"fc{layer}_w"]                                              # (out, 5)
        pk[wrow:wrow + 5, :w.shape[0]] = w.T
        pk[brow, :w.shape[0]] = p[f"fc{layer}_b"]
    return jnp.asarray(w01), jnp.asarray(pk)


def _cost_estimate(b_pad):
    flops = 2 * b_pad * (2 * FEAT * FEAT                      # fc0, fc1
                         + SEQ * (IN_SIZE + HIDDEN) * GATES   # LSTM dots
                         + HIDDEN * 5 + 6 * 5 * 5)            # fc2..fc8
    transcendentals = b_pad * (2 * FEAT + SEQ * (GATES + HIDDEN) + HIDDEN + 6 * 5)
    bytes_accessed = 4 * (b_pad * FEAT + 2 * FEAT * FEAT + PK_ROWS * GATES + b_pad * GATES)
    return pl.CostEstimate(flops=flops, transcendentals=transcendentals,
                           bytes_accessed=bytes_accessed)


@functools.partial(jax.jit, static_argnames=("batch_size",))
def net_forward(x, w01, pk, batch_size):
    x2d = x.reshape(batch_size, FEAT).astype(jnp.float32)     # (B, 96)
    # Pad batch to a sublane multiple (>=8): every tile becomes a full, unmasked
    # (8,128) vreg tile; extra rows are free (the vregs process 8 rows anyway).
    b_pad = max(8, -(-batch_size // 8) * 8)
    if b_pad != batch_size:
        x2d = jnp.pad(x2d, ((0, b_pad - batch_size), (0, 0)))

    vmem = pl.BlockSpec(memory_space=pltpu.MemorySpace.VMEM)
    out = pl.pallas_call(
        net_kernel,
        out_shape=jax.ShapeDtypeStruct((b_pad, GATES), jnp.float32),
        in_specs=[vmem, vmem, vmem],
        out_specs=vmem,
        cost_estimate=_cost_estimate(b_pad),
    )(x2d, w01, pk)
    # TODO(synk): for large serving batches on v7x, add a ("parallel",) grid over
    # batch-row tiles so the second TensorCore is used; at B<=8 a grid only adds
    # per-step pipeline overhead, so the gridless resident form is kept here.
    return out[:batch_size, :1]


def net_reference(x, params, batch_size):
    """Pure-JAX reference mirroring the PyTorch forward (highest-precision dots)."""
    hp = jax.lax.Precision.HIGHEST
    h = jnp.tanh(jnp.dot(x.reshape(batch_size, -1), params["fc0_w"].T, precision=hp))
    h = jnp.tanh(jnp.dot(h, params["fc1_w"].T, precision=hp))
    seq = h.reshape(batch_size, SEQ, IN_SIZE)
    h_t = jnp.zeros((batch_size, HIDDEN), jnp.float32)
    c_t = jnp.zeros((batch_size, HIDDEN), jnp.float32)
    b = params["b_ih"] + params["b_hh"]
    for t in range(SEQ):
        gates = (jnp.dot(seq[:, t, :], params["w_ih"].T, precision=hp)
                 + jnp.dot(h_t, params["w_hh"].T, precision=hp) + b)
        i_g = jax.nn.sigmoid(gates[:, 0:32])
        f_g = jax.nn.sigmoid(gates[:, 32:64])
        g_g = jnp.tanh(gates[:, 64:96])
        o_g = jax.nn.sigmoid(gates[:, 96:128])
        c_t = f_g * c_t + i_g * g_g
        h_t = o_g * jnp.tanh(c_t)
    z = jnp.tanh(h_t)
    for name in ["fc2", "fc3", "fc4", "fc5", "fc6", "fc7"]:
        z = jnp.tanh(jnp.dot(z, params[name + "_w"].T, precision=hp) + params[name + "_b"])
    return jnp.dot(z, params["fc8_w"].T, precision=hp) + params["fc8_b"]


if __name__ == "__main__":
    key = jax.random.PRNGKey(0)
    k_param, k_x = jax.random.split(key)

    batch_size = 2
    # Input consistent with forward(): flattens to (B, 96); natural shape (B, 32, 3).
    x = jax.random.normal(k_x, (batch_size, SEQ, IN_SIZE), jnp.float32)
    params = init_params(k_param)
    w01, pk = prepare_params(params)        # one-time kernel-layout parameter prep

    out = net_forward(x, w01, pk, batch_size)
    out = jax.block_until_ready(out)

    ref = net_reference(x, params, batch_size)
    assert out.shape == (batch_size, 1)
    # Tolerance covers MXU f32-emulation and tanh-derived-sigmoid vs exact-f32 ref.
    np.testing.assert_allclose(np.asarray(out), np.asarray(ref), atol=1e-3, rtol=1e-3)

    print("KERNEL_OK")
</pallas_src>

<mosaic_0001>
module attributes {stable_mosaic.version = 11 : i64} {
  func.func @net_kernel(%arg0: memref<8x96xf32, #tpu.memory_space<vmem>>, %arg1: memref<192x96xf32, #tpu.memory_space<vmem>>, %arg2: memref<128x128xf32, #tpu.memory_space<vmem>>, %arg3: memref<8x128xf32, #tpu.memory_space<vmem>>) attributes {dimension_semantics = [], scalar_prefetch = 0 : i64, scratch_operands = 0 : i64, tpu.core_type = #tpu.core_type<tc>} {
    %c0 = arith.constant 0 : index
    %c0_0 = arith.constant 0 : index
    %0 = vector.load %arg0[%c0, %c0_0] : memref<8x96xf32, #tpu.memory_space<vmem>>, vector<8x96xf32>
    %c0_1 = arith.constant 0 : index
    %c0_2 = arith.constant 0 : index
    %1 = vector.load %arg1[%c0_1, %c0_2] : memref<192x96xf32, #tpu.memory_space<vmem>>, vector<96x96xf32>
    %cst = arith.constant dense<0.000000e+00> : vector<8x96xf32>
    %2 = tpu.matmul %0, %1, %cst {dimension_numbers = #tpu.dot_dimension_numbers<[1], [0], [0], [1], [0, 0, 1, 1], [], []>} : vector<8x96xf32>, vector<96x96xf32>, vector<8x96xf32> -> vector<8x96xf32>
    %3 = math.tanh %2 : vector<8x96xf32>
    %c96 = arith.constant 96 : index
    %c0_3 = arith.constant 0 : index
    %4 = vector.load %arg1[%c96, %c0_3] : memref<192x96xf32, #tpu.memory_space<vmem>>, vector<96x96xf32>
    %cst_4 = arith.constant dense<0.000000e+00> : vector<8x96xf32>
    %5 = tpu.matmul %3, %4, %cst_4 {dimension_numbers = #tpu.dot_dimension_numbers<[1], [0], [0], [1], [0, 0, 1, 1], [], []>} : vector<8x96xf32>, vector<96x96xf32>, vector<8x96xf32> -> vector<8x96xf32>
    %6 = math.tanh %5 : vector<8x96xf32>
    %c32 = arith.constant 32 : index
    %c0_5 = arith.constant 0 : index
    %7 = vector.load %arg2[%c32, %c0_5] : memref<128x128xf32, #tpu.memory_space<vmem>>, vector<3x128xf32>
    %c0_6 = arith.constant 0 : index
    %c0_7 = arith.constant 0 : index
    %8 = vector.load %arg2[%c0_6, %c0_7] : memref<128x128xf32, #tpu.memory_space<vmem>>, vector<32x128xf32>
    %c35 = arith.constant 35 : index
    %c0_8 = arith.constant 0 : index
    %9 = vector.load %arg2[%c35, %c0_8] : memref<128x128xf32, #tpu.memory_space<vmem>>, vector<1x128xf32>
    %cst_9 = arith.constant 0.000000e+00 : f32
    %10 = vector.broadcast %cst_9 : f32 to vector<8x32xf32>
    %cst_10 = arith.constant 0.000000e+00 : f32
    %11 = vector.broadcast %cst_10 : f32 to vector<8x32xf32>
    %12 = vector.extract_strided_slice %6 {offsets = [0, 0], sizes = [8, 3], strides = [1, 1]} : vector<8x96xf32> to vector<8x3xf32>
    %cst_11 = arith.constant dense<0.000000e+00> : vector<8x128xf32>
    %13 = tpu.matmul %12, %7, %cst_11 {dimension_numbers = #tpu.dot_dimension_numbers<[1], [0], [0], [1], [0, 0, 1, 1], [], []>} : vector<8x3xf32>, vector<3x128xf32>, vector<8x128xf32> -> vector<8x128xf32>
    %cst_12 = arith.constant dense<0.000000e+00> : vector<8x128xf32>
    %14 = tpu.matmul %10, %8, %cst_12 {dimension_numbers = #tpu.dot_dimension_numbers<[1], [0], [0], [1], [0, 0, 1, 1], [], []>} : vector<8x32xf32>, vector<32x128xf32>, vector<8x128xf32> -> vector<8x128xf32>
    %15 = arith.addf %13, %14 : vector<8x128xf32>
    %16 = vector.broadcast %9 : vector<1x128xf32> to vector<8x128xf32>
    %17 = arith.addf %15, %16 : vector<8x128xf32>
    %18 = math.tanh %17 : vector<8x128xf32>
    %cst_13 = arith.constant 5.000000e-01 : f32
    %19 = vector.broadcast %cst_13 : f32 to vector<8x128xf32>
    %20 = arith.mulf %19, %18 : vector<8x128xf32>
    %cst_14 = arith.constant 5.000000e-01 : f32
    %21 = vector.broadcast %cst_14 : f32 to vector<8x128xf32>
    %22 = arith.addf %20, %21 : vector<8x128xf32>
    %23 = vector.extract_strided_slice %22 {offsets = [0, 0], sizes = [8, 32], strides = [1, 1]} : vector<8x128xf32> to vector<8x32xf32>
    %24 = vector.extract_strided_slice %22 {offsets = [0, 32], sizes = [8, 32], strides = [1, 1]} : vector<8x128xf32> to vector<8x32xf32>
    %25 = vector.extract_strided_slice %18 {offsets = [0, 64], sizes = [8, 32], strides = [1, 1]} : vector<8x128xf32> to vector<8x32xf32>
    %26 = vector.extract_strided_slice %22 {offsets = [0, 96], sizes = [8, 32], strides = [1, 1]} : vector<8x128xf32> to vector<8x32xf32>
    %27 = arith.mulf %24, %11 : vector<8x32xf32>
    %28 = arith.mulf %23, %25 : vector<8x32xf32>
    %29 = arith.addf %27, %28 : vector<8x32xf32>
    %30 = math.tanh %29 : vector<8x32xf32>
    %31 = arith.mulf %26, %30 : vector<8x32xf32>
    %32 = vector.extract_strided_slice %6 {offsets = [0, 3], sizes = [8, 3], strides = [1, 1]} : vector<8x96xf32> to vector<8x3xf32>
    %cst_15 = arith.constant dense<0.000000e+00> : vector<8x128xf32>
    %33 = tpu.matmul %32, %7, %cst_15 {dimension_numbers = #tpu.dot_dimension_numbers<[1], [0], [0], [1], [0, 0, 1, 1], [], []>} : vector<8x3xf32>, vector<3x128xf32>, vector<8x128xf32> -> vector<8x128xf32>
    %cst_16 = arith.constant dense<0.000000e+00> : vector<8x128xf32>
    %34 = tpu.matmul %31, %8, %cst_16 {dimension_numbers = #tpu.dot_dimension_numbers<[1], [0], [0], [1], [0, 0, 1, 1], [], []>} : vector<8x32xf32>, vector<32x128xf32>, vector<8x128xf32> -> vector<8x128xf32>
    %35 = arith.addf %33, %34 : vector<8x128xf32>
    %36 = vector.broadcast %9 : vector<1x128xf32> to vector<8x128xf32>
    %37 = arith.addf %35, %36 : vector<8x128xf32>
    %38 = math.tanh %37 : vector<8x128xf32>
    %cst_17 = arith.constant 5.000000e-01 : f32
    %39 = vector.broadcast %cst_17 : f32 to vector<8x128xf32>
    %40 = arith.mulf %39, %38 : vector<8x128xf32>
    %cst_18 = arith.constant 5.000000e-01 : f32
    %41 = vector.broadcast %cst_18 : f32 to vector<8x128xf32>
    %42 = arith.addf %40, %41 : vector<8x128xf32>
    %43 = vector.extract_strided_slice %42 {offsets = [0, 0], sizes = [8, 32], strides = [1, 1]} : vector<8x128xf32> to vector<8x32xf32>
    %44 = vector.extract_strided_slice %42 {offsets = [0, 32], sizes = [8, 32], strides = [1, 1]} : vector<8x128xf32> to vector<8x32xf32>
    %45 = vector.extract_strided_slice %38 {offsets = [0, 64], sizes = [8, 32], strides = [1, 1]} : vector<8x128xf32> to vector<8x32xf32>
    %46 = vector.extract_strided_slice %42 {offsets = [0, 96], sizes = [8, 32], strides = [1, 1]} : vector<8x128xf32> to vector<8x32xf32>
    %47 = arith.mulf %44, %29 : vector<8x32xf32>
    %48 = arith.mulf %43, %45 : vector<8x32xf32>
    %49 = arith.addf %47, %48 : vector<8x32xf32>
    %50 = math.tanh %49 : vector<8x32xf32>
    %51 = arith.mulf %46, %50 : vector<8x32xf32>
    %52 = vector.extract_strided_slice %6 {offsets = [0, 6], sizes = [8, 3], strides = [1, 1]} : vector<8x96xf32> to vector<8x3xf32>
    %cst_19 = arith.constant dense<0.000000e+00> : vector<8x128xf32>
    %53 = tpu.matmul %52, %7, %cst_19 {dimension_numbers = #tpu.dot_dimension_numbers<[1], [0], [0], [1], [0, 0, 1, 1], [], []>} : vector<8x3xf32>, vector<3x128xf32>, vector<8x128xf32> -> vector<8x128xf32>
    %cst_20 = arith.constant dense<0.000000e+00> : vector<8x128xf32>
    %54 = tpu.matmul %51, %8, %cst_20 {dimension_numbers = #tpu.dot_dimension_numbers<[1], [0], [0], [1], [0, 0, 1, 1], [], []>} : vector<8x32xf32>, vector<32x128xf32>, vector<8x128xf32> -> vector<8x128xf32>
    %55 = arith.addf %53, %54 : vector<8x128xf32>
    %56 = vector.broadcast %9 : vector<1x128xf32> to vector<8x128xf32>
    %57 = arith.addf %55, %56 : vector<8x128xf32>
    %58 = math.tanh %57 : vector<8x128xf32>
    %cst_21 = arith.constant 5.000000e-01 : f32
    %59 = vector.broadcast %cst_21 : f32 to vector<8x128xf32>
    %60 = arith.mulf %59, %58 : vector<8x128xf32>
    %cst_22 = arith.constant 5.000000e-01 : f32
    %61 = vector.broadcast %cst_22 : f32 to vector<8x128xf32>
    %62 = arith.addf %60, %61 : vector<8x128xf32>
    %63 = vector.extract_strided_slice %62 {offsets = [0, 0], sizes = [8, 32], strides = [1, 1]} : vector<8x128xf32> to vector<8x32xf32>
    %64 = vector.extract_strided_slice %62 {offsets = [0, 32], sizes = [8, 32], strides = [1, 1]} : vector<8x128xf32> to vector<8x32xf32>
    %65 = vector.extract_strided_slice %58 {offsets = [0, 64], sizes = [8, 32], strides = [1, 1]} : vector<8x128xf32> to vector<8x32xf32>
    %66 = vector.extract_strided_slice %62 {offsets = [0, 96], sizes = [8, 32], strides = [1, 1]} : vector<8x128xf32> to vector<8x32xf32>
    %67 = arith.mulf %64, %49 : vector<8x32xf32>
    %68 = arith.mulf %63, %65 : vector<8x32xf32>
    %69 = arith.addf %67, %68 : vector<8x32xf32>
    %70 = math.tanh %69 : vector<8x32xf32>
    %71 = arith.mulf %66, %70 : vector<8x32xf32>
    %72 = vector.extract_strided_slice %6 {offsets = [0, 9], sizes = [8, 3], strides = [1, 1]} : vector<8x96xf32> to vector<8x3xf32>
    %cst_23 = arith.constant dense<0.000000e+00> : vector<8x128xf32>
    %73 = tpu.matmul %72, %7, %cst_23 {dimension_numbers = #tpu.dot_dimension_numbers<[1], [0], [0], [1], [0, 0, 1, 1], [], []>} : vector<8x3xf32>, vector<3x128xf32>, vector<8x128xf32> -> vector<8x128xf32>
    %cst_24 = arith.constant dense<0.000000e+00> : vector<8x128xf32>
    %74 = tpu.matmul %71, %8, %cst_24 {dimension_numbers = #tpu.dot_dimension_numbers<[1], [0], [0], [1], [0, 0, 1, 1], [], []>} : vector<8x32xf32>, vector<32x128xf32>, vector<8x128xf32> -> vector<8x128xf32>
    %75 = arith.addf %73, %74 : vector<8x128xf32>
    %76 = vector.broadcast %9 : vector<1x128xf32> to vector<8x128xf32>
    %77 = arith.addf %75, %76 : vector<8x128xf32>
    %78 = math.tanh %77 : vector<8x128xf32>
    %cst_25 = arith.constant 5.000000e-01 : f32
    %79 = vector.broadcast %cst_25 : f32 to vector<8x128xf32>
    %80 = arith.mulf %79, %78 : vector<8x128xf32>
    %cst_26 = arith.constant 5.000000e-01 : f32
    %81 = vector.broadcast %cst_26 : f32 to vector<8x128xf32>
    %82 = arith.addf %80, %81 : vector<8x128xf32>
    %83 = vector.extract_strided_slice %82 {offsets = [0, 0], sizes = [8, 32], strides = [1, 1]} : vector<8x128xf32> to vector<8x32xf32>
    %84 = vector.extract_strided_slice %82 {offsets = [0, 32], sizes = [8, 32], strides = [1, 1]} : vector<8x128xf32> to vector<8x32xf32>
    %85 = vector.extract_strided_slice %78 {offsets = [0, 64], sizes = [8, 32], strides = [1, 1]} : vector<8x128xf32> to vector<8x32xf32>
    %86 = vector.extract_strided_slice %82 {offsets = [0, 96], sizes = [8, 32], strides = [1, 1]} : vector<8x128xf32> to vector<8x32xf32>
    %87 = arith.mulf %84, %69 : vector<8x32xf32>
    %88 = arith.mulf %83, %85 : vector<8x32xf32>
    %89 = arith.addf %87, %88 : vector<8x32xf32>
    %90 = math.tanh %89 : vector<8x32xf32>
    %91 = arith.mulf %86, %90 : vector<8x32xf32>
    %92 = vector.extract_strided_slice %6 {offsets = [0, 12], sizes = [8, 3], strides = [1, 1]} : vector<8x96xf32> to vector<8x3xf32>
    %cst_27 = arith.constant dense<0.000000e+00> : vector<8x128xf32>
    %93 = tpu.matmul %92, %7, %cst_27 {dimension_numbers = #tpu.dot_dimension_numbers<[1], [0], [0], [1], [0, 0, 1, 1], [], []>} : vector<8x3xf32>, vector<3x128xf32>, vector<8x128xf32> -> vector<8x128xf32>
    %cst_28 = arith.constant dense<0.000000e+00> : vector<8x128xf32>
    %94 = tpu.matmul %91, %8, %cst_28 {dimension_numbers = #tpu.dot_dimension_numbers<[1], [0], [0], [1], [0, 0, 1, 1], [], []>} : vector<8x32xf32>, vector<32x128xf32>, vector<8x128xf32> -> vector<8x128xf32>
    %95 = arith.addf %93, %94 : vector<8x128xf32>
    %96 = vector.broadcast %9 : vector<1x128xf32> to vector<8x128xf32>
    %97 = arith.addf %95, %96 : vector<8x128xf32>
    %98 = math.tanh %97 : vector<8x128xf32>
    %cst_29 = arith.constant 5.000000e-01 : f32
    %99 = vector.broadcast %cst_29 : f32 to vector<8x128xf32>
    %100 = arith.mulf %99, %98 : vector<8x128xf32>
    %cst_30 = arith.constant 5.000000e-01 : f32
    %101 = vector.broadcast %cst_30 : f32 to vector<8x128xf32>
    %102 = arith.addf %100, %101 : vector<8x128xf32>
    %103 = vector.extract_strided_slice %102 {offsets = [0, 0], sizes = [8, 32], strides = [1, 1]} : vector<8x128xf32> to vector<8x32xf32>
    %104 = vector.extract_strided_slice %102 {offsets = [0, 32], sizes = [8, 32], strides = [1, 1]} : vector<8x128xf32> to vector<8x32xf32>
    %105 = vector.extract_strided_slice %98 {offsets = [0, 64], sizes = [8, 32], strides = [1, 1]} : vector<8x128xf32> to vector<8x32xf32>
    %106 = vector.extract_strided_slice %102 {offsets = [0, 96], sizes = [8, 32], strides = [1, 1]} : vector<8x128xf32> to vector<8x32xf32>
    %107 = arith.mulf %104, %89 : vector<8x32xf32>
    %108 = arith.mulf %103, %105 : vector<8x32xf32>
    %109 = arith.addf %107, %108 : vector<8x32xf32>
    %110 = math.tanh %109 : vector<8x32xf32>
    %111 = arith.mulf %106, %110 : vector<8x32xf32>
    %112 = vector.extract_strided_slice %6 {offsets = [0, 15], sizes = [8, 3], strides = [1, 1]} : vector<8x96xf32> to vector<8x3xf32>
    %cst_31 = arith.constant dense<0.000000e+00> : vector<8x128xf32>
    %113 = tpu.matmul %112, %7, %cst_31 {dimension_numbers = #tpu.dot_dimension_numbers<[1], [0], [0], [1], [0, 0, 1, 1], [], []>} : vector<8x3xf32>, vector<3x128xf32>, vector<8x128xf32> -> vector<8x128xf32>
    %cst_32 = arith.constant dense<0.000000e+00> : vector<8x128xf32>
    %114 = tpu.matmul %111, %8, %cst_32 {dimension_numbers = #tpu.dot_dimension_numbers<[1], [0], [0], [1], [0, 0, 1, 1], [], []>} : vector<8x32xf32>, vector<32x128xf32>, vector<8x128xf32> -> vector<8x128xf32>
    %115 = arith.addf %113, %114 : vector<8x128xf32>
    %116 = vector.broadcast %9 : vector<1x128xf32> to vector<8x128xf32>
    %117 = arith.addf %115, %116 : vector<8x128xf32>
    %118 = math.tanh %117 : vector<8x128xf32>
    %cst_33 = arith.constant 5.000000e-01 : f32
    %119 = vector.broadcast %cst_33 : f32 to vector<8x128xf32>
    %120 = arith.mulf %119, %118 : vector<8x128xf32>
    %cst_34 = arith.constant 5.000000e-01 : f32
    %121 = vector.broadcast %cst_34 : f32 to vector<8x128xf32>
    %122 = arith.addf %120, %121 : vector<8x128xf32>
    %123 = vector.extract_strided_slice %122 {offsets = [0, 0], sizes = [8, 32], strides = [1, 1]} : vector<8x128xf32> to vector<8x32xf32>
    %124 = vector.extract_strided_slice %122 {offsets = [0, 32], sizes = [8, 32], strides = [1, 1]} : vector<8x128xf32> to vector<8x32xf32>
    %125 = vector.extract_strided_slice %118 {offsets = [0, 64], sizes = [8, 32], strides = [1, 1]} : vector<8x128xf32> to vector<8x32xf32>
    %126 = vector.extract_strided_slice %122 {offsets = [0, 96], sizes = [8, 32], strides = [1, 1]} : vector<8x128xf32> to vector<8x32xf32>
    %127 = arith.mulf %124, %109 : vector<8x32xf32>
    %128 = arith.mulf %123, %125 : vector<8x32xf32>
    %129 = arith.addf %127, %128 : vector<8x32xf32>
    %130 = math.tanh %129 : vector<8x32xf32>
    %131 = arith.mulf %126, %130 : vector<8x32xf32>
    %132 = vector.extract_strided_slice %6 {offsets = [0, 18], sizes = [8, 3], strides = [1, 1]} : vector<8x96xf32> to vector<8x3xf32>
    %cst_35 = arith.constant dense<0.000000e+00> : vector<8x128xf32>
    %133 = tpu.matmul %132, %7, %cst_35 {dimension_numbers = #tpu.dot_dimension_numbers<[1], [0], [0], [1], [0, 0, 1, 1], [], []>} : vector<8x3xf32>, vector<3x128xf32>, vector<8x128xf32> -> vector<8x128xf32>
    %cst_36 = arith.constant dense<0.000000e+00> : vector<8x128xf32>
    %134 = tpu.matmul %131, %8, %cst_36 {dimension_numbers = #tpu.dot_dimension_numbers<[1], [0], [0], [1], [0, 0, 1, 1], [], []>} : vector<8x32xf32>, vector<32x128xf32>, vector<8x128xf32> -> vector<8x128xf32>
    %135 = arith.addf %133, %134 : vector<8x128xf32>
    %136 = vector.broadcast %9 : vector<1x128xf32> to vector<8x128xf32>
    %137 = arith.addf %135, %136 : vector<8x128xf32>
    %138 = math.tanh %137 : vector<8x128xf32>
    %cst_37 = arith.constant 5.000000e-01 : f32
    %139 = vector.broadcast %cst_37 : f32 to vector<8x128xf32>
    %140 = arith.mulf %139, %138 : vector<8x128xf32>
    %cst_38 = arith.constant 5.000000e-01 : f32
    %141 = vector.broadcast %cst_38 : f32 to vector<8x128xf32>
    %142 = arith.addf %140, %141 : vector<8x128xf32>
    %143 = vector.extract_strided_slice %142 {offsets = [0, 0], sizes = [8, 32], strides = [1, 1]} : vector<8x128xf32> to vector<8x32xf32>
    %144 = vector.extract_strided_slice %142 {offsets = [0, 32], sizes = [8, 32], strides = [1, 1]} : vector<8x128xf32> to vector<8x32xf32>
    %145 = vector.extract_strided_slice %138 {offsets = [0, 64], sizes = [8, 32], strides = [1, 1]} : vector<8x128xf32> to vector<8x32xf32>
    %146 = vector.extract_strided_slice %142 {offsets = [0, 96], sizes = [8, 32], strides = [1, 1]} : vector<8x128xf32> to vector<8x32xf32>
    %147 = arith.mulf %144, %129 : vector<8x32xf32>
    %148 = arith.mulf %143, %145 : vector<8x32xf32>
    %149 = arith.addf %147, %148 : vector<8x32xf32>
    %150 = math.tanh %149 : vector<8x32xf32>
    %151 = arith.mulf %146, %150 : vector<8x32xf32>
    %152 = vector.extract_strided_slice %6 {offsets = [0, 21], sizes = [8, 3], strides = [1, 1]} : vector<8x96xf32> to vector<8x3xf32>
    %cst_39 = arith.constant dense<0.000000e+00> : vector<8x128xf32>
    %153 = tpu.matmul %152, %7, %cst_39 {dimension_numbers = #tpu.dot_dimension_numbers<[1], [0], [0], [1], [0, 0, 1, 1], [], []>} : vector<8x3xf32>, vector<3x128xf32>, vector<8x128xf32> -> vector<8x128xf32>
    %cst_40 = arith.constant dense<0.000000e+00> : vector<8x128xf32>
    %154 = tpu.matmul %151, %8, %cst_40 {dimension_numbers = #tpu.dot_dimension_numbers<[1], [0], [0], [1], [0, 0, 1, 1], [], []>} : vector<8x32xf32>, vector<32x128xf32>, vector<8x128xf32> -> vector<8x128xf32>
    %155 = arith.addf %153, %154 : vector<8x128xf32>
    %156 = vector.broadcast %9 : vector<1x128xf32> to vector<8x128xf32>
    %157 = arith.addf %155, %156 : vector<8x128xf32>
    %158 = math.tanh %157 : vector<8x128xf32>
    %cst_41 = arith.constant 5.000000e-01 : f32
    %159 = vector.broadcast %cst_41 : f32 to vector<8x128xf32>
    %160 = arith.mulf %159, %158 : vector<8x128xf32>
    %cst_42 = arith.constant 5.000000e-01 : f32
    %161 = vector.broadcast %cst_42 : f32 to vector<8x128xf32>
    %162 = arith.addf %160, %161 : vector<8x128xf32>
    %163 = vector.extract_strided_slice %162 {offsets = [0, 0], sizes = [8, 32], strides = [1, 1]} : vector<8x128xf32> to vector<8x32xf32>
    %164 = vector.extract_strided_slice %162 {offsets = [0, 32], sizes = [8, 32], strides = [1, 1]} : vector<8x128xf32> to vector<8x32xf32>
    %165 = vector.extract_strided_slice %158 {offsets = [0, 64], sizes = [8, 32], strides = [1, 1]} : vector<8x128xf32> to vector<8x32xf32>
    %166 = vector.extract_strided_slice %162 {offsets = [0, 96], sizes = [8, 32], strides = [1, 1]} : vector<8x128xf32> to vector<8x32xf32>
    %167 = arith.mulf %164, %149 : vector<8x32xf32>
    %168 = arith.mulf %163, %165 : vector<8x32xf32>
    %169 = arith.addf %167, %168 : vector<8x32xf32>
    %170 = math.tanh %169 : vector<8x32xf32>
    %171 = arith.mulf %166, %170 : vector<8x32xf32>
    %172 = vector.extract_strided_slice %6 {offsets = [0, 24], sizes = [8, 3], strides = [1, 1]} : vector<8x96xf32> to vector<8x3xf32>
    %cst_43 = arith.constant dense<0.000000e+00> : vector<8x128xf32>
    %173 = tpu.matmul %172, %7, %cst_43 {dimension_numbers = #tpu.dot_dimension_numbers<[1], [0], [0], [1], [0, 0, 1, 1], [], []>} : vector<8x3xf32>, vector<3x128xf32>, vector<8x128xf32> -> vector<8x128xf32>
    %cst_44 = arith.constant dense<0.000000e+00> : vector<8x128xf32>
    %174 = tpu.matmul %171, %8, %cst_44 {dimension_numbers = #tpu.dot_dimension_numbers<[1], [0], [0], [1], [0, 0, 1, 1], [], []>} : vector<8x32xf32>, vector<32x128xf32>, vector<8x128xf32> -> vector<8x128xf32>
    %175 = arith.addf %173, %174 : vector<8x128xf32>
    %176 = vector.broadcast %9 : vector<1x128xf32> to vector<8x128xf32>
    %177 = arith.addf %175, %176 : vector<8x128xf32>
    %178 = math.tanh %177 : vector<8x128xf32>
    %cst_45 = arith.constant 5.000000e-01 : f32
    %179 = vector.broadcast %cst_45 : f32 to vector<8x128xf32>
    %180 = arith.mulf %179, %178 : vector<8x128xf32>
    %cst_46 = arith.constant 5.000000e-01 : f32
    %181 = vector.broadcast %cst_46 : f32 to vector<8x128xf32>
    %182 = arith.addf %180, %181 : vector<8x128xf32>
    %183 = vector.extract_strided_slice %182 {offsets = [0, 0], sizes = [8, 32], strides = [1, 1]} : vector<8x128xf32> to vector<8x32xf32>
    %184 = vector.extract_strided_slice %182 {offsets = [0, 32], sizes = [8, 32], strides = [1, 1]} : vector<8x128xf32> to vector<8x32xf32>
    %185 = vector.extract_strided_slice %178 {offsets = [0, 64], sizes = [8, 32], strides = [1, 1]} : vector<8x128xf32> to vector<8x32xf32>
    %186 = vector.extract_strided_slice %182 {offsets = [0, 96], sizes = [8, 32], strides = [1, 1]} : vector<8x128xf32> to vector<8x32xf32>
    %187 = arith.mulf %184, %169 : vector<8x32xf32>
    %188 = arith.mulf %183, %185 : vector<8x32xf32>
    %189 = arith.addf %187, %188 : vector<8x32xf32>
    %190 = math.tanh %189 : vector<8x32xf32>
    %191 = arith.mulf %186, %190 : vector<8x32xf32>
    %192 = vector.extract_strided_slice %6 {offsets = [0, 27], sizes = [8, 3], strides = [1, 1]} : vector<8x96xf32> to vector<8x3xf32>
    %cst_47 = arith.constant dense<0.000000e+00> : vector<8x128xf32>
    %193 = tpu.matmul %192, %7, %cst_47 {dimension_numbers = #tpu.dot_dimension_numbers<[1], [0], [0], [1], [0, 0, 1, 1], [], []>} : vector<8x3xf32>, vector<3x128xf32>, vector<8x128xf32> -> vector<8x128xf32>
    %cst_48 = arith.constant dense<0.000000e+00> : vector<8x128xf32>
    %194 = tpu.matmul %191, %8, %cst_48 {dimension_numbers = #tpu.dot_dimension_numbers<[1], [0], [0], [1], [0, 0, 1, 1], [], []>} : vector<8x32xf32>, vector<32x128xf32>, vector<8x128xf32> -> vector<8x128xf32>
    %195 = arith.addf %193, %194 : vector<8x128xf32>
    %196 = vector.broadcast %9 : vector<1x128xf32> to vector<8x128xf32>
    %197 = arith.addf %195, %196 : vector<8x128xf32>
    %198 = math.tanh %197 : vector<8x128xf32>
    %cst_49 = arith.constant 5.000000e-01 : f32
    %199 = vector.broadcast %cst_49 : f32 to vector<8x128xf32>
    %200 = arith.mulf %199, %198 : vector<8x128xf32>
    %cst_50 = arith.constant 5.000000e-01 : f32
    %201 = vector.broadcast %cst_50 : f32 to vector<8x128xf32>
    %202 = arith.addf %200, %201 : vector<8x128xf32>
    %203 = vector.extract_strided_slice %202 {offsets = [0, 0], sizes = [8, 32], strides = [1, 1]} : vector<8x128xf32> to vector<8x32xf32>
    %204 = vector.extract_strided_slice %202 {offsets = [0, 32], sizes = [8, 32], strides = [1, 1]} : vector<8x128xf32> to vector<8x32xf32>
    %205 = vector.extract_strided_slice %198 {offsets = [0, 64], sizes = [8, 32], strides = [1, 1]} : vector<8x128xf32> to vector<8x32xf32>
    %206 = vector.extract_strided_slice %202 {offsets = [0, 96], sizes = [8, 32], strides = [1, 1]} : vector<8x128xf32> to vector<8x32xf32>
    %207 = arith.mulf %204, %189 : vector<8x32xf32>
    %208 = arith.mulf %203, %205 : vector<8x32xf32>
    %209 = arith.addf %207, %208 : vector<8x32xf32>
    %210 = math.tanh %209 : vector<8x32xf32>
    %211 = arith.mulf %206, %210 : vector<8x32xf32>
    %212 = vector.extract_strided_slice %6 {offsets = [0, 30], sizes = [8, 3], strides = [1, 1]} : vector<8x96xf32> to vector<8x3xf32>
    %cst_51 = arith.constant dense<0.000000e+00> : vector<8x128xf32>
    %213 = tpu.matmul %212, %7, %cst_51 {dimension_numbers = #tpu.dot_dimension_numbers<[1], [0], [0], [1], [0, 0, 1, 1], [], []>} : vector<8x3xf32>, vector<3x128xf32>, vector<8x128xf32> -> vector<8x128xf32>
    %cst_52 = arith.constant dense<0.000000e+00> : vector<8x128xf32>
    %214 = tpu.matmul %211, %8, %cst_52 {dimension_numbers = #tpu.dot_dimension_numbers<[1], [0], [0], [1], [0, 0, 1, 1], [], []>} : vector<8x32xf32>, vector<32x128xf32>, vector<8x128xf32> -> vector<8x128xf32>
    %215 = arith.addf %213, %214 : vector<8x128xf32>
    %216 = vector.broadcast %9 : vector<1x128xf32> to vector<8x128xf32>
    %217 = arith.addf %215, %216 : vector<8x128xf32>
    %218 = math.tanh %217 : vector<8x128xf32>
    %cst_53 = arith.constant 5.000000e-01 : f32
    %219 = vector.broadcast %cst_53 : f32 to vector<8x128xf32>
    %220 = arith.mulf %219, %218 : vector<8x128xf32>
    %cst_54 = arith.constant 5.000000e-01 : f32
    %221 = vector.broadcast %cst_54 : f32 to vector<8x128xf32>
    %222 = arith.addf %220, %221 : vector<8x128xf32>
    %223 = vector.extract_strided_slice %222 {offsets = [0, 0], sizes = [8, 32], strides = [1, 1]} : vector<8x128xf32> to vector<8x32xf32>
    %224 = vector.extract_strided_slice %222 {offsets = [0, 32], sizes = [8, 32], strides = [1, 1]} : vector<8x128xf32> to vector<8x32xf32>
    %225 = vector.extract_strided_slice %218 {offsets = [0, 64], sizes = [8, 32], strides = [1, 1]} : vector<8x128xf32> to vector<8x32xf32>
    %226 = vector.extract_strided_slice %222 {offsets = [0, 96], sizes = [8, 32], strides = [1, 1]} : vector<8x128xf32> to vector<8x32xf32>
    %227 = arith.mulf %224, %209 : vector<8x32xf32>
    %228 = arith.mulf %223, %225 : vector<8x32xf32>
    %229 = arith.addf %227, %228 : vector<8x32xf32>
    %230 = math.tanh %229 : vector<8x32xf32>
    %231 = arith.mulf %226, %230 : vector<8x32xf32>
    %232 = vector.extract_strided_slice %6 {offsets = [0, 33], sizes = [8, 3], strides = [1, 1]} : vector<8x96xf32> to vector<8x3xf32>
    %cst_55 = arith.constant dense<0.000000e+00> : vector<8x128xf32>
    %233 = tpu.matmul %232, %7, %cst_55 {dimension_numbers = #tpu.dot_dimension_numbers<[1], [0], [0], [1], [0, 0, 1, 1], [], []>} : vector<8x3xf32>, vector<3x128xf32>, vector<8x128xf32> -> vector<8x128xf32>
    %cst_56 = arith.constant dense<0.000000e+00> : vector<8x128xf32>
    %234 = tpu.matmul %231, %8, %cst_56 {dimension_numbers = #tpu.dot_dimension_numbers<[1], [0], [0], [1], [0, 0, 1, 1], [], []>} : vector<8x32xf32>, vector<32x128xf32>, vector<8x128xf32> -> vector<8x128xf32>
    %235 = arith.addf %233, %234 : vector<8x128xf32>
    %236 = vector.broadcast %9 : vector<1x128xf32> to vector<8x128xf32>
    %237 = arith.addf %235, %236 : vector<8x128xf32>
    %238 = math.tanh %237 : vector<8x128xf32>
    %cst_57 = arith.constant 5.000000e-01 : f32
    %239 = vector.broadcast %cst_57 : f32 to vector<8x128xf32>
    %240 = arith.mulf %239, %238 : vector<8x128xf32>
    %cst_58 = arith.constant 5.000000e-01 : f32
    %241 = vector.broadcast %cst_58 : f32 to vector<8x128xf32>
    %242 = arith.addf %240, %241 : vector<8x128xf32>
    %243 = vector.extract_strided_slice %242 {offsets = [0, 0], sizes = [8, 32], strides = [1, 1]} : vector<8x128xf32> to vector<8x32xf32>
    %244 = vector.extract_strided_slice %242 {offsets = [0, 32], sizes = [8, 32], strides = [1, 1]} : vector<8x128xf32> to vector<8x32xf32>
    %245 = vector.extract_strided_slice %238 {offsets = [0, 64], sizes = [8, 32], strides = [1, 1]} : vector<8x128xf32> to vector<8x32xf32>
    %246 = vector.extract_strided_slice %242 {offsets = [0, 96], sizes = [8, 32], strides = [1, 1]} : vector<8x128xf32> to vector<8x32xf32>
    %247 = arith.mulf %244, %229 : vector<8x32xf32>
    %248 = arith.mulf %243, %245 : vector<8x32xf32>
    %249 = arith.addf %247, %248 : vector<8x32xf32>
    %250 = math.tanh %249 : vector<8x32xf32>
    %251 = arith.mulf %246, %250 : vector<8x32xf32>
    %252 = vector.extract_strided_slice %6 {offsets = [0, 36], sizes = [8, 3], strides = [1, 1]} : vector<8x96xf32> to vector<8x3xf32>
    %cst_59 = arith.constant dense<0.000000e+00> : vector<8x128xf32>
    %253 = tpu.matmul %252, %7, %cst_59 {dimension_numbers = #tpu.dot_dimension_numbers<[1], [0], [0], [1], [0, 0, 1, 1], [], []>} : vector<8x3xf32>, vector<3x128xf32>, vector<8x128xf32> -> vector<8x128xf32>
    %cst_60 = arith.constant dense<0.000000e+00> : vector<8x128xf32>
    %254 = tpu.matmul %251, %8, %cst_60 {dimension_numbers = #tpu.dot_dimension_numbers<[1], [0], [0], [1], [0, 0, 1, 1], [], []>} : vector<8x32xf32>, vector<32x128xf32>, vector<8x128xf32> -> vector<8x128xf32>
    %255 = arith.addf %253, %254 : vector<8x128xf32>
    %256 = vector.broadcast %9 : vector<1x128xf32> to vector<8x128xf32>
    %257 = arith.addf %255, %256 : vector<8x128xf32>
    %258 = math.tanh %257 : vector<8x128xf32>
    %cst_61 = arith.constant 5.000000e-01 : f32
    %259 = vector.broadcast %cst_61 : f32 to vector<8x128xf32>
    %260 = arith.mulf %259, %258 : vector<8x128xf32>
    %cst_62 = arith.constant 5.000000e-01 : f32
    %261 = vector.broadcast %cst_62 : f32 to vector<8x128xf32>
    %262 = arith.addf %260, %261 : vector<8x128xf32>
    %263 = vector.extract_strided_slice %262 {offsets = [0, 0], sizes = [8, 32], strides = [1, 1]} : vector<8x128xf32> to vector<8x32xf32>
    %264 = vector.extract_strided_slice %262 {offsets = [0, 32], sizes = [8, 32], strides = [1, 1]} : vector<8x128xf32> to vector<8x32xf32>
    %265 = vector.extract_strided_slice %258 {offsets = [0, 64], sizes = [8, 32], strides = [1, 1]} : vector<8x128xf32> to vector<8x32xf32>
    %266 = vector.extract_strided_slice %262 {offsets = [0, 96], sizes = [8, 32], strides = [1, 1]} : vector<8x128xf32> to vector<8x32xf32>
    %267 = arith.mulf %264, %249 : vector<8x32xf32>
    %268 = arith.mulf %263, %265 : vector<8x32xf32>
    %269 = arith.addf %267, %268 : vector<8x32xf32>
    %270 = math.tanh %269 : vector<8x32xf32>
    %271 = arith.mulf %266, %270 : vector<8x32xf32>
    %272 = vector.extract_strided_slice %6 {offsets = [0, 39], sizes = [8, 3], strides = [1, 1]} : vector<8x96xf32> to vector<8x3xf32>
    %cst_63 = arith.constant dense<0.000000e+00> : vector<8x128xf32>
    %273 = tpu.matmul %272, %7, %cst_63 {dimension_numbers = #tpu.dot_dimension_numbers<[1], [0], [0], [1], [0, 0, 1, 1], [], []>} : vector<8x3xf32>, vector<3x128xf32>, vector<8x128xf32> -> vector<8x128xf32>
    %cst_64 = arith.constant dense<0.000000e+00> : vector<8x128xf32>
    %274 = tpu.matmul %271, %8, %cst_64 {dimension_numbers = #tpu.dot_dimension_numbers<[1], [0], [0], [1], [0, 0, 1, 1], [], []>} : vector<8x32xf32>, vector<32x128xf32>, vector<8x128xf32> -> vector<8x128xf32>
    %275 = arith.addf %273, %274 : vector<8x128xf32>
    %276 = vector.broadcast %9 : vector<1x128xf32> to vector<8x128xf32>
    %277 = arith.addf %275, %276 : vector<8x128xf32>
    %278 = math.tanh %277 : vector<8x128xf32>
    %cst_65 = arith.constant 5.000000e-01 : f32
    %279 = vector.broadcast %cst_65 : f32 to vector<8x128xf32>
    %280 = arith.mulf %279, %278 : vector<8x128xf32>
    %cst_66 = arith.constant 5.000000e-01 : f32
    %281 = vector.broadcast %cst_66 : f32 to vector<8x128xf32>
    %282 = arith.addf %280, %281 : vector<8x128xf32>
    %283 = vector.extract_strided_slice %282 {offsets = [0, 0], sizes = [8, 32], strides = [1, 1]} : vector<8x128xf32> to vector<8x32xf32>
    %284 = vector.extract_strided_slice %282 {offsets = [0, 32], sizes = [8, 32], strides = [1, 1]} : vector<8x128xf32> to vector<8x32xf32>
    %285 = vector.extract_strided_slice %278 {offsets = [0, 64], sizes = [8, 32], strides = [1, 1]} : vector<8x128xf32> to vector<8x32xf32>
    %286 = vector.extract_strided_slice %282 {offsets = [0, 96], sizes = [8, 32], strides = [1, 1]} : vector<8x128xf32> to vector<8x32xf32>
    %287 = arith.mulf %284, %269 : vector<8x32xf32>
    %288 = arith.mulf %283, %285 : vector<8x32xf32>
    %289 = arith.addf %287, %288 : vector<8x32xf32>
    %290 = math.tanh %289 : vector<8x32xf32>
    %291 = arith.mulf %286, %290 : vector<8x32xf32>
    %292 = vector.extract_strided_slice %6 {offsets = [0, 42], sizes = [8, 3], strides = [1, 1]} : vector<8x96xf32> to vector<8x3xf32>
    %cst_67 = arith.constant dense<0.000000e+00> : vector<8x128xf32>
    %293 = tpu.matmul %292, %7, %cst_67 {dimension_numbers = #tpu.dot_dimension_numbers<[1], [0], [0], [1], [0, 0, 1, 1], [], []>} : vector<8x3xf32>, vector<3x128xf32>, vector<8x128xf32> -> vector<8x128xf32>
    %cst_68 = arith.constant dense<0.000000e+00> : vector<8x128xf32>
    %294 = tpu.matmul %291, %8, %cst_68 {dimension_numbers = #tpu.dot_dimension_numbers<[1], [0], [0], [1], [0, 0, 1, 1], [], []>} : vector<8x32xf32>, vector<32x128xf32>, vector<8x128xf32> -> vector<8x128xf32>
    %295 = arith.addf %293, %294 : vector<8x128xf32>
    %296 = vector.broadcast %9 : vector<1x128xf32> to vector<8x128xf32>
    %297 = arith.addf %295, %296 : vector<8x128xf32>
    %298 = math.tanh %297 : vector<8x128xf32>
    %cst_69 = arith.constant 5.000000e-01 : f32
    %299 = vector.broadcast %cst_69 : f32 to vector<8x128xf32>
    %300 = arith.mulf %299, %298 : vector<8x128xf32>
    %cst_70 = arith.constant 5.000000e-01 : f32
    %301 = vector.broadcast %cst_70 : f32 to vector<8x128xf32>
    %302 = arith.addf %300, %301 : vector<8x128xf32>
    %303 = vector.extract_strided_slice %302 {offsets = [0, 0], sizes = [8, 32], strides = [1, 1]} : vector<8x128xf32> to vector<8x32xf32>
    %304 = vector.extract_strided_slice %302 {offsets = [0, 32], sizes = [8, 32], strides = [1, 1]} : vector<8x128xf32> to vector<8x32xf32>
    %305 = vector.extract_strided_slice %298 {offsets = [0, 64], sizes = [8, 32], strides = [1, 1]} : vector<8x128xf32> to vector<8x32xf32>
    %306 = vector.extract_strided_slice %302 {offsets = [0, 96], sizes = [8, 32], strides = [1, 1]} : vector<8x128xf32> to vector<8x32xf32>
    %307 = arith.mulf %304, %289 : vector<8x32xf32>
    %308 = arith.mulf %303, %305 : vector<8x32xf32>
    %309 = arith.addf %307, %308 : vector<8x32xf32>
    %310 = math.tanh %309 : vector<8x32xf32>
    %311 = arith.mulf %306, %310 : vector<8x32xf32>
    %312 = vector.extract_strided_slice %6 {offsets = [0, 45], sizes = [8, 3], strides = [1, 1]} : vector<8x96xf32> to vector<8x3xf32>
    %cst_71 = arith.constant dense<0.000000e+00> : vector<8x128xf32>
    %313 = tpu.matmul %312, %7, %cst_71 {dimension_numbers = #tpu.dot_dimension_numbers<[1], [0], [0], [1], [0, 0, 1, 1], [], []>} : vector<8x3xf32>, vector<3x128xf32>, vector<8x128xf32> -> vector<8x128xf32>
    %cst_72 = arith.constant dense<0.000000e+00> : vector<8x128xf32>
    %314 = tpu.matmul %311, %8, %cst_72 {dimension_numbers = #tpu.dot_dimension_numbers<[1], [0], [0], [1], [0, 0, 1, 1], [], []>} : vector<8x32xf32>, vector<32x128xf32>, vector<8x128xf32> -> vector<8x128xf32>
    %315 = arith.addf %313, %314 : vector<8x128xf32>
    %316 = vector.broadcast %9 : vector<1x128xf32> to vector<8x128xf32>
    %317 = arith.addf %315, %316 : vector<8x128xf32>
    %318 = math.tanh %317 : vector<8x128xf32>
    %cst_73 = arith.constant 5.000000e-01 : f32
    %319 = vector.broadcast %cst_73 : f32 to vector<8x128xf32>
    %320 = arith.mulf %319, %318 : vector<8x128xf32>
    %cst_74 = arith.constant 5.000000e-01 : f32
    %321 = vector.broadcast %cst_74 : f32 to vector<8x128xf32>
    %322 = arith.addf %320, %321 : vector<8x128xf32>
    %323 = vector.extract_strided_slice %322 {offsets = [0, 0], sizes = [8, 32], strides = [1, 1]} : vector<8x128xf32> to vector<8x32xf32>
    %324 = vector.extract_strided_slice %322 {offsets = [0, 32], sizes = [8, 32], strides = [1, 1]} : vector<8x128xf32> to vector<8x32xf32>
    %325 = vector.extract_strided_slice %318 {offsets = [0, 64], sizes = [8, 32], strides = [1, 1]} : vector<8x128xf32> to vector<8x32xf32>
    %326 = vector.extract_strided_slice %322 {offsets = [0, 96], sizes = [8, 32], strides = [1, 1]} : vector<8x128xf32> to vector<8x32xf32>
    %327 = arith.mulf %324, %309 : vector<8x32xf32>
    %328 = arith.mulf %323, %325 : vector<8x32xf32>
    %329 = arith.addf %327, %328 : vector<8x32xf32>
    %330 = math.tanh %329 : vector<8x32xf32>
    %331 = arith.mulf %326, %330 : vector<8x32xf32>
    %332 = vector.extract_strided_slice %6 {offsets = [0, 48], sizes = [8, 3], strides = [1, 1]} : vector<8x96xf32> to vector<8x3xf32>
    %cst_75 = arith.constant dense<0.000000e+00> : vector<8x128xf32>
    %333 = tpu.matmul %332, %7, %cst_75 {dimension_numbers = #tpu.dot_dimension_numbers<[1], [0], [0], [1], [0, 0, 1, 1], [], []>} : vector<8x3xf32>, vector<3x128xf32>, vector<8x128xf32> -> vector<8x128xf32>
    %cst_76 = arith.constant dense<0.000000e+00> : vector<8x128xf32>
    %334 = tpu.matmul %331, %8, %cst_76 {dimension_numbers = #tpu.dot_dimension_numbers<[1], [0], [0], [1], [0, 0, 1, 1], [], []>} : vector<8x32xf32>, vector<32x128xf32>, vector<8x128xf32> -> vector<8x128xf32>
    %335 = arith.addf %333, %334 : vector<8x128xf32>
    %336 = vector.broadcast %9 : vector<1x128xf32> to vector<8x128xf32>
    %337 = arith.addf %335, %336 : vector<8x128xf32>
    %338 = math.tanh %337 : vector<8x128xf32>
    %cst_77 = arith.constant 5.000000e-01 : f32
    %339 = vector.broadcast %cst_77 : f32 to vector<8x128xf32>
    %340 = arith.mulf %339, %338 : vector<8x128xf32>
    %cst_78 = arith.constant 5.000000e-01 : f32
    %341 = vector.broadcast %cst_78 : f32 to vector<8x128xf32>
    %342 = arith.addf %340, %341 : vector<8x128xf32>
    %343 = vector.extract_strided_slice %342 {offsets = [0, 0], sizes = [8, 32], strides = [1, 1]} : vector<8x128xf32> to vector<8x32xf32>
    %344 = vector.extract_strided_slice %342 {offsets = [0, 32], sizes = [8, 32], strides = [1, 1]} : vector<8x128xf32> to vector<8x32xf32>
    %345 = vector.extract_strided_slice %338 {offsets = [0, 64], sizes = [8, 32], strides = [1, 1]} : vector<8x128xf32> to vector<8x32xf32>
    %346 = vector.extract_strided_slice %342 {offsets = [0, 96], sizes = [8, 32], strides = [1, 1]} : vector<8x128xf32> to vector<8x32xf32>
    %347 = arith.mulf %344, %329 : vector<8x32xf32>
    %348 = arith.mulf %343, %345 : vector<8x32xf32>
    %349 = arith.addf %347, %348 : vector<8x32xf32>
    %350 = math.tanh %349 : vector<8x32xf32>
    %351 = arith.mulf %346, %350 : vector<8x32xf32>
    %352 = vector.extract_strided_slice %6 {offsets = [0, 51], sizes = [8, 3], strides = [1, 1]} : vector<8x96xf32> to vector<8x3xf32>
    %cst_79 = arith.constant dense<0.000000e+00> : vector<8x128xf32>
    %353 = tpu.matmul %352, %7, %cst_79 {dimension_numbers = #tpu.dot_dimension_numbers<[1], [0], [0], [1], [0, 0, 1, 1], [], []>} : vector<8x3xf32>, vector<3x128xf32>, vector<8x128xf32> -> vector<8x128xf32>
    %cst_80 = arith.constant dense<0.000000e+00> : vector<8x128xf32>
    %354 = tpu.matmul %351, %8, %cst_80 {dimension_numbers = #tpu.dot_dimension_numbers<[1], [0], [0], [1], [0, 0, 1, 1], [], []>} : vector<8x32xf32>, vector<32x128xf32>, vector<8x128xf32> -> vector<8x128xf32>
    %355 = arith.addf %353, %354 : vector<8x128xf32>
    %356 = vector.broadcast %9 : vector<1x128xf32> to vector<8x128xf32>
    %357 = arith.addf %355, %356 : vector<8x128xf32>
    %358 = math.tanh %357 : vector<8x128xf32>
    %cst_81 = arith.constant 5.000000e-01 : f32
    %359 = vector.broadcast %cst_81 : f32 to vector<8x128xf32>
    %360 = arith.mulf %359, %358 : vector<8x128xf32>
    %cst_82 = arith.constant 5.000000e-01 : f32
    %361 = vector.broadcast %cst_82 : f32 to vector<8x128xf32>
    %362 = arith.addf %360, %361 : vector<8x128xf32>
    %363 = vector.extract_strided_slice %362 {offsets = [0, 0], sizes = [8, 32], strides = [1, 1]} : vector<8x128xf32> to vector<8x32xf32>
    %364 = vector.extract_strided_slice %362 {offsets = [0, 32], sizes = [8, 32], strides = [1, 1]} : vector<8x128xf32> to vector<8x32xf32>
    %365 = vector.extract_strided_slice %358 {offsets = [0, 64], sizes = [8, 32], strides = [1, 1]} : vector<8x128xf32> to vector<8x32xf32>
    %366 = vector.extract_strided_slice %362 {offsets = [0, 96], sizes = [8, 32], strides = [1, 1]} : vector<8x128xf32> to vector<8x32xf32>
    %367 = arith.mulf %364, %349 : vector<8x32xf32>
    %368 = arith.mulf %363, %365 : vector<8x32xf32>
    %369 = arith.addf %367, %368 : vector<8x32xf32>
    %370 = math.tanh %369 : vector<8x32xf32>
    %371 = arith.mulf %366, %370 : vector<8x32xf32>
    %372 = vector.extract_strided_slice %6 {offsets = [0, 54], sizes = [8, 3], strides = [1, 1]} : vector<8x96xf32> to vector<8x3xf32>
    %cst_83 = arith.constant dense<0.000000e+00> : vector<8x128xf32>
    %373 = tpu.matmul %372, %7, %cst_83 {dimension_numbers = #tpu.dot_dimension_numbers<[1], [0], [0], [1], [0, 0, 1, 1], [], []>} : vector<8x3xf32>, vector<3x128xf32>, vector<8x128xf32> -> vector<8x128xf32>
    %cst_84 = arith.constant dense<0.000000e+00> : vector<8x128xf32>
    %374 = tpu.matmul %371, %8, %cst_84 {dimension_numbers = #tpu.dot_dimension_numbers<[1], [0], [0], [1], [0, 0, 1, 1], [], []>} : vector<8x32xf32>, vector<32x128xf32>, vector<8x128xf32> -> vector<8x128xf32>
    %375 = arith.addf %373, %374 : vector<8x128xf32>
    %376 = vector.broadcast %9 : vector<1x128xf32> to vector<8x128xf32>
    %377 = arith.addf %375, %376 : vector<8x128xf32>
    %378 = math.tanh %377 : vector<8x128xf32>
    %cst_85 = arith.constant 5.000000e-01 : f32
    %379 = vector.broadcast %cst_85 : f32 to vector<8x128xf32>
    %380 = arith.mulf %379, %378 : vector<8x128xf32>
    %cst_86 = arith.constant 5.000000e-01 : f32
    %381 = vector.broadcast %cst_86 : f32 to vector<8x128xf32>
    %382 = arith.addf %380, %381 : vector<8x128xf32>
    %383 = vector.extract_strided_slice %382 {offsets = [0, 0], sizes = [8, 32], strides = [1, 1]} : vector<8x128xf32> to vector<8x32xf32>
    %384 = vector.extract_strided_slice %382 {offsets = [0, 32], sizes = [8, 32], strides = [1, 1]} : vector<8x128xf32> to vector<8x32xf32>
    %385 = vector.extract_strided_slice %378 {offsets = [0, 64], sizes = [8, 32], strides = [1, 1]} : vector<8x128xf32> to vector<8x32xf32>
    %386 = vector.extract_strided_slice %382 {offsets = [0, 96], sizes = [8, 32], strides = [1, 1]} : vector<8x128xf32> to vector<8x32xf32>
    %387 = arith.mulf %384, %369 : vector<8x32xf32>
    %388 = arith.mulf %383, %385 : vector<8x32xf32>
    %389 = arith.addf %387, %388 : vector<8x32xf32>
    %390 = math.tanh %389 : vector<8x32xf32>
    %391 = arith.mulf %386, %390 : vector<8x32xf32>
    %392 = vector.extract_strided_slice %6 {offsets = [0, 57], sizes = [8, 3], strides = [1, 1]} : vector<8x96xf32> to vector<8x3xf32>
    %cst_87 = arith.constant dense<0.000000e+00> : vector<8x128xf32>
    %393 = tpu.matmul %392, %7, %cst_87 {dimension_numbers = #tpu.dot_dimension_numbers<[1], [0], [0], [1], [0, 0, 1, 1], [], []>} : vector<8x3xf32>, vector<3x128xf32>, vector<8x128xf32> -> vector<8x128xf32>
    %cst_88 = arith.constant dense<0.000000e+00> : vector<8x128xf32>
    %394 = tpu.matmul %391, %8, %cst_88 {dimension_numbers = #tpu.dot_dimension_numbers<[1], [0], [0], [1], [0, 0, 1, 1], [], []>} : vector<8x32xf32>, vector<32x128xf32>, vector<8x128xf32> -> vector<8x128xf32>
    %395 = arith.addf %393, %394 : vector<8x128xf32>
    %396 = vector.broadcast %9 : vector<1x128xf32> to vector<8x128xf32>
    %397 = arith.addf %395, %396 : vector<8x128xf32>
    %398 = math.tanh %397 : vector<8x128xf32>
    %cst_89 = arith.constant 5.000000e-01 : f32
    %399 = vector.broadcast %cst_89 : f32 to vector<8x128xf32>
    %400 = arith.mulf %399, %398 : vector<8x128xf32>
    %cst_90 = arith.constant 5.000000e-01 : f32
    %401 = vector.broadcast %cst_90 : f32 to vector<8x128xf32>
    %402 = arith.addf %400, %401 : vector<8x128xf32>
    %403 = vector.extract_strided_slice %402 {offsets = [0, 0], sizes = [8, 32], strides = [1, 1]} : vector<8x128xf32> to vector<8x32xf32>
    %404 = vector.extract_strided_slice %402 {offsets = [0, 32], sizes = [8, 32], strides = [1, 1]} : vector<8x128xf32> to vector<8x32xf32>
    %405 = vector.extract_strided_slice %398 {offsets = [0, 64], sizes = [8, 32], strides = [1, 1]} : vector<8x128xf32> to vector<8x32xf32>
    %406 = vector.extract_strided_slice %402 {offsets = [0, 96], sizes = [8, 32], strides = [1, 1]} : vector<8x128xf32> to vector<8x32xf32>
    %407 = arith.mulf %404, %389 : vector<8x32xf32>
    %408 = arith.mulf %403, %405 : vector<8x32xf32>
    %409 = arith.addf %407, %408 : vector<8x32xf32>
    %410 = math.tanh %409 : vector<8x32xf32>
    %411 = arith.mulf %406, %410 : vector<8x32xf32>
    %412 = vector.extract_strided_slice %6 {offsets = [0, 60], sizes = [8, 3], strides = [1, 1]} : vector<8x96xf32> to vector<8x3xf32>
    %cst_91 = arith.constant dense<0.000000e+00> : vector<8x128xf32>
    %413 = tpu.matmul %412, %7, %cst_91 {dimension_numbers = #tpu.dot_dimension_numbers<[1], [0], [0], [1], [0, 0, 1, 1], [], []>} : vector<8x3xf32>, vector<3x128xf32>, vector<8x128xf32> -> vector<8x128xf32>
    %cst_92 = arith.constant dense<0.000000e+00> : vector<8x128xf32>
    %414 = tpu.matmul %411, %8, %cst_92 {dimension_numbers = #tpu.dot_dimension_numbers<[1], [0], [0], [1], [0, 0, 1, 1], [], []>} : vector<8x32xf32>, vector<32x128xf32>, vector<8x128xf32> -> vector<8x128xf32>
    %415 = arith.addf %413, %414 : vector<8x128xf32>
    %416 = vector.broadcast %9 : vector<1x128xf32> to vector<8x128xf32>
    %417 = arith.addf %415, %416 : vector<8x128xf32>
    %418 = math.tanh %417 : vector<8x128xf32>
    %cst_93 = arith.constant 5.000000e-01 : f32
    %419 = vector.broadcast %cst_93 : f32 to vector<8x128xf32>
    %420 = arith.mulf %419, %418 : vector<8x128xf32>
    %cst_94 = arith.constant 5.000000e-01 : f32
    %421 = vector.broadcast %cst_94 : f32 to vector<8x128xf32>
    %422 = arith.addf %420, %421 : vector<8x128xf32>
    %423 = vector.extract_strided_slice %422 {offsets = [0, 0], sizes = [8, 32], strides = [1, 1]} : vector<8x128xf32> to vector<8x32xf32>
    %424 = vector.extract_strided_slice %422 {offsets = [0, 32], sizes = [8, 32], strides = [1, 1]} : vector<8x128xf32> to vector<8x32xf32>
    %425 = vector.extract_strided_slice %418 {offsets = [0, 64], sizes = [8, 32], strides = [1, 1]} : vector<8x128xf32> to vector<8x32xf32>
    %426 = vector.extract_strided_slice %422 {offsets = [0, 96], sizes = [8, 32], strides = [1, 1]} : vector<8x128xf32> to vector<8x32xf32>
    %427 = arith.mulf %424, %409 : vector<8x32xf32>
    %428 = arith.mulf %423, %425 : vector<8x32xf32>
    %429 = arith.addf %427, %428 : vector<8x32xf32>
    %430 = math.tanh %429 : vector<8x32xf32>
    %431 = arith.mulf %426, %430 : vector<8x32xf32>
    %432 = vector.extract_strided_slice %6 {offsets = [0, 63], sizes = [8, 3], strides = [1, 1]} : vector<8x96xf32> to vector<8x3xf32>
    %cst_95 = arith.constant dense<0.000000e+00> : vector<8x128xf32>
    %433 = tpu.matmul %432, %7, %cst_95 {dimension_numbers = #tpu.dot_dimension_numbers<[1], [0], [0], [1], [0, 0, 1, 1], [], []>} : vector<8x3xf32>, vector<3x128xf32>, vector<8x128xf32> -> vector<8x128xf32>
    %cst_96 = arith.constant dense<0.000000e+00> : vector<8x128xf32>
    %434 = tpu.matmul %431, %8, %cst_96 {dimension_numbers = #tpu.dot_dimension_numbers<[1], [0], [0], [1], [0, 0, 1, 1], [], []>} : vector<8x32xf32>, vector<32x128xf32>, vector<8x128xf32> -> vector<8x128xf32>
    %435 = arith.addf %433, %434 : vector<8x128xf32>
    %436 = vector.broadcast %9 : vector<1x128xf32> to vector<8x128xf32>
    %437 = arith.addf %435, %436 : vector<8x128xf32>
    %438 = math.tanh %437 : vector<8x128xf32>
    %cst_97 = arith.constant 5.000000e-01 : f32
    %439 = vector.broadcast %cst_97 : f32 to vector<8x128xf32>
    %440 = arith.mulf %439, %438 : vector<8x128xf32>
    %cst_98 = arith.constant 5.000000e-01 : f32
    %441 = vector.broadcast %cst_98 : f32 to vector<8x128xf32>
    %442 = arith.addf %440, %441 : vector<8x128xf32>
    %443 = vector.extract_strided_slice %442 {offsets = [0, 0], sizes = [8, 32], strides = [1, 1]} : vector<8x128xf32> to vector<8x32xf32>
    %444 = vector.extract_strided_slice %442 {offsets = [0, 32], sizes = [8, 32], strides = [1, 1]} : vector<8x128xf32> to vector<8x32xf32>
    %445 = vector.extract_strided_slice %438 {offsets = [0, 64], sizes = [8, 32], strides = [1, 1]} : vector<8x128xf32> to vector<8x32xf32>
    %446 = vector.extract_strided_slice %442 {offsets = [0, 96], sizes = [8, 32], strides = [1, 1]} : vector<8x128xf32> to vector<8x32xf32>
    %447 = arith.mulf %444, %429 : vector<8x32xf32>
    %448 = arith.mulf %443, %445 : vector<8x32xf32>
    %449 = arith.addf %447, %448 : vector<8x32xf32>
    %450 = math.tanh %449 : vector<8x32xf32>
    %451 = arith.mulf %446, %450 : vector<8x32xf32>
    %452 = vector.extract_strided_slice %6 {offsets = [0, 66], sizes = [8, 3], strides = [1, 1]} : vector<8x96xf32> to vector<8x3xf32>
    %cst_99 = arith.constant dense<0.000000e+00> : vector<8x128xf32>
    %453 = tpu.matmul %452, %7, %cst_99 {dimension_numbers = #tpu.dot_dimension_numbers<[1], [0], [0], [1], [0, 0, 1, 1], [], []>} : vector<8x3xf32>, vector<3x128xf32>, vector<8x128xf32> -> vector<8x128xf32>
    %cst_100 = arith.constant dense<0.000000e+00> : vector<8x128xf32>
    %454 = tpu.matmul %451, %8, %cst_100 {dimension_numbers = #tpu.dot_dimension_numbers<[1], [0], [0], [1], [0, 0, 1, 1], [], []>} : vector<8x32xf32>, vector<32x128xf32>, vector<8x128xf32> -> vector<8x128xf32>
    %455 = arith.addf %453, %454 : vector<8x128xf32>
    %456 = vector.broadcast %9 : vector<1x128xf32> to vector<8x128xf32>
    %457 = arith.addf %455, %456 : vector<8x128xf32>
    %458 = math.tanh %457 : vector<8x128xf32>
    %cst_101 = arith.constant 5.000000e-01 : f32
    %459 = vector.broadcast %cst_101 : f32 to vector<8x128xf32>
    %460 = arith.mulf %459, %458 : vector<8x128xf32>
    %cst_102 = arith.constant 5.000000e-01 : f32
    %461 = vector.broadcast %cst_102 : f32 to vector<8x128xf32>
    %462 = arith.addf %460, %461 : vector<8x128xf32>
    %463 = vector.extract_strided_slice %462 {offsets = [0, 0], sizes = [8, 32], strides = [1, 1]} : vector<8x128xf32> to vector<8x32xf32>
    %464 = vector.extract_strided_slice %462 {offsets = [0, 32], sizes = [8, 32], strides = [1, 1]} : vector<8x128xf32> to vector<8x32xf32>
    %465 = vector.extract_strided_slice %458 {offsets = [0, 64], sizes = [8, 32], strides = [1, 1]} : vector<8x128xf32> to vector<8x32xf32>
    %466 = vector.extract_strided_slice %462 {offsets = [0, 96], sizes = [8, 32], strides = [1, 1]} : vector<8x128xf32> to vector<8x32xf32>
    %467 = arith.mulf %464, %449 : vector<8x32xf32>
    %468 = arith.mulf %463, %465 : vector<8x32xf32>
    %469 = arith.addf %467, %468 : vector<8x32xf32>
    %470 = math.tanh %469 : vector<8x32xf32>
    %471 = arith.mulf %466, %470 : vector<8x32xf32>
    %472 = vector.extract_strided_slice %6 {offsets = [0, 69], sizes = [8, 3], strides = [1, 1]} : vector<8x96xf32> to vector<8x3xf32>
    %cst_103 = arith.constant dense<0.000000e+00> : vector<8x128xf32>
    %473 = tpu.matmul %472, %7, %cst_103 {dimension_numbers = #tpu.dot_dimension_numbers<[1], [0], [0], [1], [0, 0, 1, 1], [], []>} : vector<8x3xf32>, vector<3x128xf32>, vector<8x128xf32> -> vector<8x128xf32>
    %cst_104 = arith.constant dense<0.000000e+00> : vector<8x128xf32>
    %474 = tpu.matmul %471, %8, %cst_104 {dimension_numbers = #tpu.dot_dimension_numbers<[1], [0], [0], [1], [0, 0, 1, 1], [], []>} : vector<8x32xf32>, vector<32x128xf32>, vector<8x128xf32> -> vector<8x128xf32>
    %475 = arith.addf %473, %474 : vector<8x128xf32>
    %476 = vector.broadcast %9 : vector<1x128xf32> to vector<8x128xf32>
    %477 = arith.addf %475, %476 : vector<8x128xf32>
    %478 = math.tanh %477 : vector<8x128xf32>
    %cst_105 = arith.constant 5.000000e-01 : f32
    %479 = vector.broadcast %cst_105 : f32 to vector<8x128xf32>
    %480 = arith.mulf %479, %478 : vector<8x128xf32>
    %cst_106 = arith.constant 5.000000e-01 : f32
    %481 = vector.broadcast %cst_106 : f32 to vector<8x128xf32>
    %482 = arith.addf %480, %481 : vector<8x128xf32>
    %483 = vector.extract_strided_slice %482 {offsets = [0, 0], sizes = [8, 32], strides = [1, 1]} : vector<8x128xf32> to vector<8x32xf32>
    %484 = vector.extract_strided_slice %482 {offsets = [0, 32], sizes = [8, 32], strides = [1, 1]} : vector<8x128xf32> to vector<8x32xf32>
    %485 = vector.extract_strided_slice %478 {offsets = [0, 64], sizes = [8, 32], strides = [1, 1]} : vector<8x128xf32> to vector<8x32xf32>
    %486 = vector.extract_strided_slice %482 {offsets = [0, 96], sizes = [8, 32], strides = [1, 1]} : vector<8x128xf32> to vector<8x32xf32>
    %487 = arith.mulf %484, %469 : vector<8x32xf32>
    %488 = arith.mulf %483, %485 : vector<8x32xf32>
    %489 = arith.addf %487, %488 : vector<8x32xf32>
    %490 = math.tanh %489 : vector<8x32xf32>
    %491 = arith.mulf %486, %490 : vector<8x32xf32>
    %492 = vector.extract_strided_slice %6 {offsets = [0, 72], sizes = [8, 3], strides = [1, 1]} : vector<8x96xf32> to vector<8x3xf32>
    %cst_107 = arith.constant dense<0.000000e+00> : vector<8x128xf32>
    %493 = tpu.matmul %492, %7, %cst_107 {dimension_numbers = #tpu.dot_dimension_numbers<[1], [0], [0], [1], [0, 0, 1, 1], [], []>} : vector<8x3xf32>, vector<3x128xf32>, vector<8x128xf32> -> vector<8x128xf32>
    %cst_108 = arith.constant dense<0.000000e+00> : vector<8x128xf32>
    %494 = tpu.matmul %491, %8, %cst_108 {dimension_numbers = #tpu.dot_dimension_numbers<[1], [0], [0], [1], [0, 0, 1, 1], [], []>} : vector<8x32xf32>, vector<32x128xf32>, vector<8x128xf32> -> vector<8x128xf32>
    %495 = arith.addf %493, %494 : vector<8x128xf32>
    %496 = vector.broadcast %9 : vector<1x128xf32> to vector<8x128xf32>
    %497 = arith.addf %495, %496 : vector<8x128xf32>
    %498 = math.tanh %497 : vector<8x128xf32>
    %cst_109 = arith.constant 5.000000e-01 : f32
    %499 = vector.broadcast %cst_109 : f32 to vector<8x128xf32>
    %500 = arith.mulf %499, %498 : vector<8x128xf32>
    %cst_110 = arith.constant 5.000000e-01 : f32
    %501 = vector.broadcast %cst_110 : f32 to vector<8x128xf32>
    %502 = arith.addf %500, %501 : vector<8x128xf32>
    %503 = vector.extract_strided_slice %502 {offsets = [0, 0], sizes = [8, 32], strides = [1, 1]} : vector<8x128xf32> to vector<8x32xf32>
    %504 = vector.extract_strided_slice %502 {offsets = [0, 32], sizes = [8, 32], strides = [1, 1]} : vector<8x128xf32> to vector<8x32xf32>
    %505 = vector.extract_strided_slice %498 {offsets = [0, 64], sizes = [8, 32], strides = [1, 1]} : vector<8x128xf32> to vector<8x32xf32>
    %506 = vector.extract_strided_slice %502 {offsets = [0, 96], sizes = [8, 32], strides = [1, 1]} : vector<8x128xf32> to vector<8x32xf32>
    %507 = arith.mulf %504, %489 : vector<8x32xf32>
    %508 = arith.mulf %503, %505 : vector<8x32xf32>
    %509 = arith.addf %507, %508 : vector<8x32xf32>
    %510 = math.tanh %509 : vector<8x32xf32>
    %511 = arith.mulf %506, %510 : vector<8x32xf32>
    %512 = vector.extract_strided_slice %6 {offsets = [0, 75], sizes = [8, 3], strides = [1, 1]} : vector<8x96xf32> to vector<8x3xf32>
    %cst_111 = arith.constant dense<0.000000e+00> : vector<8x128xf32>
    %513 = tpu.matmul %512, %7, %cst_111 {dimension_numbers = #tpu.dot_dimension_numbers<[1], [0], [0], [1], [0, 0, 1, 1], [], []>} : vector<8x3xf32>, vector<3x128xf32>, vector<8x128xf32> -> vector<8x128xf32>
    %cst_112 = arith.constant dense<0.000000e+00> : vector<8x128xf32>
    %514 = tpu.matmul %511, %8, %cst_112 {dimension_numbers = #tpu.dot_dimension_numbers<[1], [0], [0], [1], [0, 0, 1, 1], [], []>} : vector<8x32xf32>, vector<32x128xf32>, vector<8x128xf32> -> vector<8x128xf32>
    %515 = arith.addf %513, %514 : vector<8x128xf32>
    %516 = vector.broadcast %9 : vector<1x128xf32> to vector<8x128xf32>
    %517 = arith.addf %515, %516 : vector<8x128xf32>
    %518 = math.tanh %517 : vector<8x128xf32>
    %cst_113 = arith.constant 5.000000e-01 : f32
    %519 = vector.broadcast %cst_113 : f32 to vector<8x128xf32>
    %520 = arith.mulf %519, %518 : vector<8x128xf32>
    %cst_114 = arith.constant 5.000000e-01 : f32
    %521 = vector.broadcast %cst_114 : f32 to vector<8x128xf32>
    %522 = arith.addf %520, %521 : vector<8x128xf32>
    %523 = vector.extract_strided_slice %522 {offsets = [0, 0], sizes = [8, 32], strides = [1, 1]} : vector<8x128xf32> to vector<8x32xf32>
    %524 = vector.extract_strided_slice %522 {offsets = [0, 32], sizes = [8, 32], strides = [1, 1]} : vector<8x128xf32> to vector<8x32xf32>
    %525 = vector.extract_strided_slice %518 {offsets = [0, 64], sizes = [8, 32], strides = [1, 1]} : vector<8x128xf32> to vector<8x32xf32>
    %526 = vector.extract_strided_slice %522 {offsets = [0, 96], sizes = [8, 32], strides = [1, 1]} : vector<8x128xf32> to vector<8x32xf32>
    %527 = arith.mulf %524, %509 : vector<8x32xf32>
    %528 = arith.mulf %523, %525 : vector<8x32xf32>
    %529 = arith.addf %527, %528 : vector<8x32xf32>
    %530 = math.tanh %529 : vector<8x32xf32>
    %531 = arith.mulf %526, %530 : vector<8x32xf32>
    %532 = vector.extract_strided_slice %6 {offsets = [0, 78], sizes = [8, 3], strides = [1, 1]} : vector<8x96xf32> to vector<8x3xf32>
    %cst_115 = arith.constant dense<0.000000e+00> : vector<8x128xf32>
    %533 = tpu.matmul %532, %7, %cst_115 {dimension_numbers = #tpu.dot_dimension_numbers<[1], [0], [0], [1], [0, 0, 1, 1], [], []>} : vector<8x3xf32>, vector<3x128xf32>, vector<8x128xf32> -> vector<8x128xf32>
    %cst_116 = arith.constant dense<0.000000e+00> : vector<8x128xf32>
    %534 = tpu.matmul %531, %8, %cst_116 {dimension_numbers = #tpu.dot_dimension_numbers<[1], [0], [0], [1], [0, 0, 1, 1], [], []>} : vector<8x32xf32>, vector<32x128xf32>, vector<8x128xf32> -> vector<8x128xf32>
    %535 = arith.addf %533, %534 : vector<8x128xf32>
    %536 = vector.broadcast %9 : vector<1x128xf32> to vector<8x128xf32>
    %537 = arith.addf %535, %536 : vector<8x128xf32>
    %538 = math.tanh %537 : vector<8x128xf32>
    %cst_117 = arith.constant 5.000000e-01 : f32
    %539 = vector.broadcast %cst_117 : f32 to vector<8x128xf32>
    %540 = arith.mulf %539, %538 : vector<8x128xf32>
    %cst_118 = arith.constant 5.000000e-01 : f32
    %541 = vector.broadcast %cst_118 : f32 to vector<8x128xf32>
    %542 = arith.addf %540, %541 : vector<8x128xf32>
    %543 = vector.extract_strided_slice %542 {offsets = [0, 0], sizes = [8, 32], strides = [1, 1]} : vector<8x128xf32> to vector<8x32xf32>
    %544 = vector.extract_strided_slice %542 {offsets = [0, 32], sizes = [8, 32], strides = [1, 1]} : vector<8x128xf32> to vector<8x32xf32>
    %545 = vector.extract_strided_slice %538 {offsets = [0, 64], sizes = [8, 32], strides = [1, 1]} : vector<8x128xf32> to vector<8x32xf32>
    %546 = vector.extract_strided_slice %542 {offsets = [0, 96], sizes = [8, 32], strides = [1, 1]} : vector<8x128xf32> to vector<8x32xf32>
    %547 = arith.mulf %544, %529 : vector<8x32xf32>
    %548 = arith.mulf %543, %545 : vector<8x32xf32>
    %549 = arith.addf %547, %548 : vector<8x32xf32>
    %550 = math.tanh %549 : vector<8x32xf32>
    %551 = arith.mulf %546, %550 : vector<8x32xf32>
    %552 = vector.extract_strided_slice %6 {offsets = [0, 81], sizes = [8, 3], strides = [1, 1]} : vector<8x96xf32> to vector<8x3xf32>
    %cst_119 = arith.constant dense<0.000000e+00> : vector<8x128xf32>
    %553 = tpu.matmul %552, %7, %cst_119 {dimension_numbers = #tpu.dot_dimension_numbers<[1], [0], [0], [1], [0, 0, 1, 1], [], []>} : vector<8x3xf32>, vector<3x128xf32>, vector<8x128xf32> -> vector<8x128xf32>
    %cst_120 = arith.constant dense<0.000000e+00> : vector<8x128xf32>
    %554 = tpu.matmul %551, %8, %cst_120 {dimension_numbers = #tpu.dot_dimension_numbers<[1], [0], [0], [1], [0, 0, 1, 1], [], []>} : vector<8x32xf32>, vector<32x128xf32>, vector<8x128xf32> -> vector<8x128xf32>
    %555 = arith.addf %553, %554 : vector<8x128xf32>
    %556 = vector.broadcast %9 : vector<1x128xf32> to vector<8x128xf32>
    %557 = arith.addf %555, %556 : vector<8x128xf32>
    %558 = math.tanh %557 : vector<8x128xf32>
    %cst_121 = arith.constant 5.000000e-01 : f32
    %559 = vector.broadcast %cst_121 : f32 to vector<8x128xf32>
    %560 = arith.mulf %559, %558 : vector<8x128xf32>
    %cst_122 = arith.constant 5.000000e-01 : f32
    %561 = vector.broadcast %cst_122 : f32 to vector<8x128xf32>
    %562 = arith.addf %560, %561 : vector<8x128xf32>
    %563 = vector.extract_strided_slice %562 {offsets = [0, 0], sizes = [8, 32], strides = [1, 1]} : vector<8x128xf32> to vector<8x32xf32>
    %564 = vector.extract_strided_slice %562 {offsets = [0, 32], sizes = [8, 32], strides = [1, 1]} : vector<8x128xf32> to vector<8x32xf32>
    %565 = vector.extract_strided_slice %558 {offsets = [0, 64], sizes = [8, 32], strides = [1, 1]} : vector<8x128xf32> to vector<8x32xf32>
    %566 = vector.extract_strided_slice %562 {offsets = [0, 96], sizes = [8, 32], strides = [1, 1]} : vector<8x128xf32> to vector<8x32xf32>
    %567 = arith.mulf %564, %549 : vector<8x32xf32>
    %568 = arith.mulf %563, %565 : vector<8x32xf32>
    %569 = arith.addf %567, %568 : vector<8x32xf32>
    %570 = math.tanh %569 : vector<8x32xf32>
    %571 = arith.mulf %566, %570 : vector<8x32xf32>
    %572 = vector.extract_strided_slice %6 {offsets = [0, 84], sizes = [8, 3], strides = [1, 1]} : vector<8x96xf32> to vector<8x3xf32>
    %cst_123 = arith.constant dense<0.000000e+00> : vector<8x128xf32>
    %573 = tpu.matmul %572, %7, %cst_123 {dimension_numbers = #tpu.dot_dimension_numbers<[1], [0], [0], [1], [0, 0, 1, 1], [], []>} : vector<8x3xf32>, vector<3x128xf32>, vector<8x128xf32> -> vector<8x128xf32>
    %cst_124 = arith.constant dense<0.000000e+00> : vector<8x128xf32>
    %574 = tpu.matmul %571, %8, %cst_124 {dimension_numbers = #tpu.dot_dimension_numbers<[1], [0], [0], [1], [0, 0, 1, 1], [], []>} : vector<8x32xf32>, vector<32x128xf32>, vector<8x128xf32> -> vector<8x128xf32>
    %575 = arith.addf %573, %574 : vector<8x128xf32>
    %576 = vector.broadcast %9 : vector<1x128xf32> to vector<8x128xf32>
    %577 = arith.addf %575, %576 : vector<8x128xf32>
    %578 = math.tanh %577 : vector<8x128xf32>
    %cst_125 = arith.constant 5.000000e-01 : f32
    %579 = vector.broadcast %cst_125 : f32 to vector<8x128xf32>
    %580 = arith.mulf %579, %578 : vector<8x128xf32>
    %cst_126 = arith.constant 5.000000e-01 : f32
    %581 = vector.broadcast %cst_126 : f32 to vector<8x128xf32>
    %582 = arith.addf %580, %581 : vector<8x128xf32>
    %583 = vector.extract_strided_slice %582 {offsets = [0, 0], sizes = [8, 32], strides = [1, 1]} : vector<8x128xf32> to vector<8x32xf32>
    %584 = vector.extract_strided_slice %582 {offsets = [0, 32], sizes = [8, 32], strides = [1, 1]} : vector<8x128xf32> to vector<8x32xf32>
    %585 = vector.extract_strided_slice %578 {offsets = [0, 64], sizes = [8, 32], strides = [1, 1]} : vector<8x128xf32> to vector<8x32xf32>
    %586 = vector.extract_strided_slice %582 {offsets = [0, 96], sizes = [8, 32], strides = [1, 1]} : vector<8x128xf32> to vector<8x32xf32>
    %587 = arith.mulf %584, %569 : vector<8x32xf32>
    %588 = arith.mulf %583, %585 : vector<8x32xf32>
    %589 = arith.addf %587, %588 : vector<8x32xf32>
    %590 = math.tanh %589 : vector<8x32xf32>
    %591 = arith.mulf %586, %590 : vector<8x32xf32>
    %592 = vector.extract_strided_slice %6 {offsets = [0, 87], sizes = [8, 3], strides = [1, 1]} : vector<8x96xf32> to vector<8x3xf32>
    %cst_127 = arith.constant dense<0.000000e+00> : vector<8x128xf32>
    %593 = tpu.matmul %592, %7, %cst_127 {dimension_numbers = #tpu.dot_dimension_numbers<[1], [0], [0], [1], [0, 0, 1, 1], [], []>} : vector<8x3xf32>, vector<3x128xf32>, vector<8x128xf32> -> vector<8x128xf32>
    %cst_128 = arith.constant dense<0.000000e+00> : vector<8x128xf32>
    %594 = tpu.matmul %591, %8, %cst_128 {dimension_numbers = #tpu.dot_dimension_numbers<[1], [0], [0], [1], [0, 0, 1, 1], [], []>} : vector<8x32xf32>, vector<32x128xf32>, vector<8x128xf32> -> vector<8x128xf32>
    %595 = arith.addf %593, %594 : vector<8x128xf32>
    %596 = vector.broadcast %9 : vector<1x128xf32> to vector<8x128xf32>
    %597 = arith.addf %595, %596 : vector<8x128xf32>
    %598 = math.tanh %597 : vector<8x128xf32>
    %cst_129 = arith.constant 5.000000e-01 : f32
    %599 = vector.broadcast %cst_129 : f32 to vector<8x128xf32>
    %600 = arith.mulf %599, %598 : vector<8x128xf32>
    %cst_130 = arith.constant 5.000000e-01 : f32
    %601 = vector.broadcast %cst_130 : f32 to vector<8x128xf32>
    %602 = arith.addf %600, %601 : vector<8x128xf32>
    %603 = vector.extract_strided_slice %602 {offsets = [0, 0], sizes = [8, 32], strides = [1, 1]} : vector<8x128xf32> to vector<8x32xf32>
    %604 = vector.extract_strided_slice %602 {offsets = [0, 32], sizes = [8, 32], strides = [1, 1]} : vector<8x128xf32> to vector<8x32xf32>
    %605 = vector.extract_strided_slice %598 {offsets = [0, 64], sizes = [8, 32], strides = [1, 1]} : vector<8x128xf32> to vector<8x32xf32>
    %606 = vector.extract_strided_slice %602 {offsets = [0, 96], sizes = [8, 32], strides = [1, 1]} : vector<8x128xf32> to vector<8x32xf32>
    %607 = arith.mulf %604, %589 : vector<8x32xf32>
    %608 = arith.mulf %603, %605 : vector<8x32xf32>
    %609 = arith.addf %607, %608 : vector<8x32xf32>
    %610 = math.tanh %609 : vector<8x32xf32>
    %611 = arith.mulf %606, %610 : vector<8x32xf32>
    %612 = vector.extract_strided_slice %6 {offsets = [0, 90], sizes = [8, 3], strides = [1, 1]} : vector<8x96xf32> to vector<8x3xf32>
    %cst_131 = arith.constant dense<0.000000e+00> : vector<8x128xf32>
    %613 = tpu.matmul %612, %7, %cst_131 {dimension_numbers = #tpu.dot_dimension_numbers<[1], [0], [0], [1], [0, 0, 1, 1], [], []>} : vector<8x3xf32>, vector<3x128xf32>, vector<8x128xf32> -> vector<8x128xf32>
    %cst_132 = arith.constant dense<0.000000e+00> : vector<8x128xf32>
    %614 = tpu.matmul %611, %8, %cst_132 {dimension_numbers = #tpu.dot_dimension_numbers<[1], [0], [0], [1], [0, 0, 1, 1], [], []>} : vector<8x32xf32>, vector<32x128xf32>, vector<8x128xf32> -> vector<8x128xf32>
    %615 = arith.addf %613, %614 : vector<8x128xf32>
    %616 = vector.broadcast %9 : vector<1x128xf32> to vector<8x128xf32>
    %617 = arith.addf %615, %616 : vector<8x128xf32>
    %618 = math.tanh %617 : vector<8x128xf32>
    %cst_133 = arith.constant 5.000000e-01 : f32
    %619 = vector.broadcast %cst_133 : f32 to vector<8x128xf32>
    %620 = arith.mulf %619, %618 : vector<8x128xf32>
    %cst_134 = arith.constant 5.000000e-01 : f32
    %621 = vector.broadcast %cst_134 : f32 to vector<8x128xf32>
    %622 = arith.addf %620, %621 : vector<8x128xf32>
    %623 = vector.extract_strided_slice %622 {offsets = [0, 0], sizes = [8, 32], strides = [1, 1]} : vector<8x128xf32> to vector<8x32xf32>
    %624 = vector.extract_strided_slice %622 {offsets = [0, 32], sizes = [8, 32], strides = [1, 1]} : vector<8x128xf32> to vector<8x32xf32>
    %625 = vector.extract_strided_slice %618 {offsets = [0, 64], sizes = [8, 32], strides = [1, 1]} : vector<8x128xf32> to vector<8x32xf32>
    %626 = vector.extract_strided_slice %622 {offsets = [0, 96], sizes = [8, 32], strides = [1, 1]} : vector<8x128xf32> to vector<8x32xf32>
    %627 = arith.mulf %624, %609 : vector<8x32xf32>
    %628 = arith.mulf %623, %625 : vector<8x32xf32>
    %629 = arith.addf %627, %628 : vector<8x32xf32>
    %630 = math.tanh %629 : vector<8x32xf32>
    %631 = arith.mulf %626, %630 : vector<8x32xf32>
    %632 = vector.extract_strided_slice %6 {offsets = [0, 93], sizes = [8, 3], strides = [1, 1]} : vector<8x96xf32> to vector<8x3xf32>
    %cst_135 = arith.constant dense<0.000000e+00> : vector<8x128xf32>
    %633 = tpu.matmul %632, %7, %cst_135 {dimension_numbers = #tpu.dot_dimension_numbers<[1], [0], [0], [1], [0, 0, 1, 1], [], []>} : vector<8x3xf32>, vector<3x128xf32>, vector<8x128xf32> -> vector<8x128xf32>
    %cst_136 = arith.constant dense<0.000000e+00> : vector<8x128xf32>
    %634 = tpu.matmul %631, %8, %cst_136 {dimension_numbers = #tpu.dot_dimension_numbers<[1], [0], [0], [1], [0, 0, 1, 1], [], []>} : vector<8x32xf32>, vector<32x128xf32>, vector<8x128xf32> -> vector<8x128xf32>
    %635 = arith.addf %633, %634 : vector<8x128xf32>
    %636 = vector.broadcast %9 : vector<1x128xf32> to vector<8x128xf32>
    %637 = arith.addf %635, %636 : vector<8x128xf32>
    %638 = math.tanh %637 : vector<8x128xf32>
    %cst_137 = arith.constant 5.000000e-01 : f32
    %639 = vector.broadcast %cst_137 : f32 to vector<8x128xf32>
    %640 = arith.mulf %639, %638 : vector<8x128xf32>
    %cst_138 = arith.constant 5.000000e-01 : f32
    %641 = vector.broadcast %cst_138 : f32 to vector<8x128xf32>
    %642 = arith.addf %640, %641 : vector<8x128xf32>
    %643 = vector.extract_strided_slice %642 {offsets = [0, 0], sizes = [8, 32], strides = [1, 1]} : vector<8x128xf32> to vector<8x32xf32>
    %644 = vector.extract_strided_slice %642 {offsets = [0, 32], sizes = [8, 32], strides = [1, 1]} : vector<8x128xf32> to vector<8x32xf32>
    %645 = vector.extract_strided_slice %638 {offsets = [0, 64], sizes = [8, 32], strides = [1, 1]} : vector<8x128xf32> to vector<8x32xf32>
    %646 = vector.extract_strided_slice %642 {offsets = [0, 96], sizes = [8, 32], strides = [1, 1]} : vector<8x128xf32> to vector<8x32xf32>
    %647 = arith.mulf %644, %629 : vector<8x32xf32>
    %648 = arith.mulf %643, %645 : vector<8x32xf32>
    %649 = arith.addf %647, %648 : vector<8x32xf32>
    %650 = math.tanh %649 : vector<8x32xf32>
    %651 = arith.mulf %646, %650 : vector<8x32xf32>
    %652 = math.tanh %651 : vector<8x32xf32>
    %c40 = arith.constant 40 : index
    %c0_139 = arith.constant 0 : index
    %653 = vector.load %arg2[%c40, %c0_139] : memref<128x128xf32, #tpu.memory_space<vmem>>, vector<32x128xf32>
    %cst_140 = arith.constant dense<0.000000e+00> : vector<8x128xf32>
    %654 = tpu.matmul %652, %653, %cst_140 {dimension_numbers = #tpu.dot_dimension_numbers<[1], [0], [0], [1], [0, 0, 1, 1], [], []>} : vector<8x32xf32>, vector<32x128xf32>, vector<8x128xf32> -> vector<8x128xf32>
    %c72 = arith.constant 72 : index
    %c0_141 = arith.constant 0 : index
    %655 = vector.load %arg2[%c72, %c0_141] : memref<128x128xf32, #tpu.memory_space<vmem>>, vector<1x128xf32>
    %656 = vector.broadcast %655 : vector<1x128xf32> to vector<8x128xf32>
    %657 = arith.addf %654, %656 : vector<8x128xf32>
    %658 = math.tanh %657 : vector<8x128xf32>
    %659 = vector.extract_strided_slice %658 {offsets = [0, 0], sizes = [8, 1], strides = [1, 1]} : vector<8x128xf32> to vector<8x1xf32>
    %c80 = arith.constant 80 : index
    %c0_142 = arith.constant 0 : index
    %660 = vector.load %arg2[%c80, %c0_142] : memref<128x128xf32, #tpu.memory_space<vmem>>, vector<1x128xf32>
    %661 = vector.broadcast %659 : vector<8x1xf32> to vector<8x128xf32>
    %662 = vector.broadcast %660 : vector<1x128xf32> to vector<8x128xf32>
    %663 = arith.mulf %661, %662 : vector<8x128xf32>
    %c85 = arith.constant 85 : index
    %c0_143 = arith.constant 0 : index
    %664 = vector.load %arg2[%c85, %c0_143] : memref<128x128xf32, #tpu.memory_space<vmem>>, vector<1x128xf32>
    %665 = vector.broadcast %664 : vector<1x128xf32> to vector<8x128xf32>
    %666 = arith.addf %663, %665 : vector<8x128xf32>
    %667 = vector.extract_strided_slice %658 {offsets = [0, 1], sizes = [8, 1], strides = [1, 1]} : vector<8x128xf32> to vector<8x1xf32>
    %c81 = arith.constant 81 : index
    %c0_144 = arith.constant 0 : index
    %668 = vector.load %arg2[%c81, %c0_144] : memref<128x128xf32, #tpu.memory_space<vmem>>, vector<1x128xf32>
    %669 = vector.broadcast %667 : vector<8x1xf32> to vector<8x128xf32>
    %670 = vector.broadcast %668 : vector<1x128xf32> to vector<8x128xf32>
    %671 = arith.mulf %669, %670 : vector<8x128xf32>
    %672 = arith.addf %666, %671 : vector<8x128xf32>
    %673 = vector.extract_strided_slice %658 {offsets = [0, 2], sizes = [8, 1], strides = [1, 1]} : vector<8x128xf32> to vector<8x1xf32>
    %c82 = arith.constant 82 : index
    %c0_145 = arith.constant 0 : index
    %674 = vector.load %arg2[%c82, %c0_145] : memref<128x128xf32, #tpu.memory_space<vmem>>, vector<1x128xf32>
    %675 = vector.broadcast %673 : vector<8x1xf32> to vector<8x128xf32>
    %676 = vector.broadcast %674 : vector<1x128xf32> to vector<8x128xf32>
    %677 = arith.mulf %675, %676 : vector<8x128xf32>
    %678 = arith.addf %672, %677 : vector<8x128xf32>
    %679 = vector.extract_strided_slice %658 {offsets = [0, 3], sizes = [8, 1], strides = [1, 1]} : vector<8x128xf32> to vector<8x1xf32>
    %c83 = arith.constant 83 : index
    %c0_146 = arith.constant 0 : index
    %680 = vector.load %arg2[%c83, %c0_146] : memref<128x128xf32, #tpu.memory_space<vmem>>, vector<1x128xf32>
    %681 = vector.broadcast %679 : vector<8x1xf32> to vector<8x128xf32>
    %682 = vector.broadcast %680 : vector<1x128xf32> to vector<8x128xf32>
    %683 = arith.mulf %681, %682 : vector<8x128xf32>
    %684 = arith.addf %678, %683 : vector<8x128xf32>
    %685 = vector.extract_strided_slice %658 {offsets = [0, 4], sizes = [8, 1], strides = [1, 1]} : vector<8x128xf32> to vector<8x1xf32>
    %c84 = arith.constant 84 : index
    %c0_147 = arith.constant 0 : index
    %686 = vector.load %arg2[%c84, %c0_147] : memref<128x128xf32, #tpu.memory_space<vmem>>, vector<1x128xf32>
    %687 = vector.broadcast %685 : vector<8x1xf32> to vector<8x128xf32>
    %688 = vector.broadcast %686 : vector<1x128xf32> to vector<8x128xf32>
    %689 = arith.mulf %687, %688 : vector<8x128xf32>
    %690 = arith.addf %684, %689 : vector<8x128xf32>
    %691 = math.tanh %690 : vector<8x128xf32>
    %692 = vector.extract_strided_slice %691 {offsets = [0, 0], sizes = [8, 1], strides = [1, 1]} : vector<8x128xf32> to vector<8x1xf32>
    %c88 = arith.constant 88 : index
    %c0_148 = arith.constant 0 : index
    %693 = vector.load %arg2[%c88, %c0_148] : memref<128x128xf32, #tpu.memory_space<vmem>>, vector<1x128xf32>
    %694 = vector.broadcast %692 : vector<8x1xf32> to vector<8x128xf32>
    %695 = vector.broadcast %693 : vector<1x128xf32> to vector<8x128xf32>
    %696 = arith.mulf %694, %695 : vector<8x128xf32>
    %c93 = arith.constant 93 : index
    %c0_149 = arith.constant 0 : index
    %697 = vector.load %arg2[%c93, %c0_149] : memref<128x128xf32, #tpu.memory_space<vmem>>, vector<1x128xf32>
    %698 = vector.broadcast %697 : vector<1x128xf32> to vector<8x128xf32>
    %699 = arith.addf %696, %698 : vector<8x128xf32>
    %700 = vector.extract_strided_slice %691 {offsets = [0, 1], sizes = [8, 1], strides = [1, 1]} : vector<8x128xf32> to vector<8x1xf32>
    %c89 = arith.constant 89 : index
    %c0_150 = arith.constant 0 : index
    %701 = vector.load %arg2[%c89, %c0_150] : memref<128x128xf32, #tpu.memory_space<vmem>>, vector<1x128xf32>
    %702 = vector.broadcast %700 : vector<8x1xf32> to vector<8x128xf32>
    %703 = vector.broadcast %701 : vector<1x128xf32> to vector<8x128xf32>
    %704 = arith.mulf %702, %703 : vector<8x128xf32>
    %705 = arith.addf %699, %704 : vector<8x128xf32>
    %706 = vector.extract_strided_slice %691 {offsets = [0, 2], sizes = [8, 1], strides = [1, 1]} : vector<8x128xf32> to vector<8x1xf32>
    %c90 = arith.constant 90 : index
    %c0_151 = arith.constant 0 : index
    %707 = vector.load %arg2[%c90, %c0_151] : memref<128x128xf32, #tpu.memory_space<vmem>>, vector<1x128xf32>
    %708 = vector.broadcast %706 : vector<8x1xf32> to vector<8x128xf32>
    %709 = vector.broadcast %707 : vector<1x128xf32> to vector<8x128xf32>
    %710 = arith.mulf %708, %709 : vector<8x128xf32>
    %711 = arith.addf %705, %710 : vector<8x128xf32>
    %712 = vector.extract_strided_slice %691 {offsets = [0, 3], sizes = [8, 1], strides = [1, 1]} : vector<8x128xf32> to vector<8x1xf32>
    %c91 = arith.constant 91 : index
    %c0_152 = arith.constant 0 : index
    %713 = vector.load %arg2[%c91, %c0_152] : memref<128x128xf32, #tpu.memory_space<vmem>>, vector<1x128xf32>
    %714 = vector.broadcast %712 : vector<8x1xf32> to vector<8x128xf32>
    %715 = vector.broadcast %713 : vector<1x128xf32> to vector<8x128xf32>
    %716 = arith.mulf %714, %715 : vector<8x128xf32>
    %717 = arith.addf %711, %716 : vector<8x128xf32>
    %718 = vector.extract_strided_slice %691 {offsets = [0, 4], sizes = [8, 1], strides = [1, 1]} : vector<8x128xf32> to vector<8x1xf32>
    %c92 = arith.constant 92 : index
    %c0_153 = arith.constant 0 : index
    %719 = vector.load %arg2[%c92, %c0_153] : memref<128x128xf32, #tpu.memory_space<vmem>>, vector<1x128xf32>
    %720 = vector.broadcast %718 : vector<8x1xf32> to vector<8x128xf32>
    %721 = vector.broadcast %719 : vector<1x128xf32> to vector<8x128xf32>
    %722 = arith.mulf %720, %721 : vector<8x128xf32>
    %723 = arith.addf %717, %722 : vector<8x128xf32>
    %724 = math.tanh %723 : vector<8x128xf32>
    %725 = vector.extract_strided_slice %724 {offsets = [0, 0], sizes = [8, 1], strides = [1, 1]} : vector<8x128xf32> to vector<8x1xf32>
    %c96_154 = arith.constant 96 : index
    %c0_155 = arith.constant 0 : index
    %726 = vector.load %arg2[%c96_154, %c0_155] : memref<128x128xf32, #tpu.memory_space<vmem>>, vector<1x128xf32>
    %727 = vector.broadcast %725 : vector<8x1xf32> to vector<8x128xf32>
    %728 = vector.broadcast %726 : vector<1x128xf32> to vector<8x128xf32>
    %729 = arith.mulf %727, %728 : vector<8x128xf32>
    %c101 = arith.constant 101 : index
    %c0_156 = arith.constant 0 : index
    %730 = vector.load %arg2[%c101, %c0_156] : memref<128x128xf32, #tpu.memory_space<vmem>>, vector<1x128xf32>
    %731 = vector.broadcast %730 : vector<1x128xf32> to vector<8x128xf32>
    %732 = arith.addf %729, %731 : vector<8x128xf32>
    %733 = vector.extract_strided_slice %724 {offsets = [0, 1], sizes = [8, 1], strides = [1, 1]} : vector<8x128xf32> to vector<8x1xf32>
    %c97 = arith.constant 97 : index
    %c0_157 = arith.constant 0 : index
    %734 = vector.load %arg2[%c97, %c0_157] : memref<128x128xf32, #tpu.memory_space<vmem>>, vector<1x128xf32>
    %735 = vector.broadcast %733 : vector<8x1xf32> to vector<8x128xf32>
    %736 = vector.broadcast %734 : vector<1x128xf32> to vector<8x128xf32>
    %737 = arith.mulf %735, %736 : vector<8x128xf32>
    %738 = arith.addf %732, %737 : vector<8x128xf32>
    %739 = vector.extract_strided_slice %724 {offsets = [0, 2], sizes = [8, 1], strides = [1, 1]} : vector<8x128xf32> to vector<8x1xf32>
    %c98 = arith.constant 98 : index
    %c0_158 = arith.constant 0 : index
    %740 = vector.load %arg2[%c98, %c0_158] : memref<128x128xf32, #tpu.memory_space<vmem>>, vector<1x128xf32>
    %741 = vector.broadcast %739 : vector<8x1xf32> to vector<8x128xf32>
    %742 = vector.broadcast %740 : vector<1x128xf32> to vector<8x128xf32>
    %743 = arith.mulf %741, %742 : vector<8x128xf32>
    %744 = arith.addf %738, %743 : vector<8x128xf32>
    %745 = vector.extract_strided_slice %724 {offsets = [0, 3], sizes = [8, 1], strides = [1, 1]} : vector<8x128xf32> to vector<8x1xf32>
    %c99 = arith.constant 99 : index
    %c0_159 = arith.constant 0 : index
    %746 = vector.load %arg2[%c99, %c0_159] : memref<128x128xf32, #tpu.memory_space<vmem>>, vector<1x128xf32>
    %747 = vector.broadcast %745 : vector<8x1xf32> to vector<8x128xf32>
    %748 = vector.broadcast %746 : vector<1x128xf32> to vector<8x128xf32>
    %749 = arith.mulf %747, %748 : vector<8x128xf32>
    %750 = arith.addf %744, %749 : vector<8x128xf32>
    %751 = vector.extract_strided_slice %724 {offsets = [0, 4], sizes = [8, 1], strides = [1, 1]} : vector<8x128xf32> to vector<8x1xf32>
    %c100 = arith.constant 100 : index
    %c0_160 = arith.constant 0 : index
    %752 = vector.load %arg2[%c100, %c0_160] : memref<128x128xf32, #tpu.memory_space<vmem>>, vector<1x128xf32>
    %753 = vector.broadcast %751 : vector<8x1xf32> to vector<8x128xf32>
    %754 = vector.broadcast %752 : vector<1x128xf32> to vector<8x128xf32>
    %755 = arith.mulf %753, %754 : vector<8x128xf32>
    %756 = arith.addf %750, %755 : vector<8x128xf32>
    %757 = math.tanh %756 : vector<8x128xf32>
    %758 = vector.extract_strided_slice %757 {offsets = [0, 0], sizes = [8, 1], strides = [1, 1]} : vector<8x128xf32> to vector<8x1xf32>
    %c104 = arith.constant 104 : index
    %c0_161 = arith.constant 0 : index
    %759 = vector.load %arg2[%c104, %c0_161] : memref<128x128xf32, #tpu.memory_space<vmem>>, vector<1x128xf32>
    %760 = vector.broadcast %758 : vector<8x1xf32> to vector<8x128xf32>
    %761 = vector.broadcast %759 : vector<1x128xf32> to vector<8x128xf32>
    %762 = arith.mulf %760, %761 : vector<8x128xf32>
    %c109 = arith.constant 109 : index
    %c0_162 = arith.constant 0 : index
    %763 = vector.load %arg2[%c109, %c0_162] : memref<128x128xf32, #tpu.memory_space<vmem>>, vector<1x128xf32>
    %764 = vector.broadcast %763 : vector<1x128xf32> to vector<8x128xf32>
    %765 = arith.addf %762, %764 : vector<8x128xf32>
    %766 = vector.extract_strided_slice %757 {offsets = [0, 1], sizes = [8, 1], strides = [1, 1]} : vector<8x128xf32> to vector<8x1xf32>
    %c105 = arith.constant 105 : index
    %c0_163 = arith.constant 0 : index
    %767 = vector.load %arg2[%c105, %c0_163] : memref<128x128xf32, #tpu.memory_space<vmem>>, vector<1x128xf32>
    %768 = vector.broadcast %766 : vector<8x1xf32> to vector<8x128xf32>
    %769 = vector.broadcast %767 : vector<1x128xf32> to vector<8x128xf32>
    %770 = arith.mulf %768, %769 : vector<8x128xf32>
    %771 = arith.addf %765, %770 : vector<8x128xf32>
    %772 = vector.extract_strided_slice %757 {offsets = [0, 2], sizes = [8, 1], strides = [1, 1]} : vector<8x128xf32> to vector<8x1xf32>
    %c106 = arith.constant 106 : index
    %c0_164 = arith.constant 0 : index
    %773 = vector.load %arg2[%c106, %c0_164] : memref<128x128xf32, #tpu.memory_space<vmem>>, vector<1x128xf32>
    %774 = vector.broadcast %772 : vector<8x1xf32> to vector<8x128xf32>
    %775 = vector.broadcast %773 : vector<1x128xf32> to vector<8x128xf32>
    %776 = arith.mulf %774, %775 : vector<8x128xf32>
    %777 = arith.addf %771, %776 : vector<8x128xf32>
    %778 = vector.extract_strided_slice %757 {offsets = [0, 3], sizes = [8, 1], strides = [1, 1]} : vector<8x128xf32> to vector<8x1xf32>
    %c107 = arith.constant 107 : index
    %c0_165 = arith.constant 0 : index
    %779 = vector.load %arg2[%c107, %c0_165] : memref<128x128xf32, #tpu.memory_space<vmem>>, vector<1x128xf32>
    %780 = vector.broadcast %778 : vector<8x1xf32> to vector<8x128xf32>
    %781 = vector.broadcast %779 : vector<1x128xf32> to vector<8x128xf32>
    %782 = arith.mulf %780, %781 : vector<8x128xf32>
    %783 = arith.addf %777, %782 : vector<8x128xf32>
    %784 = vector.extract_strided_slice %757 {offsets = [0, 4], sizes = [8, 1], strides = [1, 1]} : vector<8x128xf32> to vector<8x1xf32>
    %c108 = arith.constant 108 : index
    %c0_166 = arith.constant 0 : index
    %785 = vector.load %arg2[%c108, %c0_166] : memref<128x128xf32, #tpu.memory_space<vmem>>, vector<1x128xf32>
    %786 = vector.broadcast %784 : vector<8x1xf32> to vector<8x128xf32>
    %787 = vector.broadcast %785 : vector<1x128xf32> to vector<8x128xf32>
    %788 = arith.mulf %786, %787 : vector<8x128xf32>
    %789 = arith.addf %783, %788 : vector<8x128xf32>
    %790 = math.tanh %789 : vector<8x128xf32>
    %791 = vector.extract_strided_slice %790 {offsets = [0, 0], sizes = [8, 1], strides = [1, 1]} : vector<8x128xf32> to vector<8x1xf32>
    %c112 = arith.constant 112 : index
    %c0_167 = arith.constant 0 : index
    %792 = vector.load %arg2[%c112, %c0_167] : memref<128x128xf32, #tpu.memory_space<vmem>>, vector<1x128xf32>
    %793 = vector.broadcast %791 : vector<8x1xf32> to vector<8x128xf32>
    %794 = vector.broadcast %792 : vector<1x128xf32> to vector<8x128xf32>
    %795 = arith.mulf %793, %794 : vector<8x128xf32>
    %c117 = arith.constant 117 : index
    %c0_168 = arith.constant 0 : index
    %796 = vector.load %arg2[%c117, %c0_168] : memref<128x128xf32, #tpu.memory_space<vmem>>, vector<1x128xf32>
    %797 = vector.broadcast %796 : vector<1x128xf32> to vector<8x128xf32>
    %798 = arith.addf %795, %797 : vector<8x128xf32>
    %799 = vector.extract_strided_slice %790 {offsets = [0, 1], sizes = [8, 1], strides = [1, 1]} : vector<8x128xf32> to vector<8x1xf32>
    %c113 = arith.constant 113 : index
    %c0_169 = arith.constant 0 : index
    %800 = vector.load %arg2[%c113, %c0_169] : memref<128x128xf32, #tpu.memory_space<vmem>>, vector<1x128xf32>
    %801 = vector.broadcast %799 : vector<8x1xf32> to vector<8x128xf32>
    %802 = vector.broadcast %800 : vector<1x128xf32> to vector<8x128xf32>
    %803 = arith.mulf %801, %802 : vector<8x128xf32>
    %804 = arith.addf %798, %803 : vector<8x128xf32>
    %805 = vector.extract_strided_slice %790 {offsets = [0, 2], sizes = [8, 1], strides = [1, 1]} : vector<8x128xf32> to vector<8x1xf32>
    %c114 = arith.constant 114 : index
    %c0_170 = arith.constant 0 : index
    %806 = vector.load %arg2[%c114, %c0_170] : memref<128x128xf32, #tpu.memory_space<vmem>>, vector<1x128xf32>
    %807 = vector.broadcast %805 : vector<8x1xf32> to vector<8x128xf32>
    %808 = vector.broadcast %806 : vector<1x128xf32> to vector<8x128xf32>
    %809 = arith.mulf %807, %808 : vector<8x128xf32>
    %810 = arith.addf %804, %809 : vector<8x128xf32>
    %811 = vector.extract_strided_slice %790 {offsets = [0, 3], sizes = [8, 1], strides = [1, 1]} : vector<8x128xf32> to vector<8x1xf32>
    %c115 = arith.constant 115 : index
    %c0_171 = arith.constant 0 : index
    %812 = vector.load %arg2[%c115, %c0_171] : memref<128x128xf32, #tpu.memory_space<vmem>>, vector<1x128xf32>
    %813 = vector.broadcast %811 : vector<8x1xf32> to vector<8x128xf32>
    %814 = vector.broadcast %812 : vector<1x128xf32> to vector<8x128xf32>
    %815 = arith.mulf %813, %814 : vector<8x128xf32>
    %816 = arith.addf %810, %815 : vector<8x128xf32>
    %817 = vector.extract_strided_slice %790 {offsets = [0, 4], sizes = [8, 1], strides = [1, 1]} : vector<8x128xf32> to vector<8x1xf32>
    %c116 = arith.constant 116 : index
    %c0_172 = arith.constant 0 : index
    %818 = vector.load %arg2[%c116, %c0_172] : memref<128x128xf32, #tpu.memory_space<vmem>>, vector<1x128xf32>
    %819 = vector.broadcast %817 : vector<8x1xf32> to vector<8x128xf32>
    %820 = vector.broadcast %818 : vector<1x128xf32> to vector<8x128xf32>
    %821 = arith.mulf %819, %820 : vector<8x128xf32>
    %822 = arith.addf %816, %821 : vector<8x128xf32>
    %823 = math.tanh %822 : vector<8x128xf32>
    %824 = vector.extract_strided_slice %823 {offsets = [0, 0], sizes = [8, 1], strides = [1, 1]} : vector<8x128xf32> to vector<8x1xf32>
    %c120 = arith.constant 120 : index
    %c0_173 = arith.constant 0 : index
    %825 = vector.load %arg2[%c120, %c0_173] : memref<128x128xf32, #tpu.memory_space<vmem>>, vector<1x128xf32>
    %826 = vector.broadcast %824 : vector<8x1xf32> to vector<8x128xf32>
    %827 = vector.broadcast %825 : vector<1x128xf32> to vector<8x128xf32>
    %828 = arith.mulf %826, %827 : vector<8x128xf32>
    %c125 = arith.constant 125 : index
    %c0_174 = arith.constant 0 : index
    %829 = vector.load %arg2[%c125, %c0_174] : memref<128x128xf32, #tpu.memory_space<vmem>>, vector<1x128xf32>
    %830 = vector.broadcast %829 : vector<1x128xf32> to vector<8x128xf32>
    %831 = arith.addf %828, %830 : vector<8x128xf32>
    %832 = vector.extract_strided_slice %823 {offsets = [0, 1], sizes = [8, 1], strides = [1, 1]} : vector<8x128xf32> to vector<8x1xf32>
    %c121 = arith.constant 121 : index
    %c0_175 = arith.constant 0 : index
    %833 = vector.load %arg2[%c121, %c0_175] : memref<128x128xf32, #tpu.memory_space<vmem>>, vector<1x128xf32>
    %834 = vector.broadcast %832 : vector<8x1xf32> to vector<8x128xf32>
    %835 = vector.broadcast %833 : vector<1x128xf32> to vector<8x128xf32>
    %836 = arith.mulf %834, %835 : vector<8x128xf32>
    %837 = arith.addf %831, %836 : vector<8x128xf32>
    %838 = vector.extract_strided_slice %823 {offsets = [0, 2], sizes = [8, 1], strides = [1, 1]} : vector<8x128xf32> to vector<8x1xf32>
    %c122 = arith.constant 122 : index
    %c0_176 = arith.constant 0 : index
    %839 = vector.load %arg2[%c122, %c0_176] : memref<128x128xf32, #tpu.memory_space<vmem>>, vector<1x128xf32>
    %840 = vector.broadcast %838 : vector<8x1xf32> to vector<8x128xf32>
    %841 = vector.broadcast %839 : vector<1x128xf32> to vector<8x128xf32>
    %842 = arith.mulf %840, %841 : vector<8x128xf32>
    %843 = arith.addf %837, %842 : vector<8x128xf32>
    %844 = vector.extract_strided_slice %823 {offsets = [0, 3], sizes = [8, 1], strides = [1, 1]} : vector<8x128xf32> to vector<8x1xf32>
    %c123 = arith.constant 123 : index
    %c0_177 = arith.constant 0 : index
    %845 = vector.load %arg2[%c123, %c0_177] : memref<128x128xf32, #tpu.memory_space<vmem>>, vector<1x128xf32>
    %846 = vector.broadcast %844 : vector<8x1xf32> to vector<8x128xf32>
    %847 = vector.broadcast %845 : vector<1x128xf32> to vector<8x128xf32>
    %848 = arith.mulf %846, %847 : vector<8x128xf32>
    %849 = arith.addf %843, %848 : vector<8x128xf32>
    %850 = vector.extract_strided_slice %823 {offsets = [0, 4], sizes = [8, 1], strides = [1, 1]} : vector<8x128xf32> to vector<8x1xf32>
    %c124 = arith.constant 124 : index
    %c0_178 = arith.constant 0 : index
    %851 = vector.load %arg2[%c124, %c0_178] : memref<128x128xf32, #tpu.memory_space<vmem>>, vector<1x128xf32>
    %852 = vector.broadcast %850 : vector<8x1xf32> to vector<8x128xf32>
    %853 = vector.broadcast %851 : vector<1x128xf32> to vector<8x128xf32>
    %854 = arith.mulf %852, %853 : vector<8x128xf32>
    %855 = arith.addf %849, %854 : vector<8x128xf32>
    %c0_179 = arith.constant 0 : index
    %c0_180 = arith.constant 0 : index
    %856 = vector.load %arg3[%c0_179, %c0_180] : memref<8x128xf32, #tpu.memory_space<vmem>>, vector<8x128xf32>
    tpu.vector_store %arg3[%c0_179, %c0_180], %855 {strides = array<i32>} : memref<8x128xf32, #tpu.memory_space<vmem>>, vector<8x128xf32>,
    return
  }
}

</mosaic_0001>

<bundles_post_ra>
// kernel: net_forward.1
= control target key start
LH: loop header
LB: loop body
LE: loop exit
PB: predicated region body
PF: predicated region fallthrough
CT: control target
= control target key end

     0   :  { %8 = vsyncpa [#allocation3], 0  ;;  %s7340_s12 = smov [#allocation2]   ;;  %s8431_s0 = inlined_call_operand.vmem [shape: f32[8,96], index: 0, kind: input, shape index: {}]   ;;  %s8432_s1 = inlined_call_operand.hbm [shape: f32[192,96], index: 1, kind: input, shape index: {}]   ;;  %s8433_s2 = inlined_call_operand.vmem [shape: f32[128,128], index: 2, kind: input, shape index: {}]   ;;  %s8434_s3 = inlined_call_operand.vmem [shape: f32[8,128], index: 3, kind: output, shape index: {}]  }
   0x1   :  { %s16_s13 = sshll.u32 %s7340_s12, 4  ;;  %s17_s13 = int_to_ptr.vmem [resolvable:$true] %s16_s13 }
   0x2   :  { %s7326_s14 = scalar_lea.vmem %s17_s13, 3072  ;;  %p7331_p1 = scmp.lt.s32.totalorder %s17_s13, %s17_s13 }
   0x3   :  { %p7327_p0 = scmp.ne.s32.totalorder %s17_s13, %s7326_s14  ;;  %p7332_p2 = scmp.lt.s32.totalorder %s7326_s14, %s7326_s14 }
   0x5   :  { %p7333_p3 = por %p7332_p2, %p7331_p1 }
   0x7   :  { %p7334_p4 = pnand %p7333_p3, %p7327_p0 }
   0x9   :  { %7337 = shalt.err (!%p7334_p4)
}
   0xa   :  { %s7341_s15 = smov 128   ;;  %s7342_s16 = smov 8  }
   0xb   :  { %22 = dma.hbm_to_vmem [thread:$0]  %s8432_s1, 3072, %s17_s13, [#allocation3], %s7341_s15, %s7341_s15, %s7342_s16  }
   0xc   :  { %7338 = dma.done.wait [#allocation3], 3072  }
   0xd   :  { %7339 = vsyncadd [#allocation3], 4294964224  ;;  %v7343_v0 = vmov 0.0   ;;  %vm7344_vm0 = vmmov 0   ;;  %v40_v1 = vld [vmem:[#allocation2 + $0x58] sm:$0xff]  ;;  %v39_v2 = vld [vmem:[#allocation2 + $0x50] sm:$0xff] }
   0xe   :  { %6509 = vmatprep.subr.mxu0 %v7343_v0  ;;  %6533 = vmatprep.mubr.msk.f32.mxu0 %vm7344_vm0, %v7343_v0  ;;  %v38_v3 = vld [vmem:[#allocation2 + $0x48] sm:$0xff]  ;;  %v37_v4 = vld [vmem:[#allocation2 + $0x40] sm:$0xff]  ;;  %v127_v5 = vld [vmem:[#allocation2 + $0xb8] sm:$0xff]  ;;  %vm41_vm1 = vcmask 785408   ;;  %vm286_vm2 = vcmask 1042432   ;;  %vm282_vm3 = vcmask 23552  }
   0xf   :  { %6536 = vmatprep.subr.mxu1 %v7343_v0  ;;  %6560 = vmatprep.mubr.msk.f32.mxu1 %vm7344_vm0, %v7343_v0  ;;  %v126_v6 = vld [vmem:[#allocation2 + $0xb0] sm:$0xff]  ;;  %v36_v7 = vld [vmem:[#allocation2 + $0x38] sm:$0xff]  ;;  %v125_v8 = vld [vmem:[#allocation2 + $0xa8] sm:$0xff]  ;;  %s7345_s4 = smov 64   ;;  %s7346_s5 = smov 32   ;;  %vm208_vm4 = vcmask 261120  }
  0x10   :  { %6510 = vmatpush3.msra.mxu0 %v40_v1  ;;  %6537 = vmatpush3.msra.mxu1 %v127_v5  ;;  %v35_v9 = vld [vmem:[#allocation2 + $0x30] sm:$0xff]  ;;  %v124_v10 = vld [vmem:[#allocation2 + $0xa0] sm:$0xff]  ;;  %v34_v11 = vld [vmem:[#allocation2 + $0x28] sm:$0xff]  ;;  %s7347_s6 = smov 125   ;;  %s7348_s7 = smov 122  }
  0x11   :  { %6511 = vmatprep.subr.mxu0 %v7343_v0  ;;  %6538 = vmatprep.subr.mxu1 %v7343_v0  ;;  %v33_v12 = vld [vmem:[#allocation2 + $0x20] sm:$0xff]  ;;  %v32_v13 = vld [vmem:[#allocation2 + $0x18] sm:$0xff]  ;;  %v31_v14 = vld [vmem:[#allocation2 + $0x10] sm:$0xff]  ;;  %s7349_s8 = smov 119   ;;  %s7350_s9 = smov 116  }
  0x12   :  { %6512 = vmatpush3.msra.mxu0 %v39_v2  ;;  %6539 = vmatpush3.msra.mxu1 %v126_v6  ;;  %v30_v15 = vld [vmem:[#allocation2 + $0x8] sm:$0xff]  ;;  %v29_v16 = vld [vmem:[#allocation2] sm:$0xff]  ;;  %v123_v18 = vld [vmem:[#allocation2 + $0x98] sm:$0xff]  ;;  %s7351_s10 = smov 113   ;;  %s7352_s11 = smov 110  }
  0x13   :  { %6513 = vmatprep.subr.mxu0 %v7343_v0  ;;  %6540 = vmatprep.subr.mxu1 %v7343_v0  ;;  %v28_v17 = vld [vmem:[%s8431_s0] sm:$0xff]  ;;  %v122_v19 = vld [vmem:[#allocation2 + $0x90] sm:$0xff]  ;;  %v121_v20 = vld [vmem:[#allocation2 + $0x88] sm:$0xff]  ;;  %s7353_s12 = smov 107   ;;  %s7354_s13 = smov 104  }
  0x14   :  { %6514 = vmatpush3.msra.mxu0 %v38_v3  ;;  %6541 = vmatpush3.msra.mxu1 %v125_v8  ;;  %v120_v21 = vld [vmem:[#allocation2 + $0x80] sm:$0xff]  ;;  %v119_v22 = vld [vmem:[#allocation2 + $0x78] sm:$0xff]  ;;  %v118_v23 = vld [vmem:[#allocation2 + $0x70] sm:$0xff]  ;;  %s7355_s14 = smov 101   ;;  %s7356_s15 = smov 98  }
  0x15   :  { %6515 = vmatprep.subr.mxu0 %v7343_v0  ;;  %6542 = vmatprep.subr.mxu1 %v7343_v0  ;;  %v117_v24 = vld [vmem:[#allocation2 + $0x68] sm:$0xff]  ;;  %v116_v25 = vld [vmem:[#allocation2 + $0x60] sm:$0xff]  ;;  %v7448_v29 = vld [vmem:[%s8433_s2 + $0x18] sm:$0xff]  ;;  %s7357_s16 = smov 95   ;;  %s7358_s17 = smov 92  }
  0x16   :  { %6516 = vmatpush3.msra.mxu0 %v37_v4  ;;  %6543 = vmatpush3.msra.mxu1 %v124_v10  ;;  %v7453_v30 = vld [vmem:[%s8433_s2 + $0x10] sm:$0xff]  ;;  %v7459_v31 = vld [vmem:[%s8433_s2 + $0x20] sm:$0x7]  ;;  %v7465_v32 = vld [vmem:[%s8433_s2 + $0x8] sm:$0xff]  ;;  %s7359_s26 = smov 89   ;;  %s7360_s29 = smov 86  }
  0x17   :  { %6517 = vmatprep.subr.mxu0 %v7343_v0  ;;  %6544 = vmatprep.subr.mxu1 %v7343_v0  ;;  %v7475_v33 = vld [vmem:[%s8433_s2] sm:$0xff]  ;;  %s7361_s30 = smov 83   ;;  %s7372_s24 = smov 50  }
  0x18   :  { %6518 = vmatpush3.msra.mxu0 %v36_v7  ;;  %6545 = vmatpush3.msra.mxu1 %v123_v18  ;;  %v7509_v39 = vld [vmem:[%s8433_s2 + $0x23] ss:$0 sm:$0xff]  ;;  %s7373_s27 = smov 47   ;;  %s7374_s28 = smov 44  }
  0x19   :  { %6519 = vmatprep.subr.mxu0 %v7343_v0  ;;  %6546 = vmatprep.subr.mxu1 %v7343_v0 }
  0x1a   :  { %6520 = vmatpush3.msra.mxu0 %v35_v9  ;;  %6547 = vmatpush3.msra.mxu1 %v122_v19 }
  0x1b   :  { %6521 = vmatprep.subr.mxu0 %v7343_v0  ;;  %6548 = vmatprep.subr.mxu1 %v7343_v0 }
  0x1c   :  { %6522 = vmatpush3.msra.mxu0 %v34_v11  ;;  %6549 = vmatpush3.msra.mxu1 %v121_v20 }
  0x1d   :  { %6523 = vmatprep.subr.mxu0 %v7343_v0  ;;  %6550 = vmatprep.subr.mxu1 %v7343_v0 }
  0x1e   :  { %6524 = vmatpush3.msra.mxu0 %v33_v12  ;;  %6551 = vmatpush3.msra.mxu1 %v120_v21 }
  0x1f   :  { %6525 = vmatprep.subr.mxu0 %v7343_v0  ;;  %6552 = vmatprep.subr.mxu1 %v7343_v0 }
  0x20   :  { %6526 = vmatpush3.msra.mxu0 %v32_v13  ;;  %6553 = vmatpush3.msra.mxu1 %v119_v22 }
  0x21   :  { %6527 = vmatprep.subr.mxu0 %v7343_v0  ;;  %6554 = vmatprep.subr.mxu1 %v7343_v0 }
  0x22   :  { %6528 = vmatpush3.msra.mxu0 %v31_v14  ;;  %6555 = vmatpush3.msra.mxu1 %v118_v23 }
  0x23   :  { %6529 = vmatprep.subr.mxu0 %v7343_v0  ;;  %6556 = vmatprep.subr.mxu1 %v7343_v0 }
  0x24   :  { %6530 = vmatpush3.msra.mxu0 %v30_v15  ;;  %6557 = vmatpush3.msra.mxu1 %v117_v24 }
  0x25   :  { %6531 = vmatprep.subr.mxu0 %v7343_v0  ;;  %6558 = vmatprep.subr.mxu1 %v7343_v0 }
  0x26   :  { %6532 = vmatpush3.msra.mxu0 %v29_v16  ;;  %6559 = vmatpush3.msra.mxu1 %v116_v25 }
  0x27   :  { %6534 = vmatmul.mubr.msk.f32.vlgmr.msra.gmra.mxu0 %vm41_vm1, %v28_v17  ;;  %6563 = vmatprep.subr.mxu0 %v7343_v0 }
  0x28   :  { %6571 = vmatprep.mubr.msk.f32.mxu0 %vm7344_vm0, %v7343_v0  ;;  %6574 = vmatprep.subr.mxu1 %v7343_v0 }
  0x29   :  { %6564 = vmatpush3.msra.mxu0 %v7448_v29 }
  0x2a   :  { %6565 = vmatprep.subr.mxu0 %v7343_v0 }
  0x2b   :  { %6566 = vmatpush3.msra.mxu0 %v7453_v30 }
  0x2c   :  { %6567 = vmatprep.subr.mxu0 %v7343_v0 }
  0x2d   :  { %6568 = vmatpush3.msra.mxu0 %v7465_v32 }
  0x2e   :  { %6569 = vmatprep.subr.mxu0 %v7343_v0 }
  0x2f   :  { %6570 = vmatpush3.msra.mxu0 %v7475_v33 }
  0x30   :  { %6572 = vmatmul.mubr.f32.vlgmr.msra.gmra.mxu0 %v7343_v0  ;;  %6595 = vmatprep.subr.mxu0 %v7343_v0 }
  0x31   :  { %6596 = vmatpush3.msra.mxu0 %v7448_v29  ;;  %6603 = vmatprep.mubr.msk.f32.mxu0 %vm7344_vm0, %v7343_v0 }
  0x32   :  { %6597 = vmatprep.subr.mxu0 %v7343_v0 }
  0x33   :  { %6598 = vmatpush3.msra.mxu0 %v7453_v30 }
  0x34   :  { %6599 = vmatprep.subr.mxu0 %v7343_v0 }
  0x35   :  { %6600 = vmatpush3.msra.mxu0 %v7465_v32 }
  0x36   :  { %6601 = vmatprep.subr.mxu0 %v7343_v0 }
  0x37   :  { %6602 = vmatpush3.msra.mxu0 %v7475_v33 }
  0x38   :  { %6622 = vmatprep.subr.mxu0 %v7343_v0 }
  0xe7   :  { %v111_v26 = vpop.f32.mrf.mxu0 }
  0xe8   :  { %7160 = vtanh.f32 %v111_v26 }
  0xe9   :  { %v6535_v27 = vpop.f32.mrf.mxu0 }
  0xf0   :  { %v278_v37 = vpop.f32.mrf.mxu0 }
  0xf2   :  { %v6573_v38 = vpop.f32.mrf.mxu0 }
  0xf5   :  { %v7161_v28 = vpop.eup %7160 }
  0xf6   :  { %6561 = vmatmul.mubr.msk.f32.vlgmr.msra.gmra.mxu1 %vm41_vm1, %v7161_v28 }
  0xf7   :  { %6576 = vmatprep.mubr.msk.f32.mxu1 %vm7344_vm0, %v7343_v0  ;;  %6575 = vmatpush3.msk.msra.mxu1 %vm286_vm2, %v7459_v31 }
  0xf8   :  { %6579 = vmatprep.subr.mxu1 %v7343_v0 }
 0x1b6   :  { %v197_v34 = vpop.f32.mrf.mxu1 }
 0x1b7   :  { %7162 = vtanh.f32 %v197_v34 }
 0x1b8   :  { %v6562_v35 = vpop.f32.mrf.mxu1 }
 0x1c4   :  { %v7492_v36 = vpop.eup %7162 }
 0x1c5   :  { %6577 = vmatmul.mubr.msk.f32.vlgmr.msra.gmra.mxu1 %vm282_vm3, %v7492_v36 }
 0x1c6   :  { %6580 = vmatpush3.msra.mxu1 %v7448_v29  ;;  %6587 = vmatprep.mubr.msk.f32.mxu1 %vm7344_vm0, %v7343_v0 }
 0x1c7   :  { %6581 = vmatprep.subr.mxu1 %v7343_v0 }
 0x1c8   :  { %6582 = vmatpush3.msra.mxu1 %v7453_v30 }
 0x1c9   :  { %6583 = vmatprep.subr.mxu1 %v7343_v0 }
 0x1ca   :  { %6584 = vmatpush3.msra.mxu1 %v7465_v32 }
 0x1cb   :  { %6585 = vmatprep.subr.mxu1 %v7343_v0 }
 0x1cc   :  { %6586 = vmatpush3.msra.mxu1 %v7475_v33 }
 0x1cd   :  { %6590 = vmatprep.subr.mxu1 %v7343_v0 }
 0x285   :  { %v356_v40 = vpop.f32.mrf.mxu1 }
 0x286   :  { %v357_v41 = vadd.f32 %v356_v40, %v278_v37 }
 0x287   :  { %v6578_v42 = vpop.f32.mrf.mxu1 }
 0x288   :  { %v364_v43 = vadd.f32 %v7509_v39, %v357_v41 }
 0x28a   :  { %7164 = vtanh.f32 %v364_v43 }
 0x297   :  { %v7165_v44 = vpop.eup %7164 }
 0x298   :  { %370 = vrot.lane.b32.xlu0 %v7165_v44, %s7345_s4  ;;  %v366_v45 = vmul.f32 0.5, %v7165_v44 }
 0x29a   :  { %v367_v46 = vadd.f32 0.5, %v366_v45 }
 0x29c   :  { %v368_v49 = vmul.f32 0.0, %v367_v46 }
 0x30a   :  { %v371_v47 = vpop.permute.xlu0 %370 }
 0x30b   :  { %v373_v48 = vmul.f32 %v371_v47, %v367_v46 }
 0x30d   :  { %375 = vrot.lane.b32.xlu0 %v373_v48, %s7346_s5 }
 0x311   :  { %460 = vrot.lane.b32.xlu0 %v7492_v36, %s7347_s6  ;;  %s7362_s6 = smov 80  }
 0x37f   :  { %v376_v50 = vpop.permute.xlu0 %375 }
 0x380   :  { %v378_v51 = vadd.f32 %v376_v50, %v368_v49 }
 0x382   :  { %7166 = vtanh.f32 %v378_v51 }
 0x383   :  { %v461_v56 = vpop.permute.xlu0 %460 }
 0x38f   :  { %v7167_v52 = vpop.eup %7166 }
 0x390   :  { %381 = vrot.lane.b32.xlu1 %v7167_v52, %s7345_s4 }
 0x402   :  { %v382_v53 = vpop.permute.xlu1 %381 }
 0x403   :  { %v384_v54 = vmul.f32 %v382_v53, %v367_v46 }
 0x405   :  { %386 = vrot.lane.b32.xlu1 %v384_v54, %s7346_s5 }
 0x477   :  { %v387_v55 = vpop.permute.xlu1 %386 }
 0x478   :  { %6588 = vmatmul.mubr.msk.f32.vlgmr.msra.gmra.mxu1 %vm208_vm4, %v387_v55 }
 0x479   :  { %6591 = vmatpush3.msk.msra.mxu1 %vm286_vm2, %v7459_v31  ;;  %6592 = vmatprep.mubr.msk.f32.mxu1 %vm7344_vm0, %v7343_v0 }
 0x47a   :  { %6606 = vmatprep.subr.mxu1 %v7343_v0 }
 0x47c   :  { %6593 = vmatmul.mubr.msk.f32.vlgmr.msra.gmra.mxu1 %vm282_vm3, %v461_v56 }
 0x47d   :  { %6607 = vmatpush3.msk.msra.mxu1 %vm286_vm2, %v7459_v31  ;;  %6608 = vmatprep.mubr.msk.f32.mxu1 %vm7344_vm0, %v7343_v0 }
 0x47e   :  { %6611 = vmatprep.subr.mxu1 %v7343_v0 }
 0x538   :  { %v456_v57 = vpop.f32.mrf.mxu1 }
 0x53a   :  { %v6589_v58 = vpop.f32.mrf.mxu1 }
 0x53c   :  { %v530_v59 = vpop.f32.mrf.mxu1 }
 0x53d   :  { %v531_v60 = vadd.f32 %v530_v59, %v456_v57 }
 0x53e   :  { %v6594_v61 = vpop.f32.mrf.mxu1 }
 0x53f   :  { %v534_v62 = vadd.f32 %v7509_v39, %v531_v60 }
 0x541   :  { %7168 = vtanh.f32 %v534_v62 }
 0x54e   :  { %v7169_v63 = vpop.eup %7168 }
 0x54f   :  { %540 = vrot.lane.b32.xlu1 %v7169_v63, %s7345_s4  ;;  %v536_v1 = vmul.f32 0.5, %v7169_v63 }
 0x551   :  { %v537_v2 = vadd.f32 0.5, %v536_v1 }
 0x553   :  { %v538_v5 = vmul.f32 %v537_v2, %v378_v51 }
 0x5c1   :  { %v541_v3 = vpop.permute.xlu1 %540 }
 0x5c2   :  { %v543_v4 = vmul.f32 %v541_v3, %v537_v2 }
 0x5c4   :  { %545 = vrot.lane.b32.xlu0 %v543_v4, %s7346_s5 }
 0x636   :  { %v546_v6 = vpop.permute.xlu0 %545 }
 0x637   :  { %v548_v7 = vadd.f32 %v546_v6, %v538_v5 }
 0x639   :  { %7170 = vtanh.f32 %v548_v7 }
 0x646   :  { %v7171_v8 = vpop.eup %7170 }
 0x647   :  { %551 = vrot.lane.b32.xlu1 %v7171_v8, %s7345_s4 }
 0x64b   :  { %630 = vrot.lane.b32.xlu1 %v7492_v36, %s7348_s7  ;;  %s7363_s7 = smov 77  }
 0x6b9   :  { %v552_v9 = vpop.permute.xlu1 %551 }
 0x6ba   :  { %v554_v10 = vmul.f32 %v552_v9, %v537_v2 }
 0x6bc   :  { %556 = vrot.lane.b32.xlu0 %v554_v10, %s7346_s5 }
 0x6bd   :  { %v631_v11 = vpop.permute.xlu1 %630 }
 0x6be   :  { %6609 = vmatmul.mubr.msk.f32.vlgmr.msra.gmra.mxu1 %vm282_vm3, %v631_v11 }
 0x6bf   :  { %6612 = vmatpush3.msra.mxu1 %v7448_v29  ;;  %6619 = vmatprep.mubr.msk.f32.mxu1 %vm7344_vm0, %v7343_v0 }
 0x6c0   :  { %6613 = vmatprep.subr.mxu1 %v7343_v0 }
 0x6c1   :  { %6614 = vmatpush3.msra.mxu1 %v7453_v30 }
 0x6c2   :  { %6615 = vmatprep.subr.mxu1 %v7343_v0 }
 0x6c3   :  { %6616 = vmatpush3.msra.mxu1 %v7465_v32 }
 0x6c4   :  { %6617 = vmatprep.subr.mxu1 %v7343_v0 }
 0x6c5   :  { %6618 = vmatpush3.msra.mxu1 %v7475_v33 }
 0x6c6   :  { %6638 = vmatprep.subr.mxu1 %v7343_v0 }
 0x72e   :  { %v557_v12 = vpop.permute.xlu0 %556 }
 0x72f   :  { %6604 = vmatmul.mubr.msk.f32.vlgmr.msra.gmra.mxu0 %vm208_vm4, %v557_v12 }
 0x730   :  { %6623 = vmatpush3.msk.msra.mxu0 %vm286_vm2, %v7459_v31  ;;  %6624 = vmatprep.mubr.msk.f32.mxu0 %vm7344_vm0, %v7343_v0 }
 0x731   :  { %6627 = vmatprep.subr.mxu0 %v7343_v0 }
 0x77e   :  { %v700_v13 = vpop.f32.mrf.mxu1 }
 0x780   :  { %v6610_v14 = vpop.f32.mrf.mxu1 }
 0x7ef   :  { %v626_v15 = vpop.f32.mrf.mxu0 }
 0x7f0   :  { %v701_v16 = vadd.f32 %v700_v13, %v626_v15 }
 0x7f1   :  { %v6605_v17 = vpop.f32.mrf.mxu0 }
 0x7f2   :  { %v704_v18 = vadd.f32 %v7509_v39, %v701_v16 }
 0x7f4   :  { %7172 = vtanh.f32 %v704_v18 }
 0x801   :  { %v7173_v19 = vpop.eup %7172 }
 0x802   :  { %710 = vrot.lane.b32.xlu0 %v7173_v19, %s7345_s4  ;;  %v706_v20 = vmul.f32 0.5, %v7173_v19 }
 0x804   :  { %v707_v21 = vadd.f32 0.5, %v706_v20 }
 0x806   :  { %v708_v24 = vmul.f32 %v707_v21, %v548_v7 }
 0x874   :  { %v711_v22 = vpop.permute.xlu0 %710 }
 0x875   :  { %v713_v23 = vmul.f32 %v711_v22, %v707_v21 }
 0x877   :  { %715 = vrot.lane.b32.xlu1 %v713_v23, %s7346_s5 }
 0x8e9   :  { %v716_v25 = vpop.permute.xlu1 %715 }
 0x8ea   :  { %v718_v26 = vadd.f32 %v716_v25, %v708_v24 }
 0x8ec   :  { %7174 = vtanh.f32 %v718_v26 }
 0x8f9   :  { %v7175_v27 = vpop.eup %7174 }
 0x8fa   :  { %721 = vrot.lane.b32.xlu0 %v7175_v27, %s7345_s4 }
 0x8fe   :  { %800 = vrot.lane.b32.xlu0 %v7492_v36, %s7349_s8  ;;  %s7364_s8 = smov 74  }
 0x96c   :  { %v722_v28 = vpop.permute.xlu0 %721 }
 0x96d   :  { %v724_v34 = vmul.f32 %v722_v28, %v707_v21 }
 0x96f   :  { %726 = vrot.lane.b32.xlu1 %v724_v34, %s7346_s5 }
 0x970   :  { %v801_v35 = vpop.permute.xlu0 %800 }
 0x971   :  { %6625 = vmatmul.mubr.msk.f32.vlgmr.msra.gmra.mxu0 %vm282_vm3, %v801_v35 }
 0x972   :  { %6628 = vmatpush3.msra.mxu0 %v7448_v29  ;;  %6635 = vmatprep.mubr.msk.f32.mxu0 %vm7344_vm0, %v7343_v0 }
 0x973   :  { %6629 = vmatprep.subr.mxu0 %v7343_v0 }
 0x974   :  { %6630 = vmatpush3.msra.mxu0 %v7453_v30 }
 0x975   :  { %6631 = vmatprep.subr.mxu0 %v7343_v0 }
 0x976   :  { %6632 = vmatpush3.msra.mxu0 %v7465_v32 }
 0x977   :  { %6633 = vmatprep.subr.mxu0 %v7343_v0 }
 0x978   :  { %6634 = vmatpush3.msra.mxu0 %v7475_v33 }
 0x979   :  { %6654 = vmatprep.subr.mxu0 %v7343_v0 }
 0x9e1   :  { %v727_v37 = vpop.permute.xlu1 %726 }
 0x9e2   :  { %6620 = vmatmul.mubr.msk.f32.vlgmr.msra.gmra.mxu1 %vm208_vm4, %v727_v37 }
 0x9e3   :  { %6639 = vmatpush3.msk.msra.mxu1 %vm286_vm2, %v7459_v31  ;;  %6640 = vmatprep.mubr.msk.f32.mxu1 %vm7344_vm0, %v7343_v0 }
 0x9e4   :  { %6643 = vmatprep.subr.mxu1 %v7343_v0 }
 0xa31   :  { %v870_v38 = vpop.f32.mrf.mxu0 }
 0xa33   :  { %v6626_v40 = vpop.f32.mrf.mxu0 }
 0xaa2   :  { %v796_v41 = vpop.f32.mrf.mxu1 }
 0xaa3   :  { %v871_v42 = vadd.f32 %v870_v38, %v796_v41 }
 0xaa4   :  { %v6621_v43 = vpop.f32.mrf.mxu1 }
 0xaa5   :  { %v874_v44 = vadd.f32 %v7509_v39, %v871_v42 }
 0xaa7   :  { %7176 = vtanh.f32 %v874_v44 }
 0xab4   :  { %v7177_v45 = vpop.eup %7176 }
 0xab5   :  { %880 = vrot.lane.b32.xlu1 %v7177_v45, %s7345_s4  ;;  %v876_v46 = vmul.f32 0.5, %v7177_v45 }
 0xab7   :  { %v877_v47 = vadd.f32 0.5, %v876_v46 }
 0xab9   :  { %v878_v50 = vmul.f32 %v877_v47, %v718_v26 }
 0xb27   :  { %v881_v48 = vpop.permute.xlu1 %880 }
 0xb28   :  { %v883_v49 = vmul.f32 %v881_v48, %v877_v47 }
 0xb2a   :  { %885 = vrot.lane.b32.xlu0 %v883_v49, %s7346_s5 }
 0xb9c   :  { %v886_v51 = vpop.permute.xlu0 %885 }
 0xb9d   :  { %v888_v52 = vadd.f32 %v886_v51, %v878_v50 }
 0xb9f   :  { %7178 = vtanh.f32 %v888_v52 }
 0xbac   :  { %v7179_v53 = vpop.eup %7178 }
 0xbad   :  { %891 = vrot.lane.b32.xlu1 %v7179_v53, %s7345_s4 }
 0xbb1   :  { %970 = vrot.lane.b32.xlu1 %v7492_v36, %s7350_s9  ;;  %s7365_s9 = smov 71  }
 0xc1f   :  { %v892_v54 = vpop.permute.xlu1 %891 }
 0xc20   :  { %v894_v55 = vmul.f32 %v892_v54, %v877_v47 }
 0xc22   :  { %896 = vrot.lane.b32.xlu0 %v894_v55, %s7346_s5 }
 0xc23   :  { %v971_v56 = vpop.permute.xlu1 %970 }
 0xc24   :  { %6641 = vmatmul.mubr.msk.f32.vlgmr.msra.gmra.mxu1 %vm282_vm3, %v971_v56 }
 0xc25   :  { %6644 = vmatpush3.msra.mxu1 %v7448_v29  ;;  %6651 = vmatprep.mubr.msk.f32.mxu1 %vm7344_vm0, %v7343_v0 }
 0xc26   :  { %6645 = vmatprep.subr.mxu1 %v7343_v0 }
 0xc27   :  { %6646 = vmatpush3.msra.mxu1 %v7453_v30 }
 0xc28   :  { %6647 = vmatprep.subr.mxu1 %v7343_v0 }
 0xc29   :  { %6648 = vmatpush3.msra.mxu1 %v7465_v32 }
 0xc2a   :  { %6649 = vmatprep.subr.mxu1 %v7343_v0 }
 0xc2b   :  { %6650 = vmatpush3.msra.mxu1 %v7475_v33 }
 0xc2c   :  { %6670 = vmatprep.subr.mxu1 %v7343_v0 }
 0xc94   :  { %v897_v57 = vpop.permute.xlu0 %896 }
 0xc95   :  { %6636 = vmatmul.mubr.msk.f32.vlgmr.msra.gmra.mxu0 %vm208_vm4, %v897_v57 }
 0xc96   :  { %6655 = vmatpush3.msk.msra.mxu0 %vm286_vm2, %v7459_v31  ;;  %6656 = vmatprep.mubr.msk.f32.mxu0 %vm7344_vm0, %v7343_v0 }
 0xc97   :  { %6659 = vmatprep.subr.mxu0 %v7343_v0 }
 0xce4   :  { %v1040_v58 = vpop.f32.mrf.mxu1 }
 0xce6   :  { %v6642_v59 = vpop.f32.mrf.mxu1 }
 0xd55   :  { %v966_v60 = vpop.f32.mrf.mxu0 }
 0xd56   :  { %v1041_v61 = vadd.f32 %v1040_v58, %v966_v60 }
 0xd57   :  { %v6637_v62 = vpop.f32.mrf.mxu0 }
 0xd58   :  { %v1044_v63 = vadd.f32 %v7509_v39, %v1041_v61 }
 0xd5a   :  { %7180 = vtanh.f32 %v1044_v63 }
 0xd67   :  { %v7181_v1 = vpop.eup %7180 }
 0xd68   :  { %1050 = vrot.lane.b32.xlu0 %v7181_v1, %s7345_s4  ;;  %v1046_v2 = vmul.f32 0.5, %v7181_v1 }
 0xd6a   :  { %v1047_v3 = vadd.f32 0.5, %v1046_v2 }
 0xd6c   :  { %v1048_v6 = vmul.f32 %v1047_v3, %v888_v52 }
 0xdda   :  { %v1051_v4 = vpop.permute.xlu0 %1050 }
 0xddb   :  { %v1053_v5 = vmul.f32 %v1051_v4, %v1047_v3 }
 0xddd   :  { %1055 = vrot.lane.b32.xlu1 %v1053_v5, %s7346_s5 }
 0xe4f   :  { %v1056_v7 = vpop.permute.xlu1 %1055 }
 0xe50   :  { %v1058_v8 = vadd.f32 %v1056_v7, %v1048_v6 }
 0xe52   :  { %7182 = vtanh.f32 %v1058_v8 }
 0xe5f   :  { %v7183_v9 = vpop.eup %7182 }
 0xe60   :  { %1061 = vrot.lane.b32.xlu0 %v7183_v9, %s7345_s4 }
 0xe64   :  { %1140 = vrot.lane.b32.xlu0 %v7492_v36, %s7351_s10  ;;  %s7366_s10 = smov 68  }
 0xed2   :  { %v1062_v10 = vpop.permute.xlu0 %1061 }
 0xed3   :  { %v1064_v11 = vmul.f32 %v1062_v10, %v1047_v3 }
 0xed5   :  { %1066 = vrot.lane.b32.xlu1 %v1064_v11, %s7346_s5 }
 0xed6   :  { %v1141_v12 = vpop.permute.xlu0 %1140 }
 0xed7   :  { %6657 = vmatmul.mubr.msk.f32.vlgmr.msra.gmra.mxu0 %vm282_vm3, %v1141_v12 }
 0xed8   :  { %6660 = vmatpush3.msra.mxu0 %v7448_v29  ;;  %6667 = vmatprep.mubr.msk.f32.mxu0 %vm7344_vm0, %v7343_v0 }
 0xed9   :  { %6661 = vmatprep.subr.mxu0 %v7343_v0 }
 0xeda   :  { %6662 = vmatpush3.msra.mxu0 %v7453_v30 }
 0xedb   :  { %6663 = vmatprep.subr.mxu0 %v7343_v0 }
 0xedc   :  { %6664 = vmatpush3.msra.mxu0 %v7465_v32 }
 0xedd   :  { %6665 = vmatprep.subr.mxu0 %v7343_v0 }
 0xede   :  { %6666 = vmatpush3.msra.mxu0 %v7475_v33 }
 0xedf   :  { %6686 = vmatprep.subr.mxu0 %v7343_v0 }
 0xf47   :  { %v1067_v13 = vpop.permute.xlu1 %1066 }
 0xf48   :  { %6652 = vmatmul.mubr.msk.f32.vlgmr.msra.gmra.mxu1 %vm208_vm4, %v1067_v13 }
 0xf49   :  { %6671 = vmatpush3.msk.msra.mxu1 %vm286_vm2, %v7459_v31  ;;  %6672 = vmatprep.mubr.msk.f32.mxu1 %vm7344_vm0, %v7343_v0 }
 0xf4a   :  { %6675 = vmatprep.subr.mxu1 %v7343_v0 }
 0xf97   :  { %v1210_v14 = vpop.f32.mrf.mxu0 }
 0xf99   :  { %v6658_v15 = vpop.f32.mrf.mxu0 }
0x1008   :  { %v1136_v16 = vpop.f32.mrf.mxu1 }
0x1009   :  { %v1211_v17 = vadd.f32 %v1210_v14, %v1136_v16 }
0x100a   :  { %v6653_v18 = vpop.f32.mrf.mxu1 }
0x100b   :  { %v1214_v19 = vadd.f32 %v7509_v39, %v1211_v17 }
0x100d   :  { %7184 = vtanh.f32 %v1214_v19 }
0x101a   :  { %v7185_v20 = vpop.eup %7184 }
0x101b   :  { %1220 = vrot.lane.b32.xlu1 %v7185_v20, %s7345_s4  ;;  %v1216_v21 = vmul.f32 0.5, %v7185_v20 }
0x101d   :  { %v1217_v22 = vadd.f32 0.5, %v1216_v21 }
0x101f   :  { %v1218_v25 = vmul.f32 %v1217_v22, %v1058_v8 }
0x108d   :  { %v1221_v23 = vpop.permute.xlu1 %1220 }
0x108e   :  { %v1223_v24 = vmul.f32 %v1221_v23, %v1217_v22 }
0x1090   :  { %1225 = vrot.lane.b32.xlu0 %v1223_v24, %s7346_s5 }
0x1102   :  { %v1226_v26 = vpop.permute.xlu0 %1225 }
0x1103   :  { %v1228_v27 = vadd.f32 %v1226_v26, %v1218_v25 }
0x1105   :  { %7186 = vtanh.f32 %v1228_v27 }
0x1112   :  { %v7187_v28 = vpop.eup %7186 }
0x1113   :  { %1231 = vrot.lane.b32.xlu1 %v7187_v28, %s7345_s4 }
0x1117   :  { %1310 = vrot.lane.b32.xlu1 %v7492_v36, %s7352_s11  ;;  %s7367_s11 = smov 65  }
0x1185   :  { %v1232_v34 = vpop.permute.xlu1 %1231 }
0x1186   :  { %v1234_v35 = vmul.f32 %v1232_v34, %v1217_v22 }
0x1188   :  { %1236 = vrot.lane.b32.xlu0 %v1234_v35, %s7346_s5 }
0x1189   :  { %v1311_v37 = vpop.permute.xlu1 %1310 }
0x118a   :  { %6673 = vmatmul.mubr.msk.f32.vlgmr.msra.gmra.mxu1 %vm282_vm3, %v1311_v37 }
0x118b   :  { %6676 = vmatpush3.msra.mxu1 %v7448_v29  ;;  %6683 = vmatprep.mubr.msk.f32.mxu1 %vm7344_vm0, %v7343_v0 }
0x118c   :  { %6677 = vmatprep.subr.mxu1 %v7343_v0 }
0x118d   :  { %6678 = vmatpush3.msra.mxu1 %v7453_v30 }
0x118e   :  { %6679 = vmatprep.subr.mxu1 %v7343_v0 }
0x118f   :  { %6680 = vmatpush3.msra.mxu1 %v7465_v32 }
0x1190   :  { %6681 = vmatprep.subr.mxu1 %v7343_v0 }
0x1191   :  { %6682 = vmatpush3.msra.mxu1 %v7475_v33 }
0x1192   :  { %6702 = vmatprep.subr.mxu1 %v7343_v0 }
0x11fa   :  { %v1237_v38 = vpop.permute.xlu0 %1236 }
0x11fb   :  { %6668 = vmatmul.mubr.msk.f32.vlgmr.msra.gmra.mxu0 %vm208_vm4, %v1237_v38 }
0x11fc   :  { %6687 = vmatpush3.msk.msra.mxu0 %vm286_vm2, %v7459_v31  ;;  %6688 = vmatprep.mubr.msk.f32.mxu0 %vm7344_vm0, %v7343_v0 }
0x11fd   :  { %6691 = vmatprep.subr.mxu0 %v7343_v0 }
0x124a   :  { %v1380_v40 = vpop.f32.mrf.mxu1 }
0x124c   :  { %v6674_v41 = vpop.f32.mrf.mxu1 }
0x12bb   :  { %v1306_v42 = vpop.f32.mrf.mxu0 }
0x12bc   :  { %v1381_v43 = vadd.f32 %v1380_v40, %v1306_v42 }
0x12bd   :  { %v6669_v44 = vpop.f32.mrf.mxu0 }
0x12be   :  { %v1384_v45 = vadd.f32 %v7509_v39, %v1381_v43 }
0x12c0   :  { %7188 = vtanh.f32 %v1384_v45 }
0x12cd   :  { %v7189_v46 = vpop.eup %7188 }
0x12ce   :  { %1390 = vrot.lane.b32.xlu0 %v7189_v46, %s7345_s4  ;;  %v1386_v47 = vmul.f32 0.5, %v7189_v46 }
0x12d0   :  { %v1387_v48 = vadd.f32 0.5, %v1386_v47 }
0x12d2   :  { %v1388_v51 = vmul.f32 %v1387_v48, %v1228_v27 }
0x1340   :  { %v1391_v49 = vpop.permute.xlu0 %1390 }
0x1341   :  { %v1393_v50 = vmul.f32 %v1391_v49, %v1387_v48 }
0x1343   :  { %1395 = vrot.lane.b32.xlu1 %v1393_v50, %s7346_s5 }
0x13b5   :  { %v1396_v52 = vpop.permute.xlu1 %1395 }
0x13b6   :  { %v1398_v53 = vadd.f32 %v1396_v52, %v1388_v51 }
0x13b8   :  { %7190 = vtanh.f32 %v1398_v53 }
0x13c5   :  { %v7191_v54 = vpop.eup %7190 }
0x13c6   :  { %1401 = vrot.lane.b32.xlu0 %v7191_v54, %s7345_s4 }
0x13ca   :  { %1480 = vrot.lane.b32.xlu0 %v7492_v36, %s7353_s12  ;;  %s7368_s12 = smov 62  }
0x1438   :  { %v1402_v55 = vpop.permute.xlu0 %1401 }
0x1439   :  { %v1404_v56 = vmul.f32 %v1402_v55, %v1387_v48 }
0x143b   :  { %1406 = vrot.lane.b32.xlu1 %v1404_v56, %s7346_s5 }
0x143c   :  { %v1481_v57 = vpop.permute.xlu0 %1480 }
0x143d   :  { %6689 = vmatmul.mubr.msk.f32.vlgmr.msra.gmra.mxu0 %vm282_vm3, %v1481_v57 }
0x143e   :  { %6692 = vmatpush3.msra.mxu0 %v7448_v29  ;;  %6699 = vmatprep.mubr.msk.f32.mxu0 %vm7344_vm0, %v7343_v0 }
0x143f   :  { %6693 = vmatprep.subr.mxu0 %v7343_v0 }
0x1440   :  { %6694 = vmatpush3.msra.mxu0 %v7453_v30 }
0x1441   :  { %6695 = vmatprep.subr.mxu0 %v7343_v0 }
0x1442   :  { %6696 = vmatpush3.msra.mxu0 %v7465_v32 }
0x1443   :  { %6697 = vmatprep.subr.mxu0 %v7343_v0 }
0x1444   :  { %6698 = vmatpush3.msra.mxu0 %v7475_v33 }
0x1445   :  { %6718 = vmatprep.subr.mxu0 %v7343_v0 }
0x14ad   :  { %v1407_v58 = vpop.permute.xlu1 %1406 }
0x14ae   :  { %6684 = vmatmul.mubr.msk.f32.vlgmr.msra.gmra.mxu1 %vm208_vm4, %v1407_v58 }
0x14af   :  { %6703 = vmatpush3.msk.msra.mxu1 %vm286_vm2, %v7459_v31  ;;  %6704 = vmatprep.mubr.msk.f32.mxu1 %vm7344_vm0, %v7343_v0 }
0x14b0   :  { %6707 = vmatprep.subr.mxu1 %v7343_v0 }
0x14fd   :  { %v1550_v59 = vpop.f32.mrf.mxu0 }
0x14ff   :  { %v6690_v60 = vpop.f32.mrf.mxu0 }
0x156e   :  { %v1476_v61 = vpop.f32.mrf.mxu1 }
0x156f   :  { %v1551_v62 = vadd.f32 %v1550_v59, %v1476_v61 }
0x1570   :  { %v6685_v63 = vpop.f32.mrf.mxu1 }
0x1571   :  { %v1554_v1 = vadd.f32 %v7509_v39, %v1551_v62 }
0x1573   :  { %7192 = vtanh.f32 %v1554_v1 }
0x1580   :  { %v7193_v2 = vpop.eup %7192 }
0x1581   :  { %1560 = vrot.lane.b32.xlu1 %v7193_v2, %s7345_s4  ;;  %v1556_v3 = vmul.f32 0.5, %v7193_v2 }
0x1583   :  { %v1557_v4 = vadd.f32 0.5, %v1556_v3 }
0x1585   :  { %v1558_v7 = vmul.f32 %v1557_v4, %v1398_v53 }
0x15f3   :  { %v1561_v5 = vpop.permute.xlu1 %1560 }
0x15f4   :  { %v1563_v6 = vmul.f32 %v1561_v5, %v1557_v4 }
0x15f6   :  { %1565 = vrot.lane.b32.xlu0 %v1563_v6, %s7346_s5 }
0x1668   :  { %v1566_v8 = vpop.permute.xlu0 %1565 }
0x1669   :  { %v1568_v9 = vadd.f32 %v1566_v8, %v1558_v7 }
0x166b   :  { %7194 = vtanh.f32 %v1568_v9 }
0x1678   :  { %v7195_v10 = vpop.eup %7194 }
0x1679   :  { %1571 = vrot.lane.b32.xlu1 %v7195_v10, %s7345_s4 }
0x167d   :  { %1650 = vrot.lane.b32.xlu1 %v7492_v36, %s7354_s13  ;;  %s7369_s13 = smov 59  }
0x16eb   :  { %v1572_v11 = vpop.permute.xlu1 %1571 }
0x16ec   :  { %v1574_v12 = vmul.f32 %v1572_v11, %v1557_v4 }
0x16ee   :  { %1576 = vrot.lane.b32.xlu0 %v1574_v12, %s7346_s5 }
0x16ef   :  { %v1651_v13 = vpop.permute.xlu1 %1650 }
0x16f0   :  { %6705 = vmatmul.mubr.msk.f32.vlgmr.msra.gmra.mxu1 %vm282_vm3, %v1651_v13 }
0x16f1   :  { %6708 = vmatpush3.msra.mxu1 %v7448_v29  ;;  %6715 = vmatprep.mubr.msk.f32.mxu1 %vm7344_vm0, %v7343_v0 }
0x16f2   :  { %6709 = vmatprep.subr.mxu1 %v7343_v0 }
0x16f3   :  { %6710 = vmatpush3.msra.mxu1 %v7453_v30 }
0x16f4   :  { %6711 = vmatprep.subr.mxu1 %v7343_v0 }
0x16f5   :  { %6712 = vmatpush3.msra.mxu1 %v7465_v32 }
0x16f6   :  { %6713 = vmatprep.subr.mxu1 %v7343_v0 }
0x16f7   :  { %6714 = vmatpush3.msra.mxu1 %v7475_v33 }
0x16f8   :  { %6734 = vmatprep.subr.mxu1 %v7343_v0 }
0x1760   :  { %v1577_v14 = vpop.permute.xlu0 %1576 }
0x1761   :  { %6700 = vmatmul.mubr.msk.f32.vlgmr.msra.gmra.mxu0 %vm208_vm4, %v1577_v14 }
0x1762   :  { %6719 = vmatpush3.msk.msra.mxu0 %vm286_vm2, %v7459_v31  ;;  %6720 = vmatprep.mubr.msk.f32.mxu0 %vm7344_vm0, %v7343_v0 }
0x1763   :  { %6723 = vmatprep.subr.mxu0 %v7343_v0 }
0x17b0   :  { %v1720_v15 = vpop.f32.mrf.mxu1 }
0x17b2   :  { %v6706_v16 = vpop.f32.mrf.mxu1 }
0x1821   :  { %v1646_v17 = vpop.f32.mrf.mxu0 }
0x1822   :  { %v1721_v18 = vadd.f32 %v1720_v15, %v1646_v17 }
0x1823   :  { %v6701_v19 = vpop.f32.mrf.mxu0 }
0x1824   :  { %v1724_v20 = vadd.f32 %v7509_v39, %v1721_v18 }
0x1826   :  { %7196 = vtanh.f32 %v1724_v20 }
0x1833   :  { %v7197_v21 = vpop.eup %7196 }
0x1834   :  { %1730 = vrot.lane.b32.xlu0 %v7197_v21, %s7345_s4  ;;  %v1726_v22 = vmul.f32 0.5, %v7197_v21 }
0x1836   :  { %v1727_v23 = vadd.f32 0.5, %v1726_v22 }
0x1838   :  { %v1728_v26 = vmul.f32 %v1727_v23, %v1568_v9 }
0x18a6   :  { %v1731_v24 = vpop.permute.xlu0 %1730 }
0x18a7   :  { %v1733_v25 = vmul.f32 %v1731_v24, %v1727_v23 }
0x18a9   :  { %1735 = vrot.lane.b32.xlu1 %v1733_v25, %s7346_s5 }
0x191b   :  { %v1736_v27 = vpop.permute.xlu1 %1735 }
0x191c   :  { %v1738_v28 = vadd.f32 %v1736_v27, %v1728_v26 }
0x191e   :  { %7198 = vtanh.f32 %v1738_v28 }
0x192b   :  { %v7199_v34 = vpop.eup %7198 }
0x192c   :  { %1741 = vrot.lane.b32.xlu0 %v7199_v34, %s7345_s4  ;;  %v7769_v34 = vld [vmem:[%s8433_s2 + $0x18] sm:$0xff] }
0x1930   :  { %1820 = vrot.lane.b32.xlu0 %v7492_v36, %s7355_s14  ;;  %s7370_s14 = smov 56  }
0x199e   :  { %v1742_v35 = vpop.permute.xlu0 %1741 }
0x199f   :  { %v1744_v37 = vmul.f32 %v1742_v35, %v1727_v23  ;;  %v7778_v35 = vld [vmem:[%s8433_s2 + $0x10] sm:$0xff] }
0x19a1   :  { %1746 = vrot.lane.b32.xlu1 %v1744_v37, %s7346_s5  ;;  %v7785_v37 = vld [vmem:[%s8433_s2 + $0x8] sm:$0xff] }
0x19a2   :  { %v1821_v38 = vpop.permute.xlu0 %1820 }
0x19a3   :  { %6721 = vmatmul.mubr.msk.f32.vlgmr.msra.gmra.mxu0 %vm282_vm3, %v1821_v38  ;;  %v7792_v38 = vld [vmem:[%s8433_s2] sm:$0xff] }
0x19a4   :  { %6724 = vmatpush3.msra.mxu0 %v7448_v29  ;;  %6731 = vmatprep.mubr.msk.f32.mxu0 %vm7344_vm0, %v7343_v0 }
0x19a5   :  { %6725 = vmatprep.subr.mxu0 %v7343_v0 }
0x19a6   :  { %6726 = vmatpush3.msra.mxu0 %v7453_v30 }
0x19a7   :  { %6727 = vmatprep.subr.mxu0 %v7343_v0 }
0x19a8   :  { %6728 = vmatpush3.msra.mxu0 %v7465_v32 }
0x19a9   :  { %6729 = vmatprep.subr.mxu0 %v7343_v0 }
0x19aa   :  { %6730 = vmatpush3.msra.mxu0 %v7475_v33 }
0x19ab   :  { %6750 = vmatprep.subr.mxu0 %v7343_v0 }
0x1a13   :  { %v1747_v40 = vpop.permute.xlu1 %1746 }
0x1a14   :  { %6716 = vmatmul.mubr.msk.f32.vlgmr.msra.gmra.mxu1 %vm208_vm4, %v1747_v40 }
0x1a15   :  { %6735 = vmatpush3.msk.msra.mxu1 %vm286_vm2, %v7459_v31  ;;  %6736 = vmatprep.mubr.msk.f32.mxu1 %vm7344_vm0, %v7343_v0 }
0x1a16   :  { %6739 = vmatprep.subr.mxu1 %v7343_v0 }
0x1a63   :  { %v1890_v41 = vpop.f32.mrf.mxu0 }
0x1a65   :  { %v6722_v42 = vpop.f32.mrf.mxu0 }
0x1ad4   :  { %v1816_v43 = vpop.f32.mrf.mxu1 }
0x1ad5   :  { %v1891_v44 = vadd.f32 %v1890_v41, %v1816_v43  ;;  %v7800_v41 = vld [vmem:[%s8433_s2 + $0x20] sm:$0x7] }
0x1ad6   :  { %v6717_v45 = vpop.f32.mrf.mxu1 }
0x1ad7   :  { %v1894_v46 = vadd.f32 %v7509_v39, %v1891_v44 }
0x1ad9   :  { %7200 = vtanh.f32 %v1894_v46 }
0x1ae6   :  { %v7201_v47 = vpop.eup %7200 }
0x1ae7   :  { %1900 = vrot.lane.b32.xlu1 %v7201_v47, %s7345_s4  ;;  %v1896_v48 = vmul.f32 0.5, %v7201_v47 }
0x1ae9   :  { %v1897_v49 = vadd.f32 0.5, %v1896_v48 }
0x1aeb   :  { %v1898_v52 = vmul.f32 %v1897_v49, %v1738_v28 }
0x1b59   :  { %v1901_v50 = vpop.permute.xlu1 %1900 }
0x1b5a   :  { %v1903_v51 = vmul.f32 %v1901_v50, %v1897_v49 }
0x1b5c   :  { %1905 = vrot.lane.b32.xlu0 %v1903_v51, %s7346_s5 }
0x1bce   :  { %v1906_v53 = vpop.permute.xlu0 %1905 }
0x1bcf   :  { %v1908_v54 = vadd.f32 %v1906_v53, %v1898_v52 }
0x1bd1   :  { %7202 = vtanh.f32 %v1908_v54 }
0x1bde   :  { %v7203_v55 = vpop.eup %7202 }
0x1bdf   :  { %1911 = vrot.lane.b32.xlu1 %v7203_v55, %s7345_s4 }
0x1be3   :  { %1990 = vrot.lane.b32.xlu1 %v7492_v36, %s7356_s15  ;;  %s7371_s15 = smov 53  }
0x1c51   :  { %v1912_v56 = vpop.permute.xlu1 %1911 }
0x1c52   :  { %v1914_v57 = vmul.f32 %v1912_v56, %v1897_v49 }
0x1c54   :  { %1916 = vrot.lane.b32.xlu0 %v1914_v57, %s7346_s5 }
0x1c55   :  { %v1991_v58 = vpop.permute.xlu1 %1990 }
0x1c56   :  { %6737 = vmatmul.mubr.msk.f32.vlgmr.msra.gmra.mxu1 %vm282_vm3, %v1991_v58 }
0x1c57   :  { %6740 = vmatpush3.msra.mxu1 %v7448_v29  ;;  %6747 = vmatprep.mubr.msk.f32.mxu1 %vm7344_vm0, %v7343_v0 }
0x1c58   :  { %6741 = vmatprep.subr.mxu1 %v7343_v0 }
0x1c59   :  { %6742 = vmatpush3.msra.mxu1 %v7453_v30 }
0x1c5a   :  { %6743 = vmatprep.subr.mxu1 %v7343_v0 }
0x1c5b   :  { %6744 = vmatpush3.msra.mxu1 %v7465_v32 }
0x1c5c   :  { %6745 = vmatprep.subr.mxu1 %v7343_v0 }
0x1c5d   :  { %6746 = vmatpush3.msra.mxu1 %v7475_v33 }
0x1c5e   :  { %6766 = vmatprep.subr.mxu1 %v7343_v0 }
0x1cc6   :  { %v1917_v59 = vpop.permute.xlu0 %1916 }
0x1cc7   :  { %6732 = vmatmul.mubr.msk.f32.vlgmr.msra.gmra.mxu0 %vm208_vm4, %v1917_v59 }
0x1cc8   :  { %6751 = vmatpush3.msk.msra.mxu0 %vm286_vm2, %v7459_v31  ;;  %6752 = vmatprep.mubr.msk.f32.mxu0 %vm7344_vm0, %v7343_v0 }
0x1cc9   :  { %6755 = vmatprep.subr.mxu0 %v7343_v0 }
0x1d16   :  { %v2060_v60 = vpop.f32.mrf.mxu1 }
0x1d18   :  { %v6738_v61 = vpop.f32.mrf.mxu1 }
0x1d87   :  { %v1986_v62 = vpop.f32.mrf.mxu0 }
0x1d88   :  { %v2061_v63 = vadd.f32 %v2060_v60, %v1986_v62 }
0x1d89   :  { %v6733_v1 = vpop.f32.mrf.mxu0 }
0x1d8a   :  { %v2064_v2 = vadd.f32 %v7509_v39, %v2061_v63 }
0x1d8c   :  { %7204 = vtanh.f32 %v2064_v2  ;;  %v7833_v2 = vld [vmem:[%s8433_s2 + $0x23] ss:$0 sm:$0xff] }
0x1d99   :  { %v7205_v3 = vpop.eup %7204 }
0x1d9a   :  { %2070 = vrot.lane.b32.xlu0 %v7205_v3, %s7345_s4  ;;  %v2066_v4 = vmul.f32 0.5, %v7205_v3 }
0x1d9c   :  { %v2067_v5 = vadd.f32 0.5, %v2066_v4 }
0x1d9e   :  { %v2068_v8 = vmul.f32 %v2067_v5, %v1908_v54 }
0x1e0c   :  { %v2071_v6 = vpop.permute.xlu0 %2070 }
0x1e0d   :  { %v2073_v7 = vmul.f32 %v2071_v6, %v2067_v5 }
0x1e0f   :  { %2075 = vrot.lane.b32.xlu1 %v2073_v7, %s7346_s5 }
0x1e81   :  { %v2076_v9 = vpop.permute.xlu1 %2075 }
0x1e82   :  { %v2078_v10 = vadd.f32 %v2076_v9, %v2068_v8 }
0x1e84   :  { %7206 = vtanh.f32 %v2078_v10 }
0x1e91   :  { %v7207_v11 = vpop.eup %7206 }
0x1e92   :  { %2081 = vrot.lane.b32.xlu0 %v7207_v11, %s7345_s4 }
0x1e96   :  { %2160 = vrot.lane.b32.xlu0 %v7492_v36, %s7357_s16 }
0x1f04   :  { %v2082_v12 = vpop.permute.xlu0 %2081 }
0x1f05   :  { %v2084_v13 = vmul.f32 %v2082_v12, %v2067_v5 }
0x1f07   :  { %2086 = vrot.lane.b32.xlu1 %v2084_v13, %s7346_s5 }
0x1f08   :  { %v2161_v14 = vpop.permute.xlu0 %2160 }
0x1f09   :  { %6753 = vmatmul.mubr.msk.f32.vlgmr.msra.gmra.mxu0 %vm282_vm3, %v2161_v14 }
0x1f0a   :  { %6756 = vmatpush3.msra.mxu0 %v7448_v29  ;;  %6763 = vmatprep.mubr.msk.f32.mxu0 %vm7344_vm0, %v7343_v0 }
0x1f0b   :  { %6757 = vmatprep.subr.mxu0 %v7343_v0 }
0x1f0c   :  { %6758 = vmatpush3.msra.mxu0 %v7453_v30 }
0x1f0d   :  { %6759 = vmatprep.subr.mxu0 %v7343_v0 }
0x1f0e   :  { %6760 = vmatpush3.msra.mxu0 %v7465_v32 }
0x1f0f   :  { %6761 = vmatprep.subr.mxu0 %v7343_v0 }
0x1f10   :  { %6762 = vmatpush3.msra.mxu0 %v7475_v33 }
0x1f11   :  { %6782 = vmatprep.subr.mxu0 %v7343_v0 }
0x1f79   :  { %v2087_v15 = vpop.permute.xlu1 %2086 }
0x1f7a   :  { %6748 = vmatmul.mubr.msk.f32.vlgmr.msra.gmra.mxu1 %vm208_vm4, %v2087_v15 }
0x1f7b   :  { %6767 = vmatpush3.msk.msra.mxu1 %vm286_vm2, %v7459_v31  ;;  %6768 = vmatprep.mubr.msk.f32.mxu1 %vm7344_vm0, %v7343_v0 }
0x1f7c   :  { %6771 = vmatprep.subr.mxu1 %v7343_v0 }
0x1fc9   :  { %v2230_v29 = vpop.f32.mrf.mxu0 }
0x1fcb   :  { %v6754_v30 = vpop.f32.mrf.mxu0 }
0x203a   :  { %v2156_v32 = vpop.f32.mrf.mxu1 }
0x203b   :  { %v2231_v16 = vadd.f32 %v2230_v29, %v2156_v32 }
0x203c   :  { %v6749_v17 = vpop.f32.mrf.mxu1 }
0x203d   :  { %v2234_v33 = vadd.f32 %v7509_v39, %v2231_v16 }
0x203f   :  { %7208 = vtanh.f32 %v2234_v33 }
0x204c   :  { %v7209_v18 = vpop.eup %7208 }
0x204d   :  { %2240 = vrot.lane.b32.xlu1 %v7209_v18, %s7345_s4  ;;  %v2236_v19 = vmul.f32 0.5, %v7209_v18 }
0x204f   :  { %v2237_v20 = vadd.f32 0.5, %v2236_v19 }
0x2051   :  { %v2238_v22 = vmul.f32 %v2237_v20, %v2078_v10 }
0x20bf   :  { %v2241_v21 = vpop.permute.xlu1 %2240 }
0x20c0   :  { %v2243_v31 = vmul.f32 %v2241_v21, %v2237_v20 }
0x20c2   :  { %2245 = vrot.lane.b32.xlu0 %v2243_v31, %s7346_s5 }
0x2134   :  { %v2246_v23 = vpop.permute.xlu0 %2245 }
0x2135   :  { %v2248_v24 = vadd.f32 %v2246_v23, %v2238_v22 }
0x2137   :  { %7210 = vtanh.f32 %v2248_v24 }
0x2144   :  { %v7211_v25 = vpop.eup %7210 }
0x2145   :  { %2251 = vrot.lane.b32.xlu1 %v7211_v25, %s7345_s4 }
0x2149   :  { %2330 = vrot.lane.b32.xlu1 %v7492_v36, %s7358_s17 }
0x21b7   :  { %v2252_v26 = vpop.permute.xlu1 %2251 }
0x21b8   :  { %v2254_v27 = vmul.f32 %v2252_v26, %v2237_v20 }
0x21ba   :  { %2256 = vrot.lane.b32.xlu0 %v2254_v27, %s7346_s5 }
0x21bb   :  { %v2331_v28 = vpop.permute.xlu1 %2330 }
0x21bc   :  { %6769 = vmatmul.mubr.msk.f32.vlgmr.msra.gmra.mxu1 %vm282_vm3, %v2331_v28 }
0x21bd   :  { %6772 = vmatpush3.msra.mxu1 %v7769_v34  ;;  %6779 = vmatprep.mubr.msk.f32.mxu1 %vm7344_vm0, %v7343_v0 }
0x21be   :  { %6773 = vmatprep.subr.mxu1 %v7343_v0 }
0x21bf   :  { %6774 = vmatpush3.msra.mxu1 %v7778_v35 }
0x21c0   :  { %6775 = vmatprep.subr.mxu1 %v7343_v0 }
0x21c1   :  { %6776 = vmatpush3.msra.mxu1 %v7785_v37 }
0x21c2   :  { %6777 = vmatprep.subr.mxu1 %v7343_v0 }
0x21c3   :  { %6778 = vmatpush3.msra.mxu1 %v7792_v38 }
0x21c4   :  { %6798 = vmatprep.subr.mxu1 %v7343_v0 }
0x222c   :  { %v2257_v40 = vpop.permute.xlu0 %2256 }
0x222d   :  { %6764 = vmatmul.mubr.msk.f32.vlgmr.msra.gmra.mxu0 %vm208_vm4, %v2257_v40 }
0x222e   :  { %6783 = vmatpush3.msk.msra.mxu0 %vm286_vm2, %v7800_v41  ;;  %6784 = vmatprep.mubr.msk.f32.mxu0 %vm7344_vm0, %v7343_v0 }
0x222f   :  { %6787 = vmatprep.subr.mxu0 %v7343_v0 }
0x227c   :  { %v2400_v42 = vpop.f32.mrf.mxu1 }
0x227e   :  { %v6770_v43 = vpop.f32.mrf.mxu1 }
0x22ed   :  { %v2326_v44 = vpop.f32.mrf.mxu0 }
0x22ee   :  { %v2401_v45 = vadd.f32 %v2400_v42, %v2326_v44 }
0x22ef   :  { %v6765_v46 = vpop.f32.mrf.mxu0 }
0x22f0   :  { %v2404_v47 = vadd.f32 %v7509_v39, %v2401_v45 }
0x22f2   :  { %7212 = vtanh.f32 %v2404_v47 }
0x22ff   :  { %v7213_v48 = vpop.eup %7212 }
0x2300   :  { %2410 = vrot.lane.b32.xlu0 %v7213_v48, %s7345_s4  ;;  %v2406_v49 = vmul.f32 0.5, %v7213_v48 }
0x2302   :  { %v2407_v50 = vadd.f32 0.5, %v2406_v49 }
0x2304   :  { %v2408_v53 = vmul.f32 %v2407_v50, %v2248_v24 }
0x2372   :  { %v2411_v51 = vpop.permute.xlu0 %2410 }
0x2373   :  { %v2413_v52 = vmul.f32 %v2411_v51, %v2407_v50 }
0x2375   :  { %2415 = vrot.lane.b32.xlu1 %v2413_v52, %s7346_s5 }
0x23e7   :  { %v2416_v54 = vpop.permute.xlu1 %2415 }
0x23e8   :  { %v2418_v55 = vadd.f32 %v2416_v54, %v2408_v53 }
0x23ea   :  { %7214 = vtanh.f32 %v2418_v55 }
0x23f7   :  { %v7215_v56 = vpop.eup %7214 }
0x23f8   :  { %2421 = vrot.lane.b32.xlu0 %v7215_v56, %s7345_s4 }
0x23fc   :  { %2500 = vrot.lane.b32.xlu0 %v7492_v36, %s7359_s26 }
0x246a   :  { %v2422_v39 = vpop.permute.xlu0 %2421 }
0x246b   :  { %v2424_v57 = vmul.f32 %v2422_v39, %v2407_v50 }
0x246d   :  { %2426 = vrot.lane.b32.xlu1 %v2424_v57, %s7346_s5 }
0x246e   :  { %v2501_v58 = vpop.permute.xlu0 %2500 }
0x246f   :  { %6785 = vmatmul.mubr.msk.f32.vlgmr.msra.gmra.mxu0 %vm282_vm3, %v2501_v58 }
0x2470   :  { %6788 = vmatpush3.msra.mxu0 %v7769_v34  ;;  %6795 = vmatprep.mubr.msk.f32.mxu0 %vm7344_vm0, %v7343_v0 }
0x2471   :  { %6789 = vmatprep.subr.mxu0 %v7343_v0 }
0x2472   :  { %6790 = vmatpush3.msra.mxu0 %v7778_v35 }
0x2473   :  { %6791 = vmatprep.subr.mxu0 %v7343_v0 }
0x2474   :  { %6792 = vmatpush3.msra.mxu0 %v7785_v37 }
0x2475   :  { %6793 = vmatprep.subr.mxu0 %v7343_v0 }
0x2476   :  { %6794 = vmatpush3.msra.mxu0 %v7792_v38 }
0x2477   :  { %6814 = vmatprep.subr.mxu0 %v7343_v0 }
0x24df   :  { %v2427_v59 = vpop.permute.xlu1 %2426 }
0x24e0   :  { %6780 = vmatmul.mubr.msk.f32.vlgmr.msra.gmra.mxu1 %vm208_vm4, %v2427_v59 }
0x24e1   :  { %6799 = vmatpush3.msk.msra.mxu1 %vm286_vm2, %v7800_v41  ;;  %6800 = vmatprep.mubr.msk.f32.mxu1 %vm7344_vm0, %v7343_v0 }
0x24e2   :  { %6803 = vmatprep.subr.mxu1 %v7343_v0 }
0x252f   :  { %v2570_v60 = vpop.f32.mrf.mxu0 }
0x2531   :  { %v6786_v61 = vpop.f32.mrf.mxu0 }
0x25a0   :  { %v2496_v62 = vpop.f32.mrf.mxu1 }
0x25a1   :  { %v2571_v63 = vadd.f32 %v2570_v60, %v2496_v62 }
0x25a2   :  { %v6781_v1 = vpop.f32.mrf.mxu1 }
0x25a3   :  { %v2574_v3 = vadd.f32 %v7833_v2, %v2571_v63 }
0x25a5   :  { %7216 = vtanh.f32 %v2574_v3 }
0x25b2   :  { %v7217_v4 = vpop.eup %7216 }
0x25b3   :  { %2580 = vrot.lane.b32.xlu1 %v7217_v4, %s7345_s4  ;;  %v2576_v5 = vmul.f32 0.5, %v7217_v4 }
0x25b5   :  { %v2577_v6 = vadd.f32 0.5, %v2576_v5 }
0x25b7   :  { %v2578_v9 = vmul.f32 %v2577_v6, %v2418_v55 }
0x2625   :  { %v2581_v7 = vpop.permute.xlu1 %2580 }
0x2626   :  { %v2583_v8 = vmul.f32 %v2581_v7, %v2577_v6 }
0x2628   :  { %2585 = vrot.lane.b32.xlu0 %v2583_v8, %s7346_s5 }
0x269a   :  { %v2586_v10 = vpop.permute.xlu0 %2585 }
0x269b   :  { %v2588_v11 = vadd.f32 %v2586_v10, %v2578_v9 }
0x269d   :  { %7218 = vtanh.f32 %v2588_v11 }
0x26aa   :  { %v7219_v12 = vpop.eup %7218 }
0x26ab   :  { %2591 = vrot.lane.b32.xlu1 %v7219_v12, %s7345_s4 }
0x26af   :  { %2670 = vrot.lane.b32.xlu1 %v7492_v36, %s7360_s29  ;;  %s7375_s29 = smov 41  }
0x271d   :  { %v2592_v13 = vpop.permute.xlu1 %2591 }
0x271e   :  { %v2594_v14 = vmul.f32 %v2592_v13, %v2577_v6 }
0x2720   :  { %2596 = vrot.lane.b32.xlu0 %v2594_v14, %s7346_s5 }
0x2721   :  { %v2671_v15 = vpop.permute.xlu1 %2670 }
0x2722   :  { %6801 = vmatmul.mubr.msk.f32.vlgmr.msra.gmra.mxu1 %vm282_vm3, %v2671_v15 }
0x2723   :  { %6804 = vmatpush3.msra.mxu1 %v7769_v34  ;;  %6811 = vmatprep.mubr.msk.f32.mxu1 %vm7344_vm0, %v7343_v0 }
0x2724   :  { %6805 = vmatprep.subr.mxu1 %v7343_v0 }
0x2725   :  { %6806 = vmatpush3.msra.mxu1 %v7778_v35 }
0x2726   :  { %6807 = vmatprep.subr.mxu1 %v7343_v0 }
0x2727   :  { %6808 = vmatpush3.msra.mxu1 %v7785_v37 }
0x2728   :  { %6809 = vmatprep.subr.mxu1 %v7343_v0 }
0x2729   :  { %6810 = vmatpush3.msra.mxu1 %v7792_v38 }
0x272a   :  { %6830 = vmatprep.subr.mxu1 %v7343_v0 }
0x2792   :  { %v2597_v29 = vpop.permute.xlu0 %2596 }
0x2793   :  { %6796 = vmatmul.mubr.msk.f32.vlgmr.msra.gmra.mxu0 %vm208_vm4, %v2597_v29 }
0x2794   :  { %6815 = vmatpush3.msk.msra.mxu0 %vm286_vm2, %v7800_v41  ;;  %6816 = vmatprep.mubr.msk.f32.mxu0 %vm7344_vm0, %v7343_v0 }
0x2795   :  { %6819 = vmatprep.subr.mxu0 %v7343_v0 }
0x27e2   :  { %v2740_v30 = vpop.f32.mrf.mxu1 }
0x27e4   :  { %v6802_v32 = vpop.f32.mrf.mxu1 }
0x2853   :  { %v2666_v16 = vpop.f32.mrf.mxu0 }
0x2854   :  { %v2741_v17 = vadd.f32 %v2740_v30, %v2666_v16 }
0x2855   :  { %v6797_v33 = vpop.f32.mrf.mxu0 }
0x2856   :  { %v2744_v18 = vadd.f32 %v7833_v2, %v2741_v17 }
0x2858   :  { %7220 = vtanh.f32 %v2744_v18 }
0x2865   :  { %v7221_v19 = vpop.eup %7220 }
0x2866   :  { %2750 = vrot.lane.b32.xlu0 %v7221_v19, %s7345_s4  ;;  %v2746_v20 = vmul.f32 0.5, %v7221_v19 }
0x2868   :  { %v2747_v21 = vadd.f32 0.5, %v2746_v20 }
0x286a   :  { %v2748_v23 = vmul.f32 %v2747_v21, %v2588_v11 }
0x28d8   :  { %v2751_v31 = vpop.permute.xlu0 %2750 }
0x28d9   :  { %v2753_v22 = vmul.f32 %v2751_v31, %v2747_v21 }
0x28db   :  { %2755 = vrot.lane.b32.xlu1 %v2753_v22, %s7346_s5 }
0x294d   :  { %v2756_v24 = vpop.permute.xlu1 %2755 }
0x294e   :  { %v2758_v25 = vadd.f32 %v2756_v24, %v2748_v23 }
0x2950   :  { %7222 = vtanh.f32 %v2758_v25 }
0x295d   :  { %v7223_v26 = vpop.eup %7222 }
0x295e   :  { %2761 = vrot.lane.b32.xlu0 %v7223_v26, %s7345_s4 }
0x2962   :  { %2840 = vrot.lane.b32.xlu0 %v7492_v36, %s7361_s30  ;;  %s7376_s30 = smov 38  }
0x29d0   :  { %v2762_v27 = vpop.permute.xlu0 %2761 }
0x29d1   :  { %v2764_v28 = vmul.f32 %v2762_v27, %v2747_v21 }
0x29d3   :  { %2766 = vrot.lane.b32.xlu1 %v2764_v28, %s7346_s5 }
0x29d4   :  { %v2841_v40 = vpop.permute.xlu0 %2840 }
0x29d5   :  { %6817 = vmatmul.mubr.msk.f32.vlgmr.msra.gmra.mxu0 %vm282_vm3, %v2841_v40 }
0x29d6   :  { %6820 = vmatpush3.msra.mxu0 %v7769_v34  ;;  %6827 = vmatprep.mubr.msk.f32.mxu0 %vm7344_vm0, %v7343_v0 }
0x29d7   :  { %6821 = vmatprep.subr.mxu0 %v7343_v0 }
0x29d8   :  { %6822 = vmatpush3.msra.mxu0 %v7778_v35 }
0x29d9   :  { %6823 = vmatprep.subr.mxu0 %v7343_v0 }
0x29da   :  { %6824 = vmatpush3.msra.mxu0 %v7785_v37 }
0x29db   :  { %6825 = vmatprep.subr.mxu0 %v7343_v0 }
0x29dc   :  { %6826 = vmatpush3.msra.mxu0 %v7792_v38 }
0x29dd   :  { %6846 = vmatprep.subr.mxu0 %v7343_v0 }
0x2a45   :  { %v2767_v42 = vpop.permute.xlu1 %2766 }
0x2a46   :  { %6812 = vmatmul.mubr.msk.f32.vlgmr.msra.gmra.mxu1 %vm208_vm4, %v2767_v42 }
0x2a47   :  { %6831 = vmatpush3.msk.msra.mxu1 %vm286_vm2, %v7800_v41  ;;  %6832 = vmatprep.mubr.msk.f32.mxu1 %vm7344_vm0, %v7343_v0 }
0x2a48   :  { %6835 = vmatprep.subr.mxu1 %v7343_v0 }
0x2a95   :  { %v2910_v43 = vpop.f32.mrf.mxu0 }
0x2a97   :  { %v6818_v44 = vpop.f32.mrf.mxu0 }
0x2b06   :  { %v2836_v45 = vpop.f32.mrf.mxu1 }
0x2b07   :  { %v2911_v46 = vadd.f32 %v2910_v43, %v2836_v45 }
0x2b08   :  { %v6813_v47 = vpop.f32.mrf.mxu1 }
0x2b09   :  { %v2914_v48 = vadd.f32 %v7833_v2, %v2911_v46 }
0x2b0b   :  { %7224 = vtanh.f32 %v2914_v48 }
0x2b18   :  { %v7225_v49 = vpop.eup %7224 }
0x2b19   :  { %2920 = vrot.lane.b32.xlu1 %v7225_v49, %s7345_s4  ;;  %v2916_v50 = vmul.f32 0.5, %v7225_v49 }
0x2b1b   :  { %v2917_v51 = vadd.f32 0.5, %v2916_v50 }
0x2b1d   :  { %v2918_v54 = vmul.f32 %v2917_v51, %v2758_v25 }
0x2b8b   :  { %v2921_v52 = vpop.permute.xlu1 %2920 }
0x2b8c   :  { %v2923_v53 = vmul.f32 %v2921_v52, %v2917_v51 }
0x2b8e   :  { %2925 = vrot.lane.b32.xlu0 %v2923_v53, %s7346_s5 }
0x2c00   :  { %v2926_v55 = vpop.permute.xlu0 %2925 }
0x2c01   :  { %v2928_v56 = vadd.f32 %v2926_v55, %v2918_v54 }
0x2c03   :  { %7226 = vtanh.f32 %v2928_v56 }
0x2c10   :  { %v7227_v39 = vpop.eup %7226 }
0x2c11   :  { %2931 = vrot.lane.b32.xlu1 %v7227_v39, %s7345_s4 }
0x2c15   :  { %3010 = vrot.lane.b32.xlu1 %v7492_v36, %s7362_s6  ;;  %s7377_s6 = smov 35  }
0x2c83   :  { %v2932_v57 = vpop.permute.xlu1 %2931 }
0x2c84   :  { %v2934_v58 = vmul.f32 %v2932_v57, %v2917_v51 }
0x2c86   :  { %2936 = vrot.lane.b32.xlu0 %v2934_v58, %s7346_s5 }
0x2c87   :  { %v3011_v59 = vpop.permute.xlu1 %3010 }
0x2c88   :  { %6833 = vmatmul.mubr.msk.f32.vlgmr.msra.gmra.mxu1 %vm282_vm3, %v3011_v59 }
0x2c89   :  { %6836 = vmatpush3.msra.mxu1 %v7769_v34  ;;  %6843 = vmatprep.mubr.msk.f32.mxu1 %vm7344_vm0, %v7343_v0 }
0x2c8a   :  { %6837 = vmatprep.subr.mxu1 %v7343_v0 }
0x2c8b   :  { %6838 = vmatpush3.msra.mxu1 %v7778_v35 }
0x2c8c   :  { %6839 = vmatprep.subr.mxu1 %v7343_v0 }
0x2c8d   :  { %6840 = vmatpush3.msra.mxu1 %v7785_v37 }
0x2c8e   :  { %6841 = vmatprep.subr.mxu1 %v7343_v0 }
0x2c8f   :  { %6842 = vmatpush3.msra.mxu1 %v7792_v38 }
0x2c90   :  { %6862 = vmatprep.subr.mxu1 %v7343_v0 }
0x2cf8   :  { %v2937_v60 = vpop.permute.xlu0 %2936 }
0x2cf9   :  { %6828 = vmatmul.mubr.msk.f32.vlgmr.msra.gmra.mxu0 %vm208_vm4, %v2937_v60 }
0x2cfa   :  { %6847 = vmatpush3.msk.msra.mxu0 %vm286_vm2, %v7800_v41  ;;  %6848 = vmatprep.mubr.msk.f32.mxu0 %vm7344_vm0, %v7343_v0 }
0x2cfb   :  { %6851 = vmatprep.subr.mxu0 %v7343_v0 }
0x2d48   :  { %v3080_v61 = vpop.f32.mrf.mxu1 }
0x2d4a   :  { %v6834_v62 = vpop.f32.mrf.mxu1 }
0x2db9   :  { %v3006_v63 = vpop.f32.mrf.mxu0 }
0x2dba   :  { %v3081_v1 = vadd.f32 %v3080_v61, %v3006_v63 }
0x2dbb   :  { %v6829_v3 = vpop.f32.mrf.mxu0 }
0x2dbc   :  { %v3084_v4 = vadd.f32 %v7833_v2, %v3081_v1 }
0x2dbe   :  { %7228 = vtanh.f32 %v3084_v4 }
0x2dcb   :  { %v7229_v5 = vpop.eup %7228 }
0x2dcc   :  { %3090 = vrot.lane.b32.xlu0 %v7229_v5, %s7345_s4  ;;  %v3086_v6 = vmul.f32 0.5, %v7229_v5 }
0x2dce   :  { %v3087_v7 = vadd.f32 0.5, %v3086_v6 }
0x2dd0   :  { %v3088_v10 = vmul.f32 %v3087_v7, %v2928_v56 }
0x2e3e   :  { %v3091_v8 = vpop.permute.xlu0 %3090 }
0x2e3f   :  { %v3093_v9 = vmul.f32 %v3091_v8, %v3087_v7 }
0x2e41   :  { %3095 = vrot.lane.b32.xlu1 %v3093_v9, %s7346_s5 }
0x2eb3   :  { %v3096_v11 = vpop.permute.xlu1 %3095 }
0x2eb4   :  { %v3098_v12 = vadd.f32 %v3096_v11, %v3088_v10 }
0x2eb6   :  { %7230 = vtanh.f32 %v3098_v12 }
0x2ec3   :  { %v7231_v13 = vpop.eup %7230 }
0x2ec4   :  { %3101 = vrot.lane.b32.xlu0 %v7231_v13, %s7345_s4 }
0x2ec8   :  { %3180 = vrot.lane.b32.xlu0 %v7492_v36, %s7363_s7 }
0x2f36   :  { %v3102_v14 = vpop.permute.xlu0 %3101 }
0x2f37   :  { %v3104_v15 = vmul.f32 %v3102_v14, %v3087_v7 }
0x2f39   :  { %3106 = vrot.lane.b32.xlu1 %v3104_v15, %s7346_s5 }
0x2f3a   :  { %v3181_v29 = vpop.permute.xlu0 %3180 }
0x2f3b   :  { %6849 = vmatmul.mubr.msk.f32.vlgmr.msra.gmra.mxu0 %vm282_vm3, %v3181_v29 }
0x2f3c   :  { %6852 = vmatpush3.msra.mxu0 %v7769_v34  ;;  %6859 = vmatprep.mubr.msk.f32.mxu0 %vm7344_vm0, %v7343_v0 }
0x2f3d   :  { %6853 = vmatprep.subr.mxu0 %v7343_v0 }
0x2f3e   :  { %6854 = vmatpush3.msra.mxu0 %v7778_v35 }
0x2f3f   :  { %6855 = vmatprep.subr.mxu0 %v7343_v0 }
0x2f40   :  { %6856 = vmatpush3.msra.mxu0 %v7785_v37 }
0x2f41   :  { %6857 = vmatprep.subr.mxu0 %v7343_v0 }
0x2f42   :  { %6858 = vmatpush3.msra.mxu0 %v7792_v38 }
0x2f43   :  { %6878 = vmatprep.subr.mxu0 %v7343_v0 }
0x2fab   :  { %v3107_v30 = vpop.permute.xlu1 %3106 }
0x2fac   :  { %6844 = vmatmul.mubr.msk.f32.vlgmr.msra.gmra.mxu1 %vm208_vm4, %v3107_v30 }
0x2fad   :  { %6863 = vmatpush3.msk.msra.mxu1 %vm286_vm2, %v7800_v41  ;;  %6864 = vmatprep.mubr.msk.f32.mxu1 %vm7344_vm0, %v7343_v0 }
0x2fae   :  { %6867 = vmatprep.subr.mxu1 %v7343_v0 }
0x2ffb   :  { %v3250_v32 = vpop.f32.mrf.mxu0 }
0x2ffd   :  { %v6850_v16 = vpop.f32.mrf.mxu0 }
0x306c   :  { %v3176_v17 = vpop.f32.mrf.mxu1 }
0x306d   :  { %v3251_v33 = vadd.f32 %v3250_v32, %v3176_v17 }
0x306e   :  { %v6845_v18 = vpop.f32.mrf.mxu1 }
0x306f   :  { %v3254_v19 = vadd.f32 %v7833_v2, %v3251_v33 }
0x3071   :  { %7232 = vtanh.f32 %v3254_v19 }
0x307e   :  { %v7233_v20 = vpop.eup %7232 }
0x307f   :  { %3260 = vrot.lane.b32.xlu1 %v7233_v20, %s7345_s4  ;;  %v3256_v21 = vmul.f32 0.5, %v7233_v20 }
0x3081   :  { %v3257_v31 = vadd.f32 0.5, %v3256_v21 }
0x3083   :  { %v3258_v24 = vmul.f32 %v3257_v31, %v3098_v12 }
0x30f1   :  { %v3261_v22 = vpop.permute.xlu1 %3260 }
0x30f2   :  { %v3263_v23 = vmul.f32 %v3261_v22, %v3257_v31 }
0x30f4   :  { %3265 = vrot.lane.b32.xlu0 %v3263_v23, %s7346_s5 }
0x3166   :  { %v3266_v25 = vpop.permute.xlu0 %3265 }
0x3167   :  { %v3268_v26 = vadd.f32 %v3266_v25, %v3258_v24 }
0x3169   :  { %7234 = vtanh.f32 %v3268_v26 }
0x3176   :  { %v7235_v27 = vpop.eup %7234 }
0x3177   :  { %3271 = vrot.lane.b32.xlu1 %v7235_v27, %s7345_s4 }
0x317b   :  { %3350 = vrot.lane.b32.xlu1 %v7492_v36, %s7364_s8 }
0x31e9   :  { %v3272_v28 = vpop.permute.xlu1 %3271 }
0x31ea   :  { %v3274_v40 = vmul.f32 %v3272_v28, %v3257_v31 }
0x31ec   :  { %3276 = vrot.lane.b32.xlu0 %v3274_v40, %s7346_s5 }
0x31ed   :  { %v3351_v42 = vpop.permute.xlu1 %3350 }
0x31ee   :  { %6865 = vmatmul.mubr.msk.f32.vlgmr.msra.gmra.mxu1 %vm282_vm3, %v3351_v42 }
0x31ef   :  { %6868 = vmatpush3.msra.mxu1 %v7769_v34  ;;  %6875 = vmatprep.mubr.msk.f32.mxu1 %vm7344_vm0, %v7343_v0 }
0x31f0   :  { %6869 = vmatprep.subr.mxu1 %v7343_v0 }
0x31f1   :  { %6870 = vmatpush3.msra.mxu1 %v7778_v35 }
0x31f2   :  { %6871 = vmatprep.subr.mxu1 %v7343_v0 }
0x31f3   :  { %6872 = vmatpush3.msra.mxu1 %v7785_v37 }
0x31f4   :  { %6873 = vmatprep.subr.mxu1 %v7343_v0 }
0x31f5   :  { %6874 = vmatpush3.msra.mxu1 %v7792_v38 }
0x31f6   :  { %6894 = vmatprep.subr.mxu1 %v7343_v0 }
0x325e   :  { %v3277_v43 = vpop.permute.xlu0 %3276 }
0x325f   :  { %6860 = vmatmul.mubr.msk.f32.vlgmr.msra.gmra.mxu0 %vm208_vm4, %v3277_v43 }
0x3260   :  { %6879 = vmatpush3.msk.msra.mxu0 %vm286_vm2, %v7800_v41  ;;  %6880 = vmatprep.mubr.msk.f32.mxu0 %vm7344_vm0, %v7343_v0 }
0x3261   :  { %6883 = vmatprep.subr.mxu0 %v7343_v0 }
0x32ae   :  { %v3420_v44 = vpop.f32.mrf.mxu1 }
0x32b0   :  { %v6866_v45 = vpop.f32.mrf.mxu1 }
0x331f   :  { %v3346_v46 = vpop.f32.mrf.mxu0 }
0x3320   :  { %v3421_v47 = vadd.f32 %v3420_v44, %v3346_v46 }
0x3321   :  { %v6861_v48 = vpop.f32.mrf.mxu0 }
0x3322   :  { %v3424_v49 = vadd.f32 %v7833_v2, %v3421_v47 }
0x3324   :  { %7236 = vtanh.f32 %v3424_v49 }
0x3331   :  { %v7237_v50 = vpop.eup %7236 }
0x3332   :  { %3430 = vrot.lane.b32.xlu0 %v7237_v50, %s7345_s4  ;;  %v3426_v51 = vmul.f32 0.5, %v7237_v50 }
0x3334   :  { %v3427_v52 = vadd.f32 0.5, %v3426_v51 }
0x3336   :  { %v3428_v55 = vmul.f32 %v3427_v52, %v3268_v26 }
0x33a4   :  { %v3431_v53 = vpop.permute.xlu0 %3430 }
0x33a5   :  { %v3433_v54 = vmul.f32 %v3431_v53, %v3427_v52 }
0x33a7   :  { %3435 = vrot.lane.b32.xlu1 %v3433_v54, %s7346_s5 }
0x3419   :  { %v3436_v56 = vpop.permute.xlu1 %3435 }
0x341a   :  { %v3438_v39 = vadd.f32 %v3436_v56, %v3428_v55 }
0x341c   :  { %7238 = vtanh.f32 %v3438_v39 }
0x3429   :  { %v7239_v57 = vpop.eup %7238 }
0x342a   :  { %3441 = vrot.lane.b32.xlu0 %v7239_v57, %s7345_s4 }
0x342e   :  { %3520 = vrot.lane.b32.xlu0 %v7492_v36, %s7365_s9 }
0x349c   :  { %v3442_v58 = vpop.permute.xlu0 %3441 }
0x349d   :  { %v3444_v59 = vmul.f32 %v3442_v58, %v3427_v52 }
0x349f   :  { %3446 = vrot.lane.b32.xlu1 %v3444_v59, %s7346_s5 }
0x34a0   :  { %v3521_v60 = vpop.permute.xlu0 %3520 }
0x34a1   :  { %6881 = vmatmul.mubr.msk.f32.vlgmr.msra.gmra.mxu0 %vm282_vm3, %v3521_v60 }
0x34a2   :  { %6884 = vmatpush3.msra.mxu0 %v7769_v34  ;;  %6891 = vmatprep.mubr.msk.f32.mxu0 %vm7344_vm0, %v7343_v0 }
0x34a3   :  { %6885 = vmatprep.subr.mxu0 %v7343_v0 }
0x34a4   :  { %6886 = vmatpush3.msra.mxu0 %v7778_v35 }
0x34a5   :  { %6887 = vmatprep.subr.mxu0 %v7343_v0 }
0x34a6   :  { %6888 = vmatpush3.msra.mxu0 %v7785_v37 }
0x34a7   :  { %6889 = vmatprep.subr.mxu0 %v7343_v0 }
0x34a8   :  { %6890 = vmatpush3.msra.mxu0 %v7792_v38 }
0x34a9   :  { %6910 = vmatprep.subr.mxu0 %v7343_v0 }
0x3511   :  { %v3447_v61 = vpop.permute.xlu1 %3446 }
0x3512   :  { %6876 = vmatmul.mubr.msk.f32.vlgmr.msra.gmra.mxu1 %vm208_vm4, %v3447_v61 }
0x3513   :  { %6895 = vmatpush3.msk.msra.mxu1 %vm286_vm2, %v7800_v41  ;;  %6896 = vmatprep.mubr.msk.f32.mxu1 %vm7344_vm0, %v7343_v0 }
0x3514   :  { %6899 = vmatprep.subr.mxu1 %v7343_v0 }
0x3561   :  { %v3590_v62 = vpop.f32.mrf.mxu0 }
0x3563   :  { %v6882_v63 = vpop.f32.mrf.mxu0 }
0x35d2   :  { %v3516_v1 = vpop.f32.mrf.mxu1 }
0x35d3   :  { %v3591_v3 = vadd.f32 %v3590_v62, %v3516_v1 }
0x35d4   :  { %v6877_v4 = vpop.f32.mrf.mxu1 }
0x35d5   :  { %v3594_v5 = vadd.f32 %v7833_v2, %v3591_v3 }
0x35d7   :  { %7240 = vtanh.f32 %v3594_v5 }
0x35e4   :  { %v7241_v6 = vpop.eup %7240 }
0x35e5   :  { %3600 = vrot.lane.b32.xlu1 %v7241_v6, %s7345_s4  ;;  %v3596_v7 = vmul.f32 0.5, %v7241_v6 }
0x35e7   :  { %v3597_v8 = vadd.f32 0.5, %v3596_v7 }
0x35e9   :  { %v3598_v11 = vmul.f32 %v3597_v8, %v3438_v39 }
0x3657   :  { %v3601_v9 = vpop.permute.xlu1 %3600 }
0x3658   :  { %v3603_v10 = vmul.f32 %v3601_v9, %v3597_v8 }
0x365a   :  { %3605 = vrot.lane.b32.xlu0 %v3603_v10, %s7346_s5 }
0x36cc   :  { %v3606_v12 = vpop.permute.xlu0 %3605 }
0x36cd   :  { %v3608_v13 = vadd.f32 %v3606_v12, %v3598_v11 }
0x36cf   :  { %7242 = vtanh.f32 %v3608_v13 }
0x36dc   :  { %v7243_v14 = vpop.eup %7242 }
0x36dd   :  { %3611 = vrot.lane.b32.xlu1 %v7243_v14, %s7345_s4 }
0x36e1   :  { %3690 = vrot.lane.b32.xlu1 %v7492_v36, %s7366_s10 }
0x374f   :  { %v3612_v15 = vpop.permute.xlu1 %3611 }
0x3750   :  { %v3614_v29 = vmul.f32 %v3612_v15, %v3597_v8 }
0x3752   :  { %3616 = vrot.lane.b32.xlu0 %v3614_v29, %s7346_s5 }
0x3753   :  { %v3691_v30 = vpop.permute.xlu1 %3690 }
0x3754   :  { %6897 = vmatmul.mubr.msk.f32.vlgmr.msra.gmra.mxu1 %vm282_vm3, %v3691_v30 }
0x3755   :  { %6900 = vmatpush3.msra.mxu1 %v7769_v34  ;;  %6907 = vmatprep.mubr.msk.f32.mxu1 %vm7344_vm0, %v7343_v0 }
0x3756   :  { %6901 = vmatprep.subr.mxu1 %v7343_v0 }
0x3757   :  { %6902 = vmatpush3.msra.mxu1 %v7778_v35 }
0x3758   :  { %6903 = vmatprep.subr.mxu1 %v7343_v0 }
0x3759   :  { %6904 = vmatpush3.msra.mxu1 %v7785_v37 }
0x375a   :  { %6905 = vmatprep.subr.mxu1 %v7343_v0 }
0x375b   :  { %6906 = vmatpush3.msra.mxu1 %v7792_v38 }
0x375c   :  { %6926 = vmatprep.subr.mxu1 %v7343_v0 }
0x37c4   :  { %v3617_v32 = vpop.permute.xlu0 %3616 }
0x37c5   :  { %6892 = vmatmul.mubr.msk.f32.vlgmr.msra.gmra.mxu0 %vm208_vm4, %v3617_v32 }
0x37c6   :  { %6911 = vmatpush3.msk.msra.mxu0 %vm286_vm2, %v7800_v41  ;;  %6912 = vmatprep.mubr.msk.f32.mxu0 %vm7344_vm0, %v7343_v0 }
0x37c7   :  { %6915 = vmatprep.subr.mxu0 %v7343_v0 }
0x3814   :  { %v3760_v16 = vpop.f32.mrf.mxu1 }
0x3816   :  { %v6898_v17 = vpop.f32.mrf.mxu1 }
0x3885   :  { %v3686_v33 = vpop.f32.mrf.mxu0 }
0x3886   :  { %v3761_v18 = vadd.f32 %v3760_v16, %v3686_v33 }
0x3887   :  { %v6893_v19 = vpop.f32.mrf.mxu0 }
0x3888   :  { %v3764_v20 = vadd.f32 %v7833_v2, %v3761_v18 }
0x388a   :  { %7244 = vtanh.f32 %v3764_v20 }
0x3897   :  { %v7245_v21 = vpop.eup %7244 }
0x3898   :  { %3770 = vrot.lane.b32.xlu0 %v7245_v21, %s7345_s4  ;;  %v3766_v31 = vmul.f32 0.5, %v7245_v21 }
0x389a   :  { %v3767_v22 = vadd.f32 0.5, %v3766_v31 }
0x389c   :  { %v3768_v25 = vmul.f32 %v3767_v22, %v3608_v13 }
0x390a   :  { %v3771_v23 = vpop.permute.xlu0 %3770 }
0x390b   :  { %v3773_v24 = vmul.f32 %v3771_v23, %v3767_v22 }
0x390d   :  { %3775 = vrot.lane.b32.xlu1 %v3773_v24, %s7346_s5 }
0x397f   :  { %v3776_v26 = vpop.permute.xlu1 %3775 }
0x3980   :  { %v3778_v27 = vadd.f32 %v3776_v26, %v3768_v25 }
0x3982   :  { %7246 = vtanh.f32 %v3778_v27 }
0x398f   :  { %v7247_v28 = vpop.eup %7246 }
0x3990   :  { %3781 = vrot.lane.b32.xlu0 %v7247_v28, %s7345_s4 }
0x3994   :  { %3860 = vrot.lane.b32.xlu0 %v7492_v36, %s7367_s11 }
0x3a02   :  { %v3782_v40 = vpop.permute.xlu0 %3781 }
0x3a03   :  { %v3784_v42 = vmul.f32 %v3782_v40, %v3767_v22 }
0x3a05   :  { %3786 = vrot.lane.b32.xlu1 %v3784_v42, %s7346_s5 }
0x3a06   :  { %v3861_v43 = vpop.permute.xlu0 %3860 }
0x3a07   :  { %6913 = vmatmul.mubr.msk.f32.vlgmr.msra.gmra.mxu0 %vm282_vm3, %v3861_v43 }
0x3a08   :  { %6916 = vmatpush3.msra.mxu0 %v7769_v34  ;;  %6923 = vmatprep.mubr.msk.f32.mxu0 %vm7344_vm0, %v7343_v0 }
0x3a09   :  { %6917 = vmatprep.subr.mxu0 %v7343_v0 }
0x3a0a   :  { %6918 = vmatpush3.msra.mxu0 %v7778_v35 }
0x3a0b   :  { %6919 = vmatprep.subr.mxu0 %v7343_v0 }
0x3a0c   :  { %6920 = vmatpush3.msra.mxu0 %v7785_v37 }
0x3a0d   :  { %6921 = vmatprep.subr.mxu0 %v7343_v0 }
0x3a0e   :  { %6922 = vmatpush3.msra.mxu0 %v7792_v38 }
0x3a0f   :  { %6942 = vmatprep.subr.mxu0 %v7343_v0 }
0x3a77   :  { %v3787_v44 = vpop.permute.xlu1 %3786 }
0x3a78   :  { %6908 = vmatmul.mubr.msk.f32.vlgmr.msra.gmra.mxu1 %vm208_vm4, %v3787_v44 }
0x3a79   :  { %6927 = vmatpush3.msk.msra.mxu1 %vm286_vm2, %v7800_v41  ;;  %6928 = vmatprep.mubr.msk.f32.mxu1 %vm7344_vm0, %v7343_v0 }
0x3a7a   :  { %6931 = vmatprep.subr.mxu1 %v7343_v0 }
0x3ac7   :  { %v3930_v45 = vpop.f32.mrf.mxu0 }
0x3ac9   :  { %v6914_v46 = vpop.f32.mrf.mxu0 }
0x3b38   :  { %v3856_v47 = vpop.f32.mrf.mxu1 }
0x3b39   :  { %v3931_v48 = vadd.f32 %v3930_v45, %v3856_v47 }
0x3b3a   :  { %v6909_v49 = vpop.f32.mrf.mxu1 }
0x3b3b   :  { %v3934_v50 = vadd.f32 %v7833_v2, %v3931_v48 }
0x3b3d   :  { %7248 = vtanh.f32 %v3934_v50 }
0x3b4a   :  { %v7249_v51 = vpop.eup %7248 }
0x3b4b   :  { %3940 = vrot.lane.b32.xlu1 %v7249_v51, %s7345_s4  ;;  %v3936_v52 = vmul.f32 0.5, %v7249_v51 }
0x3b4d   :  { %v3937_v53 = vadd.f32 0.5, %v3936_v52 }
0x3b4f   :  { %v3938_v56 = vmul.f32 %v3937_v53, %v3778_v27 }
0x3bbd   :  { %v3941_v54 = vpop.permute.xlu1 %3940 }
0x3bbe   :  { %v3943_v55 = vmul.f32 %v3941_v54, %v3937_v53 }
0x3bc0   :  { %3945 = vrot.lane.b32.xlu0 %v3943_v55, %s7346_s5 }
0x3c32   :  { %v3946_v39 = vpop.permute.xlu0 %3945 }
0x3c33   :  { %v3948_v57 = vadd.f32 %v3946_v39, %v3938_v56 }
0x3c35   :  { %7250 = vtanh.f32 %v3948_v57 }
0x3c42   :  { %v7251_v58 = vpop.eup %7250 }
0x3c43   :  { %3951 = vrot.lane.b32.xlu1 %v7251_v58, %s7345_s4  ;;  %v8098_v58 = vld [vmem:[%s8433_s2 + $0x18] sm:$0xff] }
0x3c47   :  { %4030 = vrot.lane.b32.xlu1 %v7492_v36, %s7368_s12 }
0x3cb5   :  { %v3952_v59 = vpop.permute.xlu1 %3951 }
0x3cb6   :  { %v3954_v60 = vmul.f32 %v3952_v59, %v3937_v53  ;;  %v8107_v59 = vld [vmem:[%s8433_s2 + $0x10] sm:$0xff] }
0x3cb8   :  { %3956 = vrot.lane.b32.xlu0 %v3954_v60, %s7346_s5  ;;  %v8114_v60 = vld [vmem:[%s8433_s2 + $0x8] sm:$0xff] }
0x3cb9   :  { %v4031_v61 = vpop.permute.xlu1 %4030 }
0x3cba   :  { %6929 = vmatmul.mubr.msk.f32.vlgmr.msra.gmra.mxu1 %vm282_vm3, %v4031_v61  ;;  %v8121_v61 = vld [vmem:[%s8433_s2] sm:$0xff] }
0x3cbb   :  { %6932 = vmatpush3.msra.mxu1 %v7769_v34  ;;  %6939 = vmatprep.mubr.msk.f32.mxu1 %vm7344_vm0, %v7343_v0 }
0x3cbc   :  { %6933 = vmatprep.subr.mxu1 %v7343_v0 }
0x3cbd   :  { %6934 = vmatpush3.msra.mxu1 %v7778_v35 }
0x3cbe   :  { %6935 = vmatprep.subr.mxu1 %v7343_v0 }
0x3cbf   :  { %6936 = vmatpush3.msra.mxu1 %v7785_v37 }
0x3cc0   :  { %6937 = vmatprep.subr.mxu1 %v7343_v0 }
0x3cc1   :  { %6938 = vmatpush3.msra.mxu1 %v7792_v38 }
0x3cc2   :  { %6958 = vmatprep.subr.mxu1 %v7343_v0 }
0x3d2a   :  { %v3957_v62 = vpop.permute.xlu0 %3956 }
0x3d2b   :  { %6924 = vmatmul.mubr.msk.f32.vlgmr.msra.gmra.mxu0 %vm208_vm4, %v3957_v62 }
0x3d2c   :  { %6943 = vmatpush3.msk.msra.mxu0 %vm286_vm2, %v7800_v41  ;;  %6944 = vmatprep.mubr.msk.f32.mxu0 %vm7344_vm0, %v7343_v0 }
0x3d2d   :  { %6947 = vmatprep.subr.mxu0 %v7343_v0 }
0x3d7a   :  { %v4100_v63 = vpop.f32.mrf.mxu1 }
0x3d7c   :  { %v6930_v1 = vpop.f32.mrf.mxu1 }
0x3deb   :  { %v4026_v3 = vpop.f32.mrf.mxu0 }
0x3dec   :  { %v4101_v4 = vadd.f32 %v4100_v63, %v4026_v3  ;;  %v8129_v63 = vld [vmem:[%s8433_s2 + $0x20] sm:$0x7] }
0x3ded   :  { %v6925_v5 = vpop.f32.mrf.mxu0 }
0x3dee   :  { %v4104_v6 = vadd.f32 %v7833_v2, %v4101_v4 }
0x3df0   :  { %7252 = vtanh.f32 %v4104_v6 }
0x3dfd   :  { %v7253_v7 = vpop.eup %7252 }
0x3dfe   :  { %4110 = vrot.lane.b32.xlu0 %v7253_v7, %s7345_s4  ;;  %v4106_v8 = vmul.f32 0.5, %v7253_v7 }
0x3e00   :  { %v4107_v9 = vadd.f32 0.5, %v4106_v8 }
0x3e02   :  { %v4108_v12 = vmul.f32 %v4107_v9, %v3948_v57 }
0x3e70   :  { %v4111_v10 = vpop.permute.xlu0 %4110 }
0x3e71   :  { %v4113_v11 = vmul.f32 %v4111_v10, %v4107_v9 }
0x3e73   :  { %4115 = vrot.lane.b32.xlu1 %v4113_v11, %s7346_s5 }
0x3ee5   :  { %v4116_v13 = vpop.permute.xlu1 %4115 }
0x3ee6   :  { %v4118_v14 = vadd.f32 %v4116_v13, %v4108_v12 }
0x3ee8   :  { %7254 = vtanh.f32 %v4118_v14 }
0x3ef5   :  { %v7255_v15 = vpop.eup %7254 }
0x3ef6   :  { %4121 = vrot.lane.b32.xlu0 %v7255_v15, %s7345_s4 }
0x3efa   :  { %4200 = vrot.lane.b32.xlu0 %v7492_v36, %s7369_s13 }
0x3f68   :  { %v4122_v29 = vpop.permute.xlu0 %4121 }
0x3f69   :  { %v4124_v30 = vmul.f32 %v4122_v29, %v4107_v9 }
0x3f6b   :  { %4126 = vrot.lane.b32.xlu1 %v4124_v30, %s7346_s5 }
0x3f6c   :  { %v4201_v32 = vpop.permute.xlu0 %4200 }
0x3f6d   :  { %6945 = vmatmul.mubr.msk.f32.vlgmr.msra.gmra.mxu0 %vm282_vm3, %v4201_v32 }
0x3f6e   :  { %6948 = vmatpush3.msra.mxu0 %v7769_v34  ;;  %6955 = vmatprep.mubr.msk.f32.mxu0 %vm7344_vm0, %v7343_v0 }
0x3f6f   :  { %6949 = vmatprep.subr.mxu0 %v7343_v0 }
0x3f70   :  { %6950 = vmatpush3.msra.mxu0 %v7778_v35 }
0x3f71   :  { %6951 = vmatprep.subr.mxu0 %v7343_v0 }
0x3f72   :  { %6952 = vmatpush3.msra.mxu0 %v7785_v37 }
0x3f73   :  { %6953 = vmatprep.subr.mxu0 %v7343_v0 }
0x3f74   :  { %6954 = vmatpush3.msra.mxu0 %v7792_v38 }
0x3f75   :  { %6974 = vmatprep.subr.mxu0 %v7343_v0 }
0x3fdd   :  { %v4127_v16 = vpop.permute.xlu1 %4126 }
0x3fde   :  { %6940 = vmatmul.mubr.msk.f32.vlgmr.msra.gmra.mxu1 %vm208_vm4, %v4127_v16 }
0x3fdf   :  { %6959 = vmatpush3.msk.msra.mxu1 %vm286_vm2, %v7800_v41  ;;  %6960 = vmatprep.mubr.msk.f32.mxu1 %vm7344_vm0, %v7343_v0 }
0x3fe0   :  { %6963 = vmatprep.subr.mxu1 %v7343_v0 }
0x402d   :  { %v4270_v17 = vpop.f32.mrf.mxu0 }
0x402f   :  { %v6946_v33 = vpop.f32.mrf.mxu0 }
0x409e   :  { %v4196_v18 = vpop.f32.mrf.mxu1 }
0x409f   :  { %v4271_v19 = vadd.f32 %v4270_v17, %v4196_v18 }
0x40a0   :  { %v6941_v20 = vpop.f32.mrf.mxu1 }
0x40a1   :  { %v4274_v21 = vadd.f32 %v7833_v2, %v4271_v19 }
0x40a3   :  { %7256 = vtanh.f32 %v4274_v21  ;;  %v8162_v21 = vld [vmem:[%s8433_s2 + $0x23] ss:$0 sm:$0xff] }
0x40b0   :  { %v7257_v31 = vpop.eup %7256 }
0x40b1   :  { %4280 = vrot.lane.b32.xlu1 %v7257_v31, %s7345_s4  ;;  %v4276_v22 = vmul.f32 0.5, %v7257_v31 }
0x40b3   :  { %v4277_v23 = vadd.f32 0.5, %v4276_v22 }
0x40b5   :  { %v4278_v26 = vmul.f32 %v4277_v23, %v4118_v14 }
0x4123   :  { %v4281_v24 = vpop.permute.xlu1 %4280 }
0x4124   :  { %v4283_v25 = vmul.f32 %v4281_v24, %v4277_v23 }
0x4126   :  { %4285 = vrot.lane.b32.xlu0 %v4283_v25, %s7346_s5 }
0x4198   :  { %v4286_v27 = vpop.permute.xlu0 %4285 }
0x4199   :  { %v4288_v28 = vadd.f32 %v4286_v27, %v4278_v26 }
0x419b   :  { %7258 = vtanh.f32 %v4288_v28 }
0x41a8   :  { %v7259_v40 = vpop.eup %7258 }
0x41a9   :  { %4291 = vrot.lane.b32.xlu1 %v7259_v40, %s7345_s4 }
0x41ad   :  { %4370 = vrot.lane.b32.xlu1 %v7492_v36, %s7370_s14 }
0x421b   :  { %v4292_v42 = vpop.permute.xlu1 %4291 }
0x421c   :  { %v4294_v43 = vmul.f32 %v4292_v42, %v4277_v23 }
0x421e   :  { %4296 = vrot.lane.b32.xlu0 %v4294_v43, %s7346_s5 }
0x421f   :  { %v4371_v44 = vpop.permute.xlu1 %4370 }
0x4220   :  { %6961 = vmatmul.mubr.msk.f32.vlgmr.msra.gmra.mxu1 %vm282_vm3, %v4371_v44 }
0x4221   :  { %6964 = vmatpush3.msra.mxu1 %v7769_v34  ;;  %6971 = vmatprep.mubr.msk.f32.mxu1 %vm7344_vm0, %v7343_v0 }
0x4222   :  { %6965 = vmatprep.subr.mxu1 %v7343_v0 }
0x4223   :  { %6966 = vmatpush3.msra.mxu1 %v7778_v35 }
0x4224   :  { %6967 = vmatprep.subr.mxu1 %v7343_v0 }
0x4225   :  { %6968 = vmatpush3.msra.mxu1 %v7785_v37 }
0x4226   :  { %6969 = vmatprep.subr.mxu1 %v7343_v0 }
0x4227   :  { %6970 = vmatpush3.msra.mxu1 %v7792_v38 }
0x4228   :  { %6990 = vmatprep.subr.mxu1 %v7343_v0 }
0x4290   :  { %v4297_v45 = vpop.permute.xlu0 %4296 }
0x4291   :  { %6956 = vmatmul.mubr.msk.f32.vlgmr.msra.gmra.mxu0 %vm208_vm4, %v4297_v45 }
0x4292   :  { %6975 = vmatpush3.msk.msra.mxu0 %vm286_vm2, %v7800_v41  ;;  %6976 = vmatprep.mubr.msk.f32.mxu0 %vm7344_vm0, %v7343_v0 }
0x4293   :  { %6979 = vmatprep.subr.mxu0 %v7343_v0 }
0x42e0   :  { %v4440_v34 = vpop.f32.mrf.mxu1 }
0x42e2   :  { %v6962_v35 = vpop.f32.mrf.mxu1 }
0x4351   :  { %v4366_v37 = vpop.f32.mrf.mxu0 }
0x4352   :  { %v4441_v46 = vadd.f32 %v4440_v34, %v4366_v37 }
0x4353   :  { %v6957_v47 = vpop.f32.mrf.mxu0 }
0x4354   :  { %v4444_v38 = vadd.f32 %v7833_v2, %v4441_v46 }
0x4356   :  { %7260 = vtanh.f32 %v4444_v38 }
0x4363   :  { %v7261_v48 = vpop.eup %7260 }
0x4364   :  { %4450 = vrot.lane.b32.xlu0 %v7261_v48, %s7345_s4  ;;  %v4446_v49 = vmul.f32 0.5, %v7261_v48 }
0x4366   :  { %v4447_v50 = vadd.f32 0.5, %v4446_v49 }
0x4368   :  { %v4448_v52 = vmul.f32 %v4447_v50, %v4288_v28 }
0x43d6   :  { %v4451_v51 = vpop.permute.xlu0 %4450 }
0x43d7   :  { %v4453_v41 = vmul.f32 %v4451_v51, %v4447_v50 }
0x43d9   :  { %4455 = vrot.lane.b32.xlu1 %v4453_v41, %s7346_s5 }
0x444b   :  { %v4456_v53 = vpop.permute.xlu1 %4455 }
0x444c   :  { %v4458_v54 = vadd.f32 %v4456_v53, %v4448_v52 }
0x444e   :  { %7262 = vtanh.f32 %v4458_v54 }
0x445b   :  { %v7263_v55 = vpop.eup %7262 }
0x445c   :  { %4461 = vrot.lane.b32.xlu0 %v7263_v55, %s7345_s4 }
0x4460   :  { %4540 = vrot.lane.b32.xlu0 %v7492_v36, %s7371_s15 }
0x44ce   :  { %v4462_v56 = vpop.permute.xlu0 %4461 }
0x44cf   :  { %v4464_v39 = vmul.f32 %v4462_v56, %v4447_v50 }
0x44d1   :  { %4466 = vrot.lane.b32.xlu1 %v4464_v39, %s7346_s5 }
0x44d2   :  { %v4541_v57 = vpop.permute.xlu0 %4540 }
0x44d3   :  { %6977 = vmatmul.mubr.msk.f32.vlgmr.msra.gmra.mxu0 %vm282_vm3, %v4541_v57 }
0x44d4   :  { %6980 = vmatpush3.msra.mxu0 %v8098_v58  ;;  %6987 = vmatprep.mubr.msk.f32.mxu0 %vm7344_vm0, %v7343_v0 }
0x44d5   :  { %6981 = vmatprep.subr.mxu0 %v7343_v0 }
0x44d6   :  { %6982 = vmatpush3.msra.mxu0 %v8107_v59 }
0x44d7   :  { %6983 = vmatprep.subr.mxu0 %v7343_v0 }
0x44d8   :  { %6984 = vmatpush3.msra.mxu0 %v8114_v60 }
0x44d9   :  { %6985 = vmatprep.subr.mxu0 %v7343_v0 }
0x44da   :  { %6986 = vmatpush3.msra.mxu0 %v8121_v61 }
0x44db   :  { %7006 = vmatprep.subr.mxu0 %v7343_v0 }
0x4543   :  { %v4467_v62 = vpop.permute.xlu1 %4466 }
0x4544   :  { %6972 = vmatmul.mubr.msk.f32.vlgmr.msra.gmra.mxu1 %vm208_vm4, %v4467_v62 }
0x4545   :  { %6991 = vmatpush3.msk.msra.mxu1 %vm286_vm2, %v8129_v63  ;;  %6992 = vmatprep.mubr.msk.f32.mxu1 %vm7344_vm0, %v7343_v0 }
0x4546   :  { %6995 = vmatprep.subr.mxu1 %v7343_v0 }
0x4593   :  { %v4610_v1 = vpop.f32.mrf.mxu0 }
0x4595   :  { %v6978_v3 = vpop.f32.mrf.mxu0 }
0x4604   :  { %v4536_v4 = vpop.f32.mrf.mxu1 }
0x4605   :  { %v4611_v5 = vadd.f32 %v4610_v1, %v4536_v4 }
0x4606   :  { %v6973_v6 = vpop.f32.mrf.mxu1 }
0x4607   :  { %v4614_v7 = vadd.f32 %v7833_v2, %v4611_v5 }
0x4609   :  { %7264 = vtanh.f32 %v4614_v7 }
0x4616   :  { %v7265_v8 = vpop.eup %7264 }
0x4617   :  { %4620 = vrot.lane.b32.xlu1 %v7265_v8, %s7345_s4  ;;  %v4616_v9 = vmul.f32 0.5, %v7265_v8 }
0x4619   :  { %v4617_v10 = vadd.f32 0.5, %v4616_v9 }
0x461b   :  { %v4618_v13 = vmul.f32 %v4617_v10, %v4458_v54 }
0x4689   :  { %v4621_v11 = vpop.permute.xlu1 %4620 }
0x468a   :  { %v4623_v12 = vmul.f32 %v4621_v11, %v4617_v10 }
0x468c   :  { %4625 = vrot.lane.b32.xlu0 %v4623_v12, %s7346_s5 }
0x46fe   :  { %v4626_v14 = vpop.permute.xlu0 %4625 }
0x46ff   :  { %v4628_v15 = vadd.f32 %v4626_v14, %v4618_v13 }
0x4701   :  { %7266 = vtanh.f32 %v4628_v15 }
0x470e   :  { %v7267_v29 = vpop.eup %7266 }
0x470f   :  { %4631 = vrot.lane.b32.xlu1 %v7267_v29, %s7345_s4 }
0x4713   :  { %4710 = vrot.lane.b32.xlu1 %v7492_v36, %s7372_s24 }
0x4781   :  { %v4632_v2 = vpop.permute.xlu1 %4631 }
0x4782   :  { %v4634_v30 = vmul.f32 %v4632_v2, %v4617_v10 }
0x4784   :  { %4636 = vrot.lane.b32.xlu0 %v4634_v30, %s7346_s5 }
0x4785   :  { %v4711_v32 = vpop.permute.xlu1 %4710 }
0x4786   :  { %6993 = vmatmul.mubr.msk.f32.vlgmr.msra.gmra.mxu1 %vm282_vm3, %v4711_v32 }
0x4787   :  { %6996 = vmatpush3.msra.mxu1 %v8098_v58  ;;  %7003 = vmatprep.mubr.msk.f32.mxu1 %vm7344_vm0, %v7343_v0 }
0x4788   :  { %6997 = vmatprep.subr.mxu1 %v7343_v0 }
0x4789   :  { %6998 = vmatpush3.msra.mxu1 %v8107_v59 }
0x478a   :  { %6999 = vmatprep.subr.mxu1 %v7343_v0 }
0x478b   :  { %7000 = vmatpush3.msra.mxu1 %v8114_v60 }
0x478c   :  { %7001 = vmatprep.subr.mxu1 %v7343_v0 }
0x478d   :  { %7002 = vmatpush3.msra.mxu1 %v8121_v61 }
0x478e   :  { %7022 = vmatprep.subr.mxu1 %v7343_v0 }
0x47f6   :  { %v4637_v16 = vpop.permute.xlu0 %4636 }
0x47f7   :  { %6988 = vmatmul.mubr.msk.f32.vlgmr.msra.gmra.mxu0 %vm208_vm4, %v4637_v16 }
0x47f8   :  { %7007 = vmatpush3.msk.msra.mxu0 %vm286_vm2, %v8129_v63  ;;  %7008 = vmatprep.mubr.msk.f32.mxu0 %vm7344_vm0, %v7343_v0 }
0x47f9   :  { %7011 = vmatprep.subr.mxu0 %v7343_v0 }
0x4846   :  { %v4780_v17 = vpop.f32.mrf.mxu1 }
0x4848   :  { %v6994_v33 = vpop.f32.mrf.mxu1 }
0x48b7   :  { %v4706_v18 = vpop.f32.mrf.mxu0 }
0x48b8   :  { %v4781_v19 = vadd.f32 %v4780_v17, %v4706_v18 }
0x48b9   :  { %v6989_v20 = vpop.f32.mrf.mxu0 }
0x48ba   :  { %v4784_v31 = vadd.f32 %v8162_v21, %v4781_v19 }
0x48bc   :  { %7268 = vtanh.f32 %v4784_v31 }
0x48c9   :  { %v7269_v22 = vpop.eup %7268 }
0x48ca   :  { %4790 = vrot.lane.b32.xlu0 %v7269_v22, %s7345_s4  ;;  %v4786_v23 = vmul.f32 0.5, %v7269_v22 }
0x48cc   :  { %v4787_v24 = vadd.f32 0.5, %v4786_v23 }
0x48ce   :  { %v4788_v27 = vmul.f32 %v4787_v24, %v4628_v15 }
0x493c   :  { %v4791_v25 = vpop.permute.xlu0 %4790 }
0x493d   :  { %v4793_v26 = vmul.f32 %v4791_v25, %v4787_v24 }
0x493f   :  { %4795 = vrot.lane.b32.xlu1 %v4793_v26, %s7346_s5 }
0x49b1   :  { %v4796_v28 = vpop.permute.xlu1 %4795 }
0x49b2   :  { %v4798_v40 = vadd.f32 %v4796_v28, %v4788_v27 }
0x49b4   :  { %7270 = vtanh.f32 %v4798_v40 }
0x49c1   :  { %v7271_v42 = vpop.eup %7270 }
0x49c2   :  { %4801 = vrot.lane.b32.xlu0 %v7271_v42, %s7345_s4 }
0x49c6   :  { %4880 = vrot.lane.b32.xlu0 %v7492_v36, %s7373_s27 }
0x4a34   :  { %v4802_v43 = vpop.permute.xlu0 %4801 }
0x4a35   :  { %v4804_v44 = vmul.f32 %v4802_v43, %v4787_v24 }
0x4a37   :  { %4806 = vrot.lane.b32.xlu1 %v4804_v44, %s7346_s5 }
0x4a38   :  { %v4881_v45 = vpop.permute.xlu0 %4880 }
0x4a39   :  { %7009 = vmatmul.mubr.msk.f32.vlgmr.msra.gmra.mxu0 %vm282_vm3, %v4881_v45 }
0x4a3a   :  { %7012 = vmatpush3.msra.mxu0 %v8098_v58  ;;  %7019 = vmatprep.mubr.msk.f32.mxu0 %vm7344_vm0, %v7343_v0 }
0x4a3b   :  { %7013 = vmatprep.subr.mxu0 %v7343_v0 }
0x4a3c   :  { %7014 = vmatpush3.msra.mxu0 %v8107_v59 }
0x4a3d   :  { %7015 = vmatprep.subr.mxu0 %v7343_v0 }
0x4a3e   :  { %7016 = vmatpush3.msra.mxu0 %v8114_v60 }
0x4a3f   :  { %7017 = vmatprep.subr.mxu0 %v7343_v0 }
0x4a40   :  { %7018 = vmatpush3.msra.mxu0 %v8121_v61 }
0x4a41   :  { %7038 = vmatprep.subr.mxu0 %v7343_v0 }
0x4aa9   :  { %v4807_v34 = vpop.permute.xlu1 %4806 }
0x4aaa   :  { %7004 = vmatmul.mubr.msk.f32.vlgmr.msra.gmra.mxu1 %vm208_vm4, %v4807_v34 }
0x4aab   :  { %7023 = vmatpush3.msk.msra.mxu1 %vm286_vm2, %v8129_v63  ;;  %7024 = vmatprep.mubr.msk.f32.mxu1 %vm7344_vm0, %v7343_v0 }
0x4aac   :  { %7027 = vmatprep.subr.mxu1 %v7343_v0 }
0x4af9   :  { %v4950_v35 = vpop.f32.mrf.mxu0 }
0x4afb   :  { %v7010_v37 = vpop.f32.mrf.mxu0 }
0x4b6a   :  { %v4876_v46 = vpop.f32.mrf.mxu1 }
0x4b6b   :  { %v4951_v47 = vadd.f32 %v4950_v35, %v4876_v46 }
0x4b6c   :  { %v7005_v38 = vpop.f32.mrf.mxu1 }
0x4b6d   :  { %v4954_v48 = vadd.f32 %v8162_v21, %v4951_v47 }
0x4b6f   :  { %7272 = vtanh.f32 %v4954_v48 }
0x4b7c   :  { %v7273_v49 = vpop.eup %7272 }
0x4b7d   :  { %4960 = vrot.lane.b32.xlu1 %v7273_v49, %s7345_s4  ;;  %v4956_v50 = vmul.f32 0.5, %v7273_v49 }
0x4b7f   :  { %v4957_v51 = vadd.f32 0.5, %v4956_v50 }
0x4b81   :  { %v4958_v53 = vmul.f32 %v4957_v51, %v4798_v40 }
0x4bef   :  { %v4961_v41 = vpop.permute.xlu1 %4960 }
0x4bf0   :  { %v4963_v52 = vmul.f32 %v4961_v41, %v4957_v51 }
0x4bf2   :  { %4965 = vrot.lane.b32.xlu0 %v4963_v52, %s7346_s5 }
0x4c64   :  { %v4966_v54 = vpop.permute.xlu0 %4965 }
0x4c65   :  { %v4968_v55 = vadd.f32 %v4966_v54, %v4958_v53 }
0x4c67   :  { %7274 = vtanh.f32 %v4968_v55 }
0x4c74   :  { %v7275_v56 = vpop.eup %7274 }
0x4c75   :  { %4971 = vrot.lane.b32.xlu1 %v7275_v56, %s7345_s4 }
0x4c79   :  { %5050 = vrot.lane.b32.xlu1 %v7492_v36, %s7374_s28 }
0x4ce7   :  { %v4972_v39 = vpop.permute.xlu1 %4971 }
0x4ce8   :  { %v4974_v57 = vmul.f32 %v4972_v39, %v4957_v51 }
0x4cea   :  { %4976 = vrot.lane.b32.xlu0 %v4974_v57, %s7346_s5 }
0x4ceb   :  { %v5051_v62 = vpop.permute.xlu1 %5050 }
0x4cec   :  { %7025 = vmatmul.mubr.msk.f32.vlgmr.msra.gmra.mxu1 %vm282_vm3, %v5051_v62 }
0x4ced   :  { %7028 = vmatpush3.msra.mxu1 %v8098_v58  ;;  %7035 = vmatprep.mubr.msk.f32.mxu1 %vm7344_vm0, %v7343_v0 }
0x4cee   :  { %7029 = vmatprep.subr.mxu1 %v7343_v0 }
0x4cef   :  { %7030 = vmatpush3.msra.mxu1 %v8107_v59 }
0x4cf0   :  { %7031 = vmatprep.subr.mxu1 %v7343_v0 }
0x4cf1   :  { %7032 = vmatpush3.msra.mxu1 %v8114_v60 }
0x4cf2   :  { %7033 = vmatprep.subr.mxu1 %v7343_v0 }
0x4cf3   :  { %7034 = vmatpush3.msra.mxu1 %v8121_v61 }
0x4cf4   :  { %7054 = vmatprep.subr.mxu1 %v7343_v0 }
0x4d5c   :  { %v4977_v1 = vpop.permute.xlu0 %4976 }
0x4d5d   :  { %7020 = vmatmul.mubr.msk.f32.vlgmr.msra.gmra.mxu0 %vm208_vm4, %v4977_v1 }
0x4d5e   :  { %7039 = vmatpush3.msk.msra.mxu0 %vm286_vm2, %v8129_v63  ;;  %7040 = vmatprep.mubr.msk.f32.mxu0 %vm7344_vm0, %v7343_v0 }
0x4d5f   :  { %7043 = vmatprep.subr.mxu0 %v7343_v0 }
0x4dac   :  { %v5120_v3 = vpop.f32.mrf.mxu1 }
0x4dae   :  { %v7026_v4 = vpop.f32.mrf.mxu1 }
0x4e1d   :  { %v5046_v5 = vpop.f32.mrf.mxu0 }
0x4e1e   :  { %v5121_v6 = vadd.f32 %v5120_v3, %v5046_v5 }
0x4e1f   :  { %v7021_v7 = vpop.f32.mrf.mxu0 }
0x4e20   :  { %v5124_v8 = vadd.f32 %v8162_v21, %v5121_v6 }
0x4e22   :  { %7276 = vtanh.f32 %v5124_v8 }
0x4e2f   :  { %v7277_v9 = vpop.eup %7276 }
0x4e30   :  { %5130 = vrot.lane.b32.xlu0 %v7277_v9, %s7345_s4  ;;  %v5126_v10 = vmul.f32 0.5, %v7277_v9 }
0x4e32   :  { %v5127_v11 = vadd.f32 0.5, %v5126_v10 }
0x4e34   :  { %v5128_v14 = vmul.f32 %v5127_v11, %v4968_v55 }
0x4ea2   :  { %v5131_v12 = vpop.permute.xlu0 %5130 }
0x4ea3   :  { %v5133_v13 = vmul.f32 %v5131_v12, %v5127_v11 }
0x4ea5   :  { %5135 = vrot.lane.b32.xlu1 %v5133_v13, %s7346_s5  ;;  %v5658_v13 = vld [vmem:[%s8433_s2 + $0x38] sm:$0xff] }
0x4f17   :  { %v5136_v15 = vpop.permute.xlu1 %5135 }
0x4f18   :  { %v5138_v29 = vadd.f32 %v5136_v15, %v5128_v14  ;;  %v5657_v14 = vld [vmem:[%s8433_s2 + $0x30] sm:$0xff]  ;;  %v5656_v15 = vld [vmem:[%s8433_s2 + $0x28] sm:$0xff] }
0x4f1a   :  { %7278 = vtanh.f32 %v5138_v29 }
0x4f27   :  { %v7279_v2 = vpop.eup %7278 }
0x4f28   :  { %5141 = vrot.lane.b32.xlu0 %v7279_v2, %s7345_s4 }
0x4f2c   :  { %5220 = vrot.lane.b32.xlu0 %v7492_v36, %s7375_s29 }
0x4f9a   :  { %v5142_v30 = vpop.permute.xlu0 %5141 }
0x4f9b   :  { %v5144_v32 = vmul.f32 %v5142_v30, %v5127_v11 }
0x4f9d   :  { %5146 = vrot.lane.b32.xlu1 %v5144_v32, %s7346_s5 }
0x4f9e   :  { %v5221_v16 = vpop.permute.xlu0 %5220 }
0x4f9f   :  { %7041 = vmatmul.mubr.msk.f32.vlgmr.msra.gmra.mxu0 %vm282_vm3, %v5221_v16  ;;  %v7378_v16 = vmov 1  }
0x4fa0   :  { %7044 = vmatpush3.msra.mxu0 %v8098_v58  ;;  %7051 = vmatprep.mubr.msk.f32.mxu0 %vm7344_vm0, %v7343_v0 }
0x4fa1   :  { %7045 = vmatprep.subr.mxu0 %v7343_v0  ;;  %7130 = vset.pattern.permute.xlu0 %v7378_v16 }
0x4fa2   :  { %7046 = vmatpush3.msra.mxu0 %v8107_v59 }
0x4fa3   :  { %7047 = vmatprep.subr.mxu0 %v7343_v0 }
0x4fa4   :  { %7048 = vmatpush3.msra.mxu0 %v8114_v60 }
0x4fa5   :  { %7049 = vmatprep.subr.mxu0 %v7343_v0 }
0x4fa6   :  { %7050 = vmatpush3.msra.mxu0 %v8121_v61 }
0x4fa7   :  { %7070 = vmatprep.subr.mxu0 %v7343_v0 }
0x500f   :  { %v5147_v17 = vpop.permute.xlu1 %5146 }
0x5010   :  { %7036 = vmatmul.mubr.msk.f32.vlgmr.msra.gmra.mxu1 %vm208_vm4, %v5147_v17  ;;  %v7379_v17 = vmov 0  }
0x5011   :  { %7055 = vmatpush3.msk.msra.mxu1 %vm286_vm2, %v8129_v63  ;;  %7056 = vmatprep.mubr.msk.f32.mxu1 %vm7344_vm0, %v7343_v0 }
0x5012   :  { %7059 = vmatprep.subr.mxu1 %v7343_v0  ;;  %7129 = vset.pattern.permute.xlu1 %v7379_v17 }
0x505f   :  { %v5290_v33 = vpop.f32.mrf.mxu0 }
0x5061   :  { %v7042_v18 = vpop.f32.mrf.mxu0 }
0x50d0   :  { %v5216_v19 = vpop.f32.mrf.mxu1 }
0x50d1   :  { %v5291_v20 = vadd.f32 %v5290_v33, %v5216_v19 }
0x50d2   :  { %v7037_v31 = vpop.f32.mrf.mxu1 }
0x50d3   :  { %v5294_v22 = vadd.f32 %v8162_v21, %v5291_v20  ;;  %v7380_v31 = vmov 4  }
0x50d5   :  { %7280 = vtanh.f32 %v5294_v22  ;;  %v7381_v22 = vmov 2  }
0x50e2   :  { %v7281_v23 = vpop.eup %7280 }
0x50e3   :  { %5300 = vrot.lane.b32.xlu1 %v7281_v23, %s7345_s4  ;;  %v5296_v24 = vmul.f32 0.5, %v7281_v23  ;;  %v7382_v23 = vmov 3  }
0x50e5   :  { %v5297_v25 = vadd.f32 0.5, %v5296_v24  ;;  %v6218_v24 = vld [vmem:[%s8433_s2 + $0x50] ss:$0 sm:$0xff] }
0x50e7   :  { %v5298_v28 = vmul.f32 %v5297_v25, %v5138_v29 }
0x5155   :  { %v5301_v26 = vpop.permute.xlu1 %5300 }
0x5156   :  { %v5303_v27 = vmul.f32 %v5301_v26, %v5297_v25 }
0x5158   :  { %5305 = vrot.lane.b32.xlu0 %v5303_v27, %s7346_s5 }
0x51ca   :  { %v5306_v40 = vpop.permute.xlu0 %5305 }
0x51cb   :  { %v5308_v42 = vadd.f32 %v5306_v40, %v5298_v28  ;;  %v6220_v28 = vld [vmem:[%s8433_s2 + $0x51] ss:$0 sm:$0xff] }
0x51cd   :  { %7282 = vtanh.f32 %v5308_v42 }
0x51da   :  { %v7283_v43 = vpop.eup %7282 }
0x51db   :  { %5311 = vrot.lane.b32.xlu1 %v7283_v43, %s7345_s4  ;;  %v6221_v43 = vld [vmem:[%s8433_s2 + $0x52] ss:$0 sm:$0xff] }
0x51df   :  { %5390 = vrot.lane.b32.xlu1 %v7492_v36, %s7376_s30 }
0x524d   :  { %v5312_v44 = vpop.permute.xlu1 %5311 }
0x524e   :  { %v5314_v45 = vmul.f32 %v5312_v44, %v5297_v25  ;;  %v6219_v25 = vld [vmem:[%s8433_s2 + $0x55] ss:$0 sm:$0xff] }
0x5250   :  { %5316 = vrot.lane.b32.xlu0 %v5314_v45, %s7346_s5 }
0x5251   :  { %v5391_v34 = vpop.permute.xlu1 %5390 }
0x5252   :  { %7057 = vmatmul.mubr.msk.f32.vlgmr.msra.gmra.mxu1 %vm282_vm3, %v5391_v34 }
0x5253   :  { %7060 = vmatpush3.msra.mxu1 %v8098_v58  ;;  %7067 = vmatprep.mubr.msk.f32.mxu1 %vm7344_vm0, %v7343_v0 }
0x5254   :  { %7061 = vmatprep.subr.mxu1 %v7343_v0 }
0x5255   :  { %7062 = vmatpush3.msra.mxu1 %v8107_v59 }
0x5256   :  { %7063 = vmatprep.subr.mxu1 %v7343_v0 }
0x5257   :  { %7064 = vmatpush3.msra.mxu1 %v8114_v60 }
0x5258   :  { %7065 = vmatprep.subr.mxu1 %v7343_v0 }
0x5259   :  { %7066 = vmatpush3.msra.mxu1 %v8121_v61 }
0x52c2   :  { %v5317_v35 = vpop.permute.xlu0 %5316 }
0x52c3   :  { %7052 = vmatmul.mubr.msk.f32.vlgmr.msra.gmra.mxu0 %vm208_vm4, %v5317_v35 }
0x52c4   :  { %7071 = vmatpush3.msk.msra.mxu0 %vm286_vm2, %v8129_v63  ;;  %7072 = vmatprep.mubr.msk.f32.mxu0 %vm7344_vm0, %v7343_v0 }
0x52c5   :  { %7075 = vmatprep.subr.mxu0 %v7343_v0 }
0x5312   :  { %v5460_v58 = vpop.f32.mrf.mxu1 }
0x5314   :  { %v7058_v59 = vpop.f32.mrf.mxu1 }
0x5315   :  { %v6223_v59 = vld [vmem:[%s8433_s2 + $0x54] ss:$0 sm:$0xff] }
0x5383   :  { %v5386_v37 = vpop.f32.mrf.mxu0 }
0x5384   :  { %v5461_v46 = vadd.f32 %v5460_v58, %v5386_v37  ;;  %v6222_v58 = vld [vmem:[%s8433_s2 + $0x53] ss:$0 sm:$0xff] }
0x5385   :  { %v7053_v60 = vpop.f32.mrf.mxu0 }
0x5386   :  { %v5464_v47 = vadd.f32 %v8162_v21, %v5461_v46 }
0x5388   :  { %7284 = vtanh.f32 %v5464_v47 }
0x5395   :  { %v7285_v61 = vpop.eup %7284 }
0x5396   :  { %5470 = vrot.lane.b32.xlu0 %v7285_v61, %s7345_s4  ;;  %v5466_v38 = vmul.f32 0.5, %v7285_v61 }
0x5398   :  { %v5467_v48 = vadd.f32 0.5, %v5466_v38 }
0x539a   :  { %v5468_v50 = vmul.f32 %v5467_v48, %v5308_v42 }
0x5408   :  { %v5471_v49 = vpop.permute.xlu0 %5470 }
0x5409   :  { %v5473_v63 = vmul.f32 %v5471_v49, %v5467_v48 }
0x540b   :  { %5475 = vrot.lane.b32.xlu1 %v5473_v63, %s7346_s5  ;;  %v6224_v63 = vld [vmem:[%s8433_s2 + $0x58] ss:$0 sm:$0xff] }
0x547d   :  { %v5476_v51 = vpop.permute.xlu1 %5475 }
0x547e   :  { %v5478_v41 = vadd.f32 %v5476_v51, %v5468_v50 }
0x5480   :  { %7286 = vtanh.f32 %v5478_v41 }
0x548d   :  { %v7287_v52 = vpop.eup %7286 }
0x548e   :  { %5481 = vrot.lane.b32.xlu0 %v7287_v52, %s7345_s4  ;;  %v6226_v52 = vld [vmem:[%s8433_s2 + $0x59] ss:$0 sm:$0xff] }
0x5492   :  { %5560 = vrot.lane.b32.xlu0 %v7492_v36, %s7377_s6 }
0x5500   :  { %v5482_v53 = vpop.permute.xlu0 %5481 }
0x5501   :  { %v5484_v54 = vmul.f32 %v5482_v53, %v5467_v48 }
0x5503   :  { %5486 = vrot.lane.b32.xlu1 %v5484_v54, %s7346_s5 }
0x5504   :  { %v5561_v55 = vpop.permute.xlu0 %5560 }
0x5505   :  { %7073 = vmatmul.mubr.msk.f32.vlgmr.msra.gmra.mxu0 %vm282_vm3, %v5561_v55 }
0x5506   :  { %7083 = vmatprep.mubr.msk.f32.mxu0 %vm7344_vm0, %v7343_v0 }
0x5575   :  { %v5487_v56 = vpop.permute.xlu1 %5486 }
0x5576   :  { %7068 = vmatmul.mubr.msk.f32.vlgmr.msra.gmra.mxu1 %vm208_vm4, %v5487_v56  ;;  %v6227_v56 = vld [vmem:[%s8433_s2 + $0x5a] ss:$0 sm:$0xff] }
0x55c5   :  { %v5630_v39 = vpop.f32.mrf.mxu0 }
0x55c7   :  { %v7074_v57 = vpop.f32.mrf.mxu0 }
0x5636   :  { %v5556_v62 = vpop.f32.mrf.mxu1 }
0x5637   :  { %v5631_v1 = vadd.f32 %v5630_v39, %v5556_v62  ;;  %v6228_v62 = vld [vmem:[%s8433_s2 + $0x5b] ss:$0 sm:$0xff] }
0x5638   :  { %v7069_v3 = vpop.f32.mrf.mxu1 }
0x5639   :  { %v5634_v36 = vadd.f32 %v8162_v21, %v5631_v1  ;;  %v5659_v21 = vld [vmem:[%s8433_s2 + $0x40] sm:$0xff] }
0x563a   :  { %7076 = vmatpush3.msra.mxu0 %v5659_v21 }
0x563b   :  { %7288 = vtanh.f32 %v5634_v36  ;;  %7077 = vmatprep.subr.mxu0 %v7343_v0 }
0x563c   :  { %7078 = vmatpush3.msra.mxu0 %v5658_v13  ;;  %v6231_v13 = vld [vmem:[%s8433_s2 + $0x65] ss:$0 sm:$0xff] }
0x563d   :  { %7079 = vmatprep.subr.mxu0 %v7343_v0 }
0x563e   :  { %7080 = vmatpush3.msra.mxu0 %v5657_v14 }
0x563f   :  { %7081 = vmatprep.subr.mxu0 %v7343_v0  ;;  %v6216_v0 = vld [vmem:[%s8433_s2 + $0x48] ss:$0 sm:$0xff] }
0x5640   :  { %7082 = vmatpush3.msra.mxu0 %v5656_v15 }
0x5648   :  { %v7289_v4 = vpop.eup %7288 }
0x5649   :  { %5640 = vrot.lane.b32.xlu1 %v7289_v4, %s7345_s4  ;;  %v5636_v5 = vmul.f32 0.5, %v7289_v4 }
0x564b   :  { %v5637_v6 = vadd.f32 0.5, %v5636_v5  ;;  %v6229_v5 = vld [vmem:[%s8433_s2 + $0x5c] ss:$0 sm:$0xff] }
0x564d   :  { %v5638_v9 = vmul.f32 %v5637_v6, %v5478_v41  ;;  %v6225_v41 = vld [vmem:[%s8433_s2 + $0x5d] ss:$0 sm:$0xff] }
0x56bb   :  { %v5641_v7 = vpop.permute.xlu1 %5640 }
0x56bc   :  { %v5643_v8 = vmul.f32 %v5641_v7, %v5637_v6 }
0x56be   :  { %5645 = vrot.lane.b32.xlu0 %v5643_v8, %s7346_s5 }
0x5730   :  { %v5646_v10 = vpop.permute.xlu0 %5645 }
0x5731   :  { %v5648_v11 = vadd.f32 %v5646_v10, %v5638_v9 }
0x5733   :  { %7290 = vtanh.f32 %v5648_v11  ;;  %v6230_v11 = vld [vmem:[%s8433_s2 + $0x60] ss:$0 sm:$0xff] }
0x5740   :  { %v7291_v12 = vpop.eup %7290 }
0x5741   :  { %5651 = vrot.lane.b32.xlu1 %v7291_v12, %s7345_s4  ;;  %v6232_v12 = vld [vmem:[%s8433_s2 + $0x61] ss:$0 sm:$0xff] }
0x57b3   :  { %v5652_v29 = vpop.permute.xlu1 %5651 }
0x57b4   :  { %v5654_v2 = vmul.f32 %v5652_v29, %v5637_v6 }
0x57b6   :  { %7292 = vtanh.f32 %v5654_v2 }
0x57c3   :  { %v7293_v30 = vpop.eup %7292 }
0x57c4   :  { %5666 = vrot.lane.b32.xlu0 %v7293_v30, %s7346_s5  ;;  %v6233_v30 = vld [vmem:[%s8433_s2 + $0x62] ss:$0 sm:$0xff] }
0x5836   :  { %v5667_v32 = vpop.permute.xlu0 %5666 }
0x5837   :  { %7084 = vmatmul.mubr.msk.f32.vlgmr.msra.gmra.mxu0 %vm208_vm4, %v5667_v32 }
0x58f7   :  { %v5736_v33 = vpop.f32.mrf.mxu0 }
0x58f8   :  { %v5737_v18 = vadd.f32 %v6216_v0, %v5736_v33  ;;  %v6234_v33 = vld [vmem:[%s8433_s2 + $0x63] ss:$0 sm:$0xff] }
0x58f9   :  { %v7085_v19 = vpop.f32.mrf.mxu0 }
0x58fa   :  { %7294 = vtanh.f32 %v5737_v18 }
0x5907   :  { %v7295_v20 = vpop.eup %7294 }
0x5908   :  { %5760 = vperm.xlu0 %7130, %v7295_v20   ;;  %5744 = vperm.xlu1 %7129, %v7295_v20  }
0x590c   :  { %7133 = vset.pattern.permute.xlu0 %v7380_v31  ;;  %7131 = vset.pattern.permute.xlu1 %v7381_v22 }
0x590d   :  { %5793 = vperm.xlu0 %7133, %v7295_v20   ;;  %5771 = vperm.xlu1 %7131, %v7295_v20  }
0x5911   :  { %7132 = vset.pattern.permute.xlu1 %v7382_v23  ;;  %7136 = vset.pattern.permute.xlu0 %v7381_v22 }
0x5912   :  { %5782 = vperm.xlu1 %7132, %v7295_v20  }
0x5916   :  { %7134 = vset.pattern.permute.xlu1 %v7379_v17 }
0x5983   :  { %v5745_v26 = vpop.permute.xlu1 %5744  ;;  %v5761_v40 = vpop.permute.xlu0 %5760 }
0x5984   :  { %v5751_v27 = vmul.f32 %v6218_v24, %v5745_v26  ;;  %v5767_v44 = vmul.f32 %v6220_v28, %v5761_v40 }
0x5986   :  { %v5757_v42 = vadd.f32 %v6219_v25, %v5751_v27  ;;  %v6235_v25 = vld [vmem:[%s8433_s2 + $0x64] ss:$0 sm:$0xff] }
0x5988   :  { %v5772_v45 = vpop.permute.xlu1 %5771  ;;  %v5768_v34 = vadd.f32 %v5767_v44, %v5757_v42  ;;  %v5794_v37 = vpop.permute.xlu0 %5793  ;;  %v6237_v44 = vld [vmem:[%s8433_s2 + $0x6d] ss:$0 sm:$0xff] }
0x5989   :  { %v5778_v35 = vmul.f32 %v6221_v43, %v5772_v45  ;;  %v5800_v61 = vmul.f32 %v6223_v59, %v5794_v37  ;;  %v6236_v43 = vld [vmem:[%s8433_s2 + $0x68] ss:$0 sm:$0xff]  ;;  %v6239_v37 = vld [vmem:[%s8433_s2 + $0x6a] ss:$0 sm:$0xff] }
0x598b   :  { %v5779_v60 = vadd.f32 %v5778_v35, %v5768_v34  ;;  %v6238_v35 = vld [vmem:[%s8433_s2 + $0x69] ss:$0 sm:$0xff] }
0x598d   :  { %v5783_v46 = vpop.permute.xlu1 %5782 }
0x598e   :  { %v5789_v47 = vmul.f32 %v6222_v58, %v5783_v46 }
0x5990   :  { %v5790_v38 = vadd.f32 %v5789_v47, %v5779_v60 }
0x5992   :  { %v5801_v48 = vadd.f32 %v5800_v61, %v5790_v38  ;;  %v6240_v38 = vld [vmem:[%s8433_s2 + $0x6b] ss:$0 sm:$0xff] }
0x5994   :  { %7296 = vtanh.f32 %v5801_v48  ;;  %v6241_v48 = vld [vmem:[%s8433_s2 + $0x6c] ss:$0 sm:$0xff] }
0x59a1   :  { %v7297_v49 = vpop.eup %7296 }
0x59a2   :  { %5833 = vperm.xlu0 %7136, %v7297_v49   ;;  %5806 = vperm.xlu1 %7134, %v7297_v49  }
0x59a6   :  { %7135 = vset.pattern.permute.xlu1 %v7378_v16  ;;  %7139 = vset.pattern.permute.xlu0 %v7379_v17 }
0x59a7   :  { %5822 = vperm.xlu1 %7135, %v7297_v49  }
0x59ab   :  { %7137 = vset.pattern.permute.xlu1 %v7382_v23 }
0x59ac   :  { %5844 = vperm.xlu1 %7137, %v7297_v49  }
0x59b0   :  { %7138 = vset.pattern.permute.xlu1 %v7380_v31 }
0x59b1   :  { %5855 = vperm.xlu1 %7138, %v7297_v49  }
0x59b5   :  { %7140 = vset.pattern.permute.xlu1 %v7378_v16 }
0x5a1d   :  { %v5807_v50 = vpop.permute.xlu1 %5806  ;;  %v5834_v39 = vpop.permute.xlu0 %5833 }
0x5a1e   :  { %v5813_v51 = vmul.f32 %v6224_v63, %v5807_v50  ;;  %v5840_v1 = vmul.f32 %v6227_v56, %v5834_v39 }
0x5a20   :  { %v5819_v54 = vadd.f32 %v6225_v41, %v5813_v51 }
0x5a22   :  { %v5823_v53 = vpop.permute.xlu1 %5822 }
0x5a23   :  { %v5829_v55 = vmul.f32 %v6226_v52, %v5823_v53 }
0x5a25   :  { %v5830_v57 = vadd.f32 %v5829_v55, %v5819_v54  ;;  %v6242_v55 = vld [vmem:[%s8433_s2 + $0x70] ss:$0 sm:$0xff] }
0x5a27   :  { %v5845_v3 = vpop.permute.xlu1 %5844  ;;  %v5841_v36 = vadd.f32 %v5840_v1, %v5830_v57  ;;  %v6243_v57 = vld [vmem:[%s8433_s2 + $0x75] ss:$0 sm:$0xff] }
0x5a28   :  { %v5851_v4 = vmul.f32 %v6228_v62, %v5845_v3 }
0x5a2a   :  { %v5852_v7 = vadd.f32 %v5851_v4, %v5841_v36 }
0x5a2c   :  { %v5856_v6 = vpop.permute.xlu1 %5855 }
0x5a2d   :  { %v5862_v8 = vmul.f32 %v6229_v5, %v5856_v6  ;;  %v6246_v5 = vld [vmem:[%s8433_s2 + $0x73] ss:$0 sm:$0xff] }
0x5a2f   :  { %v5863_v9 = vadd.f32 %v5862_v8, %v5852_v7 }
0x5a31   :  { %7298 = vtanh.f32 %v5863_v9 }
0x5a3e   :  { %v7299_v10 = vpop.eup %7298 }
0x5a3f   :  { %5884 = vperm.xlu1 %7140, %v7299_v10   ;;  %5868 = vperm.xlu0 %7139, %v7299_v10  }
0x5a43   :  { %7141 = vset.pattern.permute.xlu1 %v7381_v22  ;;  %7142 = vset.pattern.permute.xlu0 %v7382_v23 }
0x5a44   :  { %5895 = vperm.xlu1 %7141, %v7299_v10   ;;  %5906 = vperm.xlu0 %7142, %v7299_v10  }
0x5a48   :  { %7143 = vset.pattern.permute.xlu1 %v7380_v31  ;;  %7145 = vset.pattern.permute.xlu0 %v7378_v16 }
0x5a49   :  { %5917 = vperm.xlu1 %7143, %v7299_v10   ;;  %v6247_v10 = vld [vmem:[%s8433_s2 + $0x74] ss:$0 sm:$0xff] }
0x5a4d   :  { %7144 = vset.pattern.permute.xlu1 %v7379_v17 }
0x5aba   :  { %v5885_v21 = vpop.permute.xlu1 %5884  ;;  %v5869_v14 = vpop.permute.xlu0 %5868 }
0x5abb   :  { %v5875_v15 = vmul.f32 %v6230_v11, %v5869_v14  ;;  %v5891_v29 = vmul.f32 %v6232_v12, %v5885_v21 }
0x5abd   :  { %v5881_v2 = vadd.f32 %v6231_v13, %v5875_v15  ;;  %v6248_v15 = vld [vmem:[%s8433_s2 + $0x78] ss:$0 sm:$0xff] }
0x5abf   :  { %v5896_v32 = vpop.permute.xlu1 %5895  ;;  %v5892_v0 = vadd.f32 %v5891_v29, %v5881_v2  ;;  %v5907_v18 = vpop.permute.xlu0 %5906  ;;  %v6250_v29 = vld [vmem:[%s8433_s2 + $0x79] ss:$0 sm:$0xff] }
0x5ac0   :  { %v5902_v19 = vmul.f32 %v6233_v30, %v5896_v32  ;;  %v5913_v24 = vmul.f32 %v6234_v33, %v5907_v18 }
0x5ac2   :  { %v5903_v20 = vadd.f32 %v5902_v19, %v5892_v0  ;;  %v6252_v19 = vld [vmem:[%s8433_s2 + $0x7b] ss:$0 sm:$0xff] }
0x5ac4   :  { %v5914_v26 = vadd.f32 %v5913_v24, %v5903_v20  ;;  %v5918_v27 = vpop.permute.xlu1 %5917 }
0x5ac5   :  { %v5924_v28 = vmul.f32 %v6235_v25, %v5918_v27  ;;  %v6253_v27 = vld [vmem:[%s8433_s2 + $0x7c] ss:$0 sm:$0xff] }
0x5ac7   :  { %v5925_v40 = vadd.f32 %v5924_v28, %v5914_v26 }
0x5ac9   :  { %7300 = vtanh.f32 %v5925_v40 }
0x5ad6   :  { %v7301_v42 = vpop.eup %7300 }
0x5ad7   :  { %5946 = vperm.xlu0 %7145, %v7301_v42   ;;  %5930 = vperm.xlu1 %7144, %v7301_v42  }
0x5adb   :  { %7148 = vset.pattern.permute.xlu0 %v7380_v31  ;;  %7146 = vset.pattern.permute.xlu1 %v7381_v22 }
0x5adc   :  { %5979 = vperm.xlu0 %7148, %v7301_v42   ;;  %5957 = vperm.xlu1 %7146, %v7301_v42  }
0x5ae0   :  { %7147 = vset.pattern.permute.xlu1 %v7382_v23  ;;  %7151 = vset.pattern.permute.xlu0 %v7381_v22 }
0x5ae1   :  { %5968 = vperm.xlu1 %7147, %v7301_v42  }
0x5ae5   :  { %7149 = vset.pattern.permute.xlu1 %v7379_v17 }
0x5b52   :  { %v5931_v45 = vpop.permute.xlu1 %5930  ;;  %v5947_v58 = vpop.permute.xlu0 %5946 }
0x5b53   :  { %v5937_v34 = vmul.f32 %v6236_v43, %v5931_v45  ;;  %v5953_v46 = vmul.f32 %v6238_v35, %v5947_v58 }
0x5b55   :  { %v5943_v59 = vadd.f32 %v6237_v44, %v5937_v34 }
0x5b57   :  { %v5958_v60 = vpop.permute.xlu1 %5957  ;;  %v5954_v47 = vadd.f32 %v5953_v46, %v5943_v59  ;;  %v5980_v49 = vpop.permute.xlu0 %5979 }
0x5b58   :  { %v5964_v61 = vmul.f32 %v6239_v37, %v5958_v60  ;;  %v5986_v41 = vmul.f32 %v6241_v48, %v5980_v49 }
0x5b5a   :  { %v5965_v50 = vadd.f32 %v5964_v61, %v5954_v47 }
0x5b5c   :  { %v5969_v63 = vpop.permute.xlu1 %5968 }
0x5b5d   :  { %v5975_v51 = vmul.f32 %v6240_v38, %v5969_v63 }
0x5b5f   :  { %v5976_v52 = vadd.f32 %v5975_v51, %v5965_v50 }
0x5b61   :  { %v5987_v53 = vadd.f32 %v5986_v41, %v5976_v52 }
0x5b63   :  { %7302 = vtanh.f32 %v5987_v53 }
0x5b70   :  { %v7303_v54 = vpop.eup %7302 }
0x5b71   :  { %6019 = vperm.xlu0 %7151, %v7303_v54   ;;  %5992 = vperm.xlu1 %7149, %v7303_v54  }
0x5b75   :  { %7150 = vset.pattern.permute.xlu1 %v7378_v16  ;;  %7154 = vset.pattern.permute.xlu0 %v7379_v17  ;;  %v6244_v17 = vld [vmem:[%s8433_s2 + $0x71] ss:$0 sm:$0xff] }
0x5b76   :  { %6008 = vperm.xlu1 %7150, %v7303_v54  }
0x5b7a   :  { %7152 = vset.pattern.permute.xlu1 %v7382_v23 }
0x5b7b   :  { %6030 = vperm.xlu1 %7152, %v7303_v54  }
0x5b7f   :  { %7153 = vset.pattern.permute.xlu1 %v7380_v31 }
0x5b80   :  { %6041 = vperm.xlu1 %7153, %v7303_v54  }
0x5b84   :  { %7155 = vset.pattern.permute.xlu1 %v7378_v16  ;;  %v6245_v16 = vld [vmem:[%s8433_s2 + $0x72] ss:$0 sm:$0xff] }
0x5bec   :  { %v5993_v56 = vpop.permute.xlu1 %5992  ;;  %v6020_v36 = vpop.permute.xlu0 %6019 }
0x5bed   :  { %v5999_v39 = vmul.f32 %v6242_v55, %v5993_v56  ;;  %v6026_v6 = vmul.f32 %v6245_v16, %v6020_v36 }
0x5bef   :  { %v6005_v1 = vadd.f32 %v6243_v57, %v5999_v39 }
0x5bf1   :  { %v6009_v62 = vpop.permute.xlu1 %6008 }
0x5bf2   :  { %v6015_v3 = vmul.f32 %v6244_v17, %v6009_v62 }
0x5bf4   :  { %v6016_v4 = vadd.f32 %v6015_v3, %v6005_v1 }
0x5bf6   :  { %v6031_v7 = vpop.permute.xlu1 %6030  ;;  %v6027_v8 = vadd.f32 %v6026_v6, %v6016_v4 }
0x5bf7   :  { %v6037_v9 = vmul.f32 %v6246_v5, %v6031_v7 }
0x5bf9   :  { %v6038_v12 = vadd.f32 %v6037_v9, %v6027_v8 }
0x5bfb   :  { %v6042_v11 = vpop.permute.xlu1 %6041 }
0x5bfc   :  { %v6048_v21 = vmul.f32 %v6247_v10, %v6042_v11 }
0x5bfe   :  { %v6049_v13 = vadd.f32 %v6048_v21, %v6038_v12 }
0x5c00   :  { %7304 = vtanh.f32 %v6049_v13 }
0x5c0d   :  { %v7305_v14 = vpop.eup %7304 }
0x5c0e   :  { %6070 = vperm.xlu1 %7155, %v7305_v14   ;;  %6054 = vperm.xlu0 %7154, %v7305_v14  }
0x5c12   :  { %7156 = vset.pattern.permute.xlu1 %v7381_v22  ;;  %7157 = vset.pattern.permute.xlu0 %v7382_v23  ;;  %v6249_v22 = vld [vmem:[%s8433_s2 + $0x7d] ss:$0 sm:$0xff] }
0x5c13   :  { %6081 = vperm.xlu1 %7156, %v7305_v14   ;;  %6092 = vperm.xlu0 %7157, %v7305_v14  }
0x5c17   :  { %7158 = vset.pattern.permute.xlu1 %v7380_v31  ;;  %7159 = vset.pattern.permute.xlu0 %v7380_v31  ;;  %v6251_v31 = vld [vmem:[%s8433_s2 + $0x7a] ss:$0 sm:$0xff] }
0x5c18   :  { %6103 = vperm.xlu1 %7158, %v7305_v14  }
0x5c89   :  { %v6071_v2 = vpop.permute.xlu1 %6070  ;;  %v6055_v23 = vpop.permute.xlu0 %6054 }
0x5c8a   :  { %v6061_v30 = vmul.f32 %v6248_v15, %v6055_v23  ;;  %v6077_v32 = vmul.f32 %v6250_v29, %v6071_v2 }
0x5c8c   :  { %v6067_v0 = vadd.f32 %v6249_v22, %v6061_v30 }
0x5c8e   :  { %v6082_v33 = vpop.permute.xlu1 %6081  ;;  %v6078_v18 = vadd.f32 %v6077_v32, %v6067_v0  ;;  %v6093_v20 = vpop.permute.xlu0 %6092 }
0x5c8f   :  { %v6088_v24 = vmul.f32 %v6251_v31, %v6082_v33  ;;  %v6099_v26 = vmul.f32 %v6252_v19, %v6093_v20 }
0x5c91   :  { %v6089_v25 = vadd.f32 %v6088_v24, %v6078_v18 }
0x5c93   :  { %v6100_v28 = vadd.f32 %v6099_v26, %v6089_v25  ;;  %v6104_v40 = vpop.permute.xlu1 %6103 }
0x5c94   :  { %v6110_v42 = vmul.f32 %v6253_v27, %v6104_v40 }
0x5c96   :  { %v6111_v43 = vadd.f32 %v6110_v42, %v6100_v28 }
0x5c98   :  { %6112 = vst [vmem:[%s8434_s3] sm:$0xff] %v6111_v43 }
0x5c99   :  { %6117 = vsyncpa [#allocation3], 1 }

</bundles_post_ra>
